<compile_context>
chip_gen: v5e
topology: v5e:2x2
jax: 0.10.0
libtpu: 0.0.40
codegen_flags: <defaults>
</compile_context>

<pallas_src>
import functools
import math

import jax
import jax.numpy as jnp
from jax import lax
from jax.experimental import pallas as pl
from jax.experimental.pallas import tpu as pltpu


# ----------------------------------------------------------------------------
# Fused kernel: both bidirectional LSTMs in one launch
# ----------------------------------------------------------------------------
def rnn_encoder_kernel(xa_ref, xv_ref,
                       wih_a_ref, whh_a_ref, b_a_ref,
                       wih_v_ref, whh_v_ref, b_v_ref,
                       ya_ref, yv_ref,
                       *, T, B, H):
    G = 4 * H  # per-direction gate width (i, f, o, g)

    def bilstm(x_ref, wih_ref, whh_ref, b_ref, y_ref):
        D = x_ref.shape[-1]

        # ---- hoisted, carry-independent input projection --------------------
        # one lane-dense (T*B, D) x (D, 8H=128) matmul + pre-summed bias,
        # entirely off the serial carry chain.
        x2 = x_ref[...].reshape(B * T, D).astype(jnp.bfloat16)
        gx = jnp.dot(x2, wih_ref[...],
                     preferred_element_type=jnp.float32) + b_ref[...]
        gx = gx.reshape(B, T, 2 * G)                      # (B, T, 8H)

        whh = whh_ref[...]                                # (2H, 8H) bf16 block-diag

        def cell(gd, c):
            # per-direction gate layout: [i | f | o] (sigmoid slab) | [g] (tanh)
            s = jax.nn.sigmoid(gd[:, 0:3 * H])
            gg = jnp.tanh(gd[:, 3 * H:4 * H])
            c_new = s[:, H:2 * H] * c + s[:, 0:H] * gg
            h_new = s[:, 2 * H:3 * H] * jnp.tanh(c_new)
            return h_new, c_new

        h = jnp.zeros((B, 2 * H), jnp.float32)            # [h_fwd | h_bwd]
        c_f = jnp.zeros((B, H), jnp.float32)
        c_b = jnp.zeros((B, H), jnp.float32)

        # fully static unrolled time loop (T is small); both directions share
        # one block-diagonal recurrent matmul per step.
        for t in range(T):
            tb = T - 1 - t
            # forward gates from time t, backward gates from time T-1-t
            g_in = jnp.concatenate([gx[:, t, 0:G], gx[:, tb, G:2 * G]], axis=-1)
            g = g_in + jnp.dot(h.astype(jnp.bfloat16), whh,
                               preferred_element_type=jnp.float32)
            h_f, c_f = cell(g[:, 0:G], c_f)
            h_b, c_b = cell(g[:, G:2 * G], c_b)
            h = jnp.concatenate([h_f, h_b], axis=-1)
            # batch-first output written directly (no wrapper concat/transpose)
            y_ref[:, t:t + 1, 0:H] = h_f.reshape(B, 1, H)
            y_ref[:, tb:tb + 1, H:2 * H] = h_b.reshape(B, 1, H)

    bilstm(xa_ref, wih_a_ref, whh_a_ref, b_a_ref, ya_ref)
    bilstm(xv_ref, wih_v_ref, whh_v_ref, b_v_ref, yv_ref)


# ----------------------------------------------------------------------------
# RNNEncoder.forward — single pallas_call, no surrounding layout ops
# ----------------------------------------------------------------------------
@jax.jit
def rnn_encoder_forward(audio_feature, visual_feature, audio_params, visual_params):
    B, T, _ = audio_feature.shape
    H = audio_params["whh"].shape[0] // 2

    kern = functools.partial(rnn_encoder_kernel, T=T, B=B, H=H)

    def vmem():
        return pl.BlockSpec(memory_space=pltpu.MemorySpace.VMEM)

    audio_out, video_out = pl.pallas_call(
        kern,
        out_shape=(jax.ShapeDtypeStruct((B, T, 2 * H), jnp.float32),
                   jax.ShapeDtypeStruct((B, T, 2 * H), jnp.float32)),
        in_specs=[vmem() for _ in range(8)],
        out_specs=(vmem(), vmem()),
    )(audio_feature, visual_feature,
      audio_params["wih"], audio_params["whh"], audio_params["b"],
      visual_params["wih"], visual_params["whh"], visual_params["b"])
    return audio_out, video_out


# ----------------------------------------------------------------------------
# Parameter prep: PyTorch nn.LSTM layout -> fused kernel layout
# ----------------------------------------------------------------------------
def _permute_gates(w):
    """Rows (4H, ...) in torch gate order (i, f, g, o) -> (i, f, o, g)."""
    i, f, g, o = jnp.split(w, 4, axis=0)
    return jnp.concatenate([i, f, o, g], axis=0)


def fuse_bilstm_params(raw):
    """torch-layout per-direction params -> fused kernel layout.

    torch: W_ih (4H, D), W_hh (4H, H), b_* (4H,), gate row order (i, f, g, o).
    kernel: wih (D, 8H) bf16, whh (2H, 8H) bf16 block-diagonal, b (1, 8H) f32,
            columns = [fwd (i,f,o,g) | bwd (i,f,o,g)], biases pre-summed.
    """
    H = raw["whh_f"].shape[1]

    def prep(wih, whh, bih, bhh):
        wih = _permute_gates(wih).T                        # (D, 4H)
        whh = _permute_gates(whh).T                        # (H, 4H)
        b = _permute_gates((bih + bhh)[:, None]).T         # (1, 4H)
        return wih, whh, b

    wih_f, whh_f, b_f = prep(raw["wih_f"], raw["whh_f"], raw["bih_f"], raw["bhh_f"])
    wih_b, whh_b, b_b = prep(raw["wih_b"], raw["whh_b"], raw["bih_b"], raw["bhh_b"])

    wih = jnp.concatenate([wih_f, wih_b], axis=1)          # (D, 8H)
    zeros = jnp.zeros((H, 4 * H), jnp.float32)
    whh = jnp.concatenate(
        [jnp.concatenate([whh_f, zeros], axis=1),
         jnp.concatenate([zeros, whh_b], axis=1)], axis=0)  # (2H, 8H) block-diag
    b = jnp.concatenate([b_f, b_b], axis=1)                # (1, 8H)

    return {"wih": wih.astype(jnp.bfloat16),
            "whh": whh.astype(jnp.bfloat16),
            "b": b}


def init_bilstm_params(key, input_dim, hidden):
    """PyTorch LSTM default init U(-1/sqrt(H), 1/sqrt(H)), torch layout + fused."""
    bound = 1.0 / math.sqrt(hidden)
    ks = jax.random.split(key, 8)

    def u(k_, shape):
        return jax.random.uniform(k_, shape, jnp.float32, -bound, bound)

    raw = {
        "wih_f": u(ks[0], (4 * hidden, input_dim)),
        "whh_f": u(ks[1], (4 * hidden, hidden)),
        "bih_f": u(ks[2], (4 * hidden,)),
        "bhh_f": u(ks[3], (4 * hidden,)),
        "wih_b": u(ks[4], (4 * hidden, input_dim)),
        "whh_b": u(ks[5], (4 * hidden, hidden)),
        "bih_b": u(ks[6], (4 * hidden,)),
        "bhh_b": u(ks[7], (4 * hidden,)),
    }
    return {"raw": raw, "fused": fuse_bilstm_params(raw)}


# ----------------------------------------------------------------------------
# Pure-JAX f32 reference (PyTorch nn.LSTM semantics) for validation
# ----------------------------------------------------------------------------
def _lstm_ref(x, wih, whh, bih, bhh, reverse):
    Hh = whh.shape[1]
    seq = x[:, ::-1, :] if reverse else x

    def step(carry, x_t):
        h, c = carry
        g = x_t @ wih.T + h @ whh.T + bih + bhh            # torch order (i, f, g, o)
        i = jax.nn.sigmoid(g[:, 0:Hh])
        f = jax.nn.sigmoid(g[:, Hh:2 * Hh])
        gg = jnp.tanh(g[:, 2 * Hh:3 * Hh])
        o = jax.nn.sigmoid(g[:, 3 * Hh:4 * Hh])
        c = f * c + i * gg
        h = o * jnp.tanh(c)
        return (h, c), h

    Bb = x.shape[0]
    init = (jnp.zeros((Bb, Hh), jnp.float32), jnp.zeros((Bb, Hh), jnp.float32))
    _, ys = lax.scan(step, init, jnp.swapaxes(seq, 0, 1))
    ys = jnp.swapaxes(ys, 0, 1)
    return ys[:, ::-1, :] if reverse else ys


def bilstm_ref(x, raw):
    yf = _lstm_ref(x, raw["wih_f"], raw["whh_f"], raw["bih_f"], raw["bhh_f"], False)
    yb = _lstm_ref(x, raw["wih_b"], raw["whh_b"], raw["bih_b"], raw["bhh_b"], True)
    return jnp.concatenate([yf, yb], axis=-1)


# ----------------------------------------------------------------------------
if __name__ == "__main__":
    # small shapes consistent with the module: batch=2, seq=8,
    # audio_dim=128, video_dim=256, d_model=32 (hidden=16 per direction)
    B, T = 2, 8
    AUDIO_DIM, VIDEO_DIM, D_MODEL = 128, 256, 32
    HIDDEN = D_MODEL // 2

    key = jax.random.PRNGKey(0)
    k_a, k_v, k_pa, k_pv = jax.random.split(key, 4)

    audio_feature = jax.random.normal(k_a, (B, T, AUDIO_DIM), jnp.float32)
    visual_feature = jax.random.normal(k_v, (B, T, VIDEO_DIM), jnp.float32)

    audio_p = init_bilstm_params(k_pa, AUDIO_DIM, HIDDEN)
    visual_p = init_bilstm_params(k_pv, VIDEO_DIM, HIDDEN)

    # TODO(synk): nn.LSTM dropout=0.2 is inter-layer only; with num_layers=1 it
    # is a no-op in PyTorch, so no dropout is applied here either.
    audio_out, video_out = rnn_encoder_forward(
        audio_feature, visual_feature, audio_p["fused"], visual_p["fused"])
    audio_out, video_out = jax.block_until_ready((audio_out, video_out))

    assert audio_out.shape == (B, T, D_MODEL), audio_out.shape
    assert video_out.shape == (B, T, D_MODEL), video_out.shape
    assert bool(jnp.all(jnp.isfinite(audio_out)))
    assert bool(jnp.all(jnp.isfinite(video_out)))

    # loose tolerance: kernel uses bf16 matmul operands (f32 accumulation),
    # reference is pure f32, drift compounds slightly over the recurrence.
    ref_a = bilstm_ref(audio_feature, audio_p["raw"])
    ref_v = bilstm_ref(visual_feature, visual_p["raw"])
    err_a = float(jnp.max(jnp.abs(audio_out - ref_a)))
    err_v = float(jnp.max(jnp.abs(video_out - ref_v)))
    assert err_a < 5e-2 and err_v < 5e-2, (err_a, err_v)

    print("KERNEL_OK")
</pallas_src>

<mosaic_0001>
module attributes {stable_mosaic.version = 11 : i64} {
  func.func @rnn_encoder_kernel(%arg0: memref<2x8x128xf32, #tpu.memory_space<vmem>>, %arg1: memref<2x8x256xf32, #tpu.memory_space<vmem>>, %arg2: memref<128x128xbf16, #tpu.memory_space<vmem>>, %arg3: memref<32x128xbf16, #tpu.memory_space<vmem>>, %arg4: memref<1x128xf32, #tpu.memory_space<vmem>>, %arg5: memref<256x128xbf16, #tpu.memory_space<vmem>>, %arg6: memref<32x128xbf16, #tpu.memory_space<vmem>>, %arg7: memref<1x128xf32, #tpu.memory_space<vmem>>, %arg8: memref<2x8x32xf32, #tpu.memory_space<vmem>>, %arg9: memref<2x8x32xf32, #tpu.memory_space<vmem>>) attributes {dimension_semantics = [], scalar_prefetch = 0 : i64, scratch_operands = 0 : i64, tpu.core_type = #tpu.core_type<tc>} {
    %c0 = arith.constant 0 : index
    %c0_0 = arith.constant 0 : index
    %c0_1 = arith.constant 0 : index
    %0 = vector.load %arg0[%c0, %c0_0, %c0_1] : memref<2x8x128xf32, #tpu.memory_space<vmem>>, vector<2x8x128xf32>
    %1 = vector.shape_cast %0 : vector<2x8x128xf32> to vector<16x128xf32>
    %2 = arith.truncf %1 : vector<16x128xf32> to vector<16x128xbf16>
    %c0_2 = arith.constant 0 : index
    %c0_3 = arith.constant 0 : index
    %3 = vector.load %arg2[%c0_2, %c0_3] : memref<128x128xbf16, #tpu.memory_space<vmem>>, vector<128x128xbf16>
    %cst = arith.constant dense<0.000000e+00> : vector<16x128xf32>
    %4 = tpu.matmul %2, %3, %cst {dimension_numbers = #tpu.dot_dimension_numbers<[1], [0], [0], [1], [0, 0, 1, 1], [], []>} : vector<16x128xbf16>, vector<128x128xbf16>, vector<16x128xf32> -> vector<16x128xf32>
    %c0_4 = arith.constant 0 : index
    %c0_5 = arith.constant 0 : index
    %5 = vector.load %arg4[%c0_4, %c0_5] : memref<1x128xf32, #tpu.memory_space<vmem>>, vector<1x128xf32>
    %6 = vector.broadcast %5 : vector<1x128xf32> to vector<16x128xf32>
    %7 = arith.addf %4, %6 : vector<16x128xf32>
    %8 = vector.shape_cast %7 : vector<16x128xf32> to vector<2x8x128xf32>
    %c0_6 = arith.constant 0 : index
    %c0_7 = arith.constant 0 : index
    %9 = vector.load %arg3[%c0_6, %c0_7] : memref<32x128xbf16, #tpu.memory_space<vmem>>, vector<32x128xbf16>
    %cst_8 = arith.constant 0.000000e+00 : f32
    %10 = vector.broadcast %cst_8 : f32 to vector<2x32xf32>
    %cst_9 = arith.constant 0.000000e+00 : f32
    %11 = vector.broadcast %cst_9 : f32 to vector<2x16xf32>
    %cst_10 = arith.constant 0.000000e+00 : f32
    %12 = vector.broadcast %cst_10 : f32 to vector<2x16xf32>
    %13 = vector.extract_strided_slice %8 {offsets = [0, 0, 0], sizes = [2, 1, 64], strides = [1, 1, 1]} : vector<2x8x128xf32> to vector<2x1x64xf32>
    %14 = vector.shape_cast %13 : vector<2x1x64xf32> to vector<2x64xf32>
    %15 = vector.extract_strided_slice %8 {offsets = [0, 7, 64], sizes = [2, 1, 64], strides = [1, 1, 1]} : vector<2x8x128xf32> to vector<2x1x64xf32>
    %16 = vector.shape_cast %15 : vector<2x1x64xf32> to vector<2x64xf32>
    %17 = tpu.concatenate %14, %16 in 1 : vector<2x64xf32>, vector<2x64xf32> -> vector<2x128xf32>
    %18 = arith.truncf %10 : vector<2x32xf32> to vector<2x32xbf16>
    %cst_11 = arith.constant dense<0.000000e+00> : vector<2x128xf32>
    %19 = tpu.matmul %18, %9, %cst_11 {dimension_numbers = #tpu.dot_dimension_numbers<[1], [0], [0], [1], [0, 0, 1, 1], [], []>} : vector<2x32xbf16>, vector<32x128xbf16>, vector<2x128xf32> -> vector<2x128xf32>
    %20 = arith.addf %17, %19 : vector<2x128xf32>
    %21 = vector.extract_strided_slice %20 {offsets = [0, 0], sizes = [2, 64], strides = [1, 1]} : vector<2x128xf32> to vector<2x64xf32>
    %22 = vector.extract_strided_slice %21 {offsets = [0, 0], sizes = [2, 48], strides = [1, 1]} : vector<2x64xf32> to vector<2x48xf32>
    %23 = arith.negf %22 : vector<2x48xf32>
    %24 = math.exp %23 : vector<2x48xf32>
    %cst_12 = arith.constant 1.000000e+00 : f32
    %25 = vector.broadcast %cst_12 : f32 to vector<2x48xf32>
    %26 = arith.addf %25, %24 : vector<2x48xf32>
    %27 = arith.divf %25, %26 : vector<2x48xf32>
    %28 = vector.extract_strided_slice %21 {offsets = [0, 48], sizes = [2, 16], strides = [1, 1]} : vector<2x64xf32> to vector<2x16xf32>
    %29 = math.tanh %28 : vector<2x16xf32>
    %30 = vector.extract_strided_slice %27 {offsets = [0, 16], sizes = [2, 16], strides = [1, 1]} : vector<2x48xf32> to vector<2x16xf32>
    %31 = arith.mulf %30, %11 : vector<2x16xf32>
    %32 = vector.extract_strided_slice %27 {offsets = [0, 0], sizes = [2, 16], strides = [1, 1]} : vector<2x48xf32> to vector<2x16xf32>
    %33 = arith.mulf %32, %29 : vector<2x16xf32>
    %34 = arith.addf %31, %33 : vector<2x16xf32>
    %35 = vector.extract_strided_slice %27 {offsets = [0, 32], sizes = [2, 16], strides = [1, 1]} : vector<2x48xf32> to vector<2x16xf32>
    %36 = math.tanh %34 : vector<2x16xf32>
    %37 = arith.mulf %35, %36 : vector<2x16xf32>
    %38 = vector.extract_strided_slice %20 {offsets = [0, 64], sizes = [2, 64], strides = [1, 1]} : vector<2x128xf32> to vector<2x64xf32>
    %39 = vector.extract_strided_slice %38 {offsets = [0, 0], sizes = [2, 48], strides = [1, 1]} : vector<2x64xf32> to vector<2x48xf32>
    %40 = arith.negf %39 : vector<2x48xf32>
    %41 = math.exp %40 : vector<2x48xf32>
    %cst_13 = arith.constant 1.000000e+00 : f32
    %42 = vector.broadcast %cst_13 : f32 to vector<2x48xf32>
    %43 = arith.addf %42, %41 : vector<2x48xf32>
    %44 = arith.divf %42, %43 : vector<2x48xf32>
    %45 = vector.extract_strided_slice %38 {offsets = [0, 48], sizes = [2, 16], strides = [1, 1]} : vector<2x64xf32> to vector<2x16xf32>
    %46 = math.tanh %45 : vector<2x16xf32>
    %47 = vector.extract_strided_slice %44 {offsets = [0, 16], sizes = [2, 16], strides = [1, 1]} : vector<2x48xf32> to vector<2x16xf32>
    %48 = arith.mulf %47, %12 : vector<2x16xf32>
    %49 = vector.extract_strided_slice %44 {offsets = [0, 0], sizes = [2, 16], strides = [1, 1]} : vector<2x48xf32> to vector<2x16xf32>
    %50 = arith.mulf %49, %46 : vector<2x16xf32>
    %51 = arith.addf %48, %50 : vector<2x16xf32>
    %52 = vector.extract_strided_slice %44 {offsets = [0, 32], sizes = [2, 16], strides = [1, 1]} : vector<2x48xf32> to vector<2x16xf32>
    %53 = math.tanh %51 : vector<2x16xf32>
    %54 = arith.mulf %52, %53 : vector<2x16xf32>
    %55 = tpu.concatenate %37, %54 in 1 : vector<2x16xf32>, vector<2x16xf32> -> vector<2x32xf32>
    %56 = vector.shape_cast %37 : vector<2x16xf32> to vector<2x1x16xf32>
    %c0_14 = arith.constant 0 : index
    %c0_15 = arith.constant 0 : index
    %c0_16 = arith.constant 0 : index
    %57 = vector.load %arg8[%c0_14, %c0_15, %c0_16] : memref<2x8x32xf32, #tpu.memory_space<vmem>>, vector<2x1x16xf32>
    tpu.vector_store %arg8[%c0_14, %c0_15, %c0_16], %56 {strides = array<i32>} : memref<2x8x32xf32, #tpu.memory_space<vmem>>, vector<2x1x16xf32>,
    %58 = vector.shape_cast %54 : vector<2x16xf32> to vector<2x1x16xf32>
    %c0_17 = arith.constant 0 : index
    %c7 = arith.constant 7 : index
    %c16 = arith.constant 16 : index
    %59 = vector.load %arg8[%c0_17, %c7, %c16] : memref<2x8x32xf32, #tpu.memory_space<vmem>>, vector<2x1x16xf32>
    tpu.vector_store %arg8[%c0_17, %c7, %c16], %58 {strides = array<i32>} : memref<2x8x32xf32, #tpu.memory_space<vmem>>, vector<2x1x16xf32>,
    %60 = vector.extract_strided_slice %8 {offsets = [0, 1, 0], sizes = [2, 1, 64], strides = [1, 1, 1]} : vector<2x8x128xf32> to vector<2x1x64xf32>
    %61 = vector.shape_cast %60 : vector<2x1x64xf32> to vector<2x64xf32>
    %62 = vector.extract_strided_slice %8 {offsets = [0, 6, 64], sizes = [2, 1, 64], strides = [1, 1, 1]} : vector<2x8x128xf32> to vector<2x1x64xf32>
    %63 = vector.shape_cast %62 : vector<2x1x64xf32> to vector<2x64xf32>
    %64 = tpu.concatenate %61, %63 in 1 : vector<2x64xf32>, vector<2x64xf32> -> vector<2x128xf32>
    %65 = arith.truncf %55 : vector<2x32xf32> to vector<2x32xbf16>
    %cst_18 = arith.constant dense<0.000000e+00> : vector<2x128xf32>
    %66 = tpu.matmul %65, %9, %cst_18 {dimension_numbers = #tpu.dot_dimension_numbers<[1], [0], [0], [1], [0, 0, 1, 1], [], []>} : vector<2x32xbf16>, vector<32x128xbf16>, vector<2x128xf32> -> vector<2x128xf32>
    %67 = arith.addf %64, %66 : vector<2x128xf32>
    %68 = vector.extract_strided_slice %67 {offsets = [0, 0], sizes = [2, 64], strides = [1, 1]} : vector<2x128xf32> to vector<2x64xf32>
    %69 = vector.extract_strided_slice %68 {offsets = [0, 0], sizes = [2, 48], strides = [1, 1]} : vector<2x64xf32> to vector<2x48xf32>
    %70 = arith.negf %69 : vector<2x48xf32>
    %71 = math.exp %70 : vector<2x48xf32>
    %cst_19 = arith.constant 1.000000e+00 : f32
    %72 = vector.broadcast %cst_19 : f32 to vector<2x48xf32>
    %73 = arith.addf %72, %71 : vector<2x48xf32>
    %74 = arith.divf %72, %73 : vector<2x48xf32>
    %75 = vector.extract_strided_slice %68 {offsets = [0, 48], sizes = [2, 16], strides = [1, 1]} : vector<2x64xf32> to vector<2x16xf32>
    %76 = math.tanh %75 : vector<2x16xf32>
    %77 = vector.extract_strided_slice %74 {offsets = [0, 16], sizes = [2, 16], strides = [1, 1]} : vector<2x48xf32> to vector<2x16xf32>
    %78 = arith.mulf %77, %34 : vector<2x16xf32>
    %79 = vector.extract_strided_slice %74 {offsets = [0, 0], sizes = [2, 16], strides = [1, 1]} : vector<2x48xf32> to vector<2x16xf32>
    %80 = arith.mulf %79, %76 : vector<2x16xf32>
    %81 = arith.addf %78, %80 : vector<2x16xf32>
    %82 = vector.extract_strided_slice %74 {offsets = [0, 32], sizes = [2, 16], strides = [1, 1]} : vector<2x48xf32> to vector<2x16xf32>
    %83 = math.tanh %81 : vector<2x16xf32>
    %84 = arith.mulf %82, %83 : vector<2x16xf32>
    %85 = vector.extract_strided_slice %67 {offsets = [0, 64], sizes = [2, 64], strides = [1, 1]} : vector<2x128xf32> to vector<2x64xf32>
    %86 = vector.extract_strided_slice %85 {offsets = [0, 0], sizes = [2, 48], strides = [1, 1]} : vector<2x64xf32> to vector<2x48xf32>
    %87 = arith.negf %86 : vector<2x48xf32>
    %88 = math.exp %87 : vector<2x48xf32>
    %cst_20 = arith.constant 1.000000e+00 : f32
    %89 = vector.broadcast %cst_20 : f32 to vector<2x48xf32>
    %90 = arith.addf %89, %88 : vector<2x48xf32>
    %91 = arith.divf %89, %90 : vector<2x48xf32>
    %92 = vector.extract_strided_slice %85 {offsets = [0, 48], sizes = [2, 16], strides = [1, 1]} : vector<2x64xf32> to vector<2x16xf32>
    %93 = math.tanh %92 : vector<2x16xf32>
    %94 = vector.extract_strided_slice %91 {offsets = [0, 16], sizes = [2, 16], strides = [1, 1]} : vector<2x48xf32> to vector<2x16xf32>
    %95 = arith.mulf %94, %51 : vector<2x16xf32>
    %96 = vector.extract_strided_slice %91 {offsets = [0, 0], sizes = [2, 16], strides = [1, 1]} : vector<2x48xf32> to vector<2x16xf32>
    %97 = arith.mulf %96, %93 : vector<2x16xf32>
    %98 = arith.addf %95, %97 : vector<2x16xf32>
    %99 = vector.extract_strided_slice %91 {offsets = [0, 32], sizes = [2, 16], strides = [1, 1]} : vector<2x48xf32> to vector<2x16xf32>
    %100 = math.tanh %98 : vector<2x16xf32>
    %101 = arith.mulf %99, %100 : vector<2x16xf32>
    %102 = tpu.concatenate %84, %101 in 1 : vector<2x16xf32>, vector<2x16xf32> -> vector<2x32xf32>
    %103 = vector.shape_cast %84 : vector<2x16xf32> to vector<2x1x16xf32>
    %c0_21 = arith.constant 0 : index
    %c1 = arith.constant 1 : index
    %c0_22 = arith.constant 0 : index
    %104 = vector.load %arg8[%c0_21, %c1, %c0_22] : memref<2x8x32xf32, #tpu.memory_space<vmem>>, vector<2x1x16xf32>
    tpu.vector_store %arg8[%c0_21, %c1, %c0_22], %103 {strides = array<i32>} : memref<2x8x32xf32, #tpu.memory_space<vmem>>, vector<2x1x16xf32>,
    %105 = vector.shape_cast %101 : vector<2x16xf32> to vector<2x1x16xf32>
    %c0_23 = arith.constant 0 : index
    %c6 = arith.constant 6 : index
    %c16_24 = arith.constant 16 : index
    %106 = vector.load %arg8[%c0_23, %c6, %c16_24] : memref<2x8x32xf32, #tpu.memory_space<vmem>>, vector<2x1x16xf32>
    tpu.vector_store %arg8[%c0_23, %c6, %c16_24], %105 {strides = array<i32>} : memref<2x8x32xf32, #tpu.memory_space<vmem>>, vector<2x1x16xf32>,
    %107 = vector.extract_strided_slice %8 {offsets = [0, 2, 0], sizes = [2, 1, 64], strides = [1, 1, 1]} : vector<2x8x128xf32> to vector<2x1x64xf32>
    %108 = vector.shape_cast %107 : vector<2x1x64xf32> to vector<2x64xf32>
    %109 = vector.extract_strided_slice %8 {offsets = [0, 5, 64], sizes = [2, 1, 64], strides = [1, 1, 1]} : vector<2x8x128xf32> to vector<2x1x64xf32>
    %110 = vector.shape_cast %109 : vector<2x1x64xf32> to vector<2x64xf32>
    %111 = tpu.concatenate %108, %110 in 1 : vector<2x64xf32>, vector<2x64xf32> -> vector<2x128xf32>
    %112 = arith.truncf %102 : vector<2x32xf32> to vector<2x32xbf16>
    %cst_25 = arith.constant dense<0.000000e+00> : vector<2x128xf32>
    %113 = tpu.matmul %112, %9, %cst_25 {dimension_numbers = #tpu.dot_dimension_numbers<[1], [0], [0], [1], [0, 0, 1, 1], [], []>} : vector<2x32xbf16>, vector<32x128xbf16>, vector<2x128xf32> -> vector<2x128xf32>
    %114 = arith.addf %111, %113 : vector<2x128xf32>
    %115 = vector.extract_strided_slice %114 {offsets = [0, 0], sizes = [2, 64], strides = [1, 1]} : vector<2x128xf32> to vector<2x64xf32>
    %116 = vector.extract_strided_slice %115 {offsets = [0, 0], sizes = [2, 48], strides = [1, 1]} : vector<2x64xf32> to vector<2x48xf32>
    %117 = arith.negf %116 : vector<2x48xf32>
    %118 = math.exp %117 : vector<2x48xf32>
    %cst_26 = arith.constant 1.000000e+00 : f32
    %119 = vector.broadcast %cst_26 : f32 to vector<2x48xf32>
    %120 = arith.addf %119, %118 : vector<2x48xf32>
    %121 = arith.divf %119, %120 : vector<2x48xf32>
    %122 = vector.extract_strided_slice %115 {offsets = [0, 48], sizes = [2, 16], strides = [1, 1]} : vector<2x64xf32> to vector<2x16xf32>
    %123 = math.tanh %122 : vector<2x16xf32>
    %124 = vector.extract_strided_slice %121 {offsets = [0, 16], sizes = [2, 16], strides = [1, 1]} : vector<2x48xf32> to vector<2x16xf32>
    %125 = arith.mulf %124, %81 : vector<2x16xf32>
    %126 = vector.extract_strided_slice %121 {offsets = [0, 0], sizes = [2, 16], strides = [1, 1]} : vector<2x48xf32> to vector<2x16xf32>
    %127 = arith.mulf %126, %123 : vector<2x16xf32>
    %128 = arith.addf %125, %127 : vector<2x16xf32>
    %129 = vector.extract_strided_slice %121 {offsets = [0, 32], sizes = [2, 16], strides = [1, 1]} : vector<2x48xf32> to vector<2x16xf32>
    %130 = math.tanh %128 : vector<2x16xf32>
    %131 = arith.mulf %129, %130 : vector<2x16xf32>
    %132 = vector.extract_strided_slice %114 {offsets = [0, 64], sizes = [2, 64], strides = [1, 1]} : vector<2x128xf32> to vector<2x64xf32>
    %133 = vector.extract_strided_slice %132 {offsets = [0, 0], sizes = [2, 48], strides = [1, 1]} : vector<2x64xf32> to vector<2x48xf32>
    %134 = arith.negf %133 : vector<2x48xf32>
    %135 = math.exp %134 : vector<2x48xf32>
    %cst_27 = arith.constant 1.000000e+00 : f32
    %136 = vector.broadcast %cst_27 : f32 to vector<2x48xf32>
    %137 = arith.addf %136, %135 : vector<2x48xf32>
    %138 = arith.divf %136, %137 : vector<2x48xf32>
    %139 = vector.extract_strided_slice %132 {offsets = [0, 48], sizes = [2, 16], strides = [1, 1]} : vector<2x64xf32> to vector<2x16xf32>
    %140 = math.tanh %139 : vector<2x16xf32>
    %141 = vector.extract_strided_slice %138 {offsets = [0, 16], sizes = [2, 16], strides = [1, 1]} : vector<2x48xf32> to vector<2x16xf32>
    %142 = arith.mulf %141, %98 : vector<2x16xf32>
    %143 = vector.extract_strided_slice %138 {offsets = [0, 0], sizes = [2, 16], strides = [1, 1]} : vector<2x48xf32> to vector<2x16xf32>
    %144 = arith.mulf %143, %140 : vector<2x16xf32>
    %145 = arith.addf %142, %144 : vector<2x16xf32>
    %146 = vector.extract_strided_slice %138 {offsets = [0, 32], sizes = [2, 16], strides = [1, 1]} : vector<2x48xf32> to vector<2x16xf32>
    %147 = math.tanh %145 : vector<2x16xf32>
    %148 = arith.mulf %146, %147 : vector<2x16xf32>
    %149 = tpu.concatenate %131, %148 in 1 : vector<2x16xf32>, vector<2x16xf32> -> vector<2x32xf32>
    %150 = vector.shape_cast %131 : vector<2x16xf32> to vector<2x1x16xf32>
    %c0_28 = arith.constant 0 : index
    %c2 = arith.constant 2 : index
    %c0_29 = arith.constant 0 : index
    %151 = vector.load %arg8[%c0_28, %c2, %c0_29] : memref<2x8x32xf32, #tpu.memory_space<vmem>>, vector<2x1x16xf32>
    tpu.vector_store %arg8[%c0_28, %c2, %c0_29], %150 {strides = array<i32>} : memref<2x8x32xf32, #tpu.memory_space<vmem>>, vector<2x1x16xf32>,
    %152 = vector.shape_cast %148 : vector<2x16xf32> to vector<2x1x16xf32>
    %c0_30 = arith.constant 0 : index
    %c5 = arith.constant 5 : index
    %c16_31 = arith.constant 16 : index
    %153 = vector.load %arg8[%c0_30, %c5, %c16_31] : memref<2x8x32xf32, #tpu.memory_space<vmem>>, vector<2x1x16xf32>
    tpu.vector_store %arg8[%c0_30, %c5, %c16_31], %152 {strides = array<i32>} : memref<2x8x32xf32, #tpu.memory_space<vmem>>, vector<2x1x16xf32>,
    %154 = vector.extract_strided_slice %8 {offsets = [0, 3, 0], sizes = [2, 1, 64], strides = [1, 1, 1]} : vector<2x8x128xf32> to vector<2x1x64xf32>
    %155 = vector.shape_cast %154 : vector<2x1x64xf32> to vector<2x64xf32>
    %156 = vector.extract_strided_slice %8 {offsets = [0, 4, 64], sizes = [2, 1, 64], strides = [1, 1, 1]} : vector<2x8x128xf32> to vector<2x1x64xf32>
    %157 = vector.shape_cast %156 : vector<2x1x64xf32> to vector<2x64xf32>
    %158 = tpu.concatenate %155, %157 in 1 : vector<2x64xf32>, vector<2x64xf32> -> vector<2x128xf32>
    %159 = arith.truncf %149 : vector<2x32xf32> to vector<2x32xbf16>
    %cst_32 = arith.constant dense<0.000000e+00> : vector<2x128xf32>
    %160 = tpu.matmul %159, %9, %cst_32 {dimension_numbers = #tpu.dot_dimension_numbers<[1], [0], [0], [1], [0, 0, 1, 1], [], []>} : vector<2x32xbf16>, vector<32x128xbf16>, vector<2x128xf32> -> vector<2x128xf32>
    %161 = arith.addf %158, %160 : vector<2x128xf32>
    %162 = vector.extract_strided_slice %161 {offsets = [0, 0], sizes = [2, 64], strides = [1, 1]} : vector<2x128xf32> to vector<2x64xf32>
    %163 = vector.extract_strided_slice %162 {offsets = [0, 0], sizes = [2, 48], strides = [1, 1]} : vector<2x64xf32> to vector<2x48xf32>
    %164 = arith.negf %163 : vector<2x48xf32>
    %165 = math.exp %164 : vector<2x48xf32>
    %cst_33 = arith.constant 1.000000e+00 : f32
    %166 = vector.broadcast %cst_33 : f32 to vector<2x48xf32>
    %167 = arith.addf %166, %165 : vector<2x48xf32>
    %168 = arith.divf %166, %167 : vector<2x48xf32>
    %169 = vector.extract_strided_slice %162 {offsets = [0, 48], sizes = [2, 16], strides = [1, 1]} : vector<2x64xf32> to vector<2x16xf32>
    %170 = math.tanh %169 : vector<2x16xf32>
    %171 = vector.extract_strided_slice %168 {offsets = [0, 16], sizes = [2, 16], strides = [1, 1]} : vector<2x48xf32> to vector<2x16xf32>
    %172 = arith.mulf %171, %128 : vector<2x16xf32>
    %173 = vector.extract_strided_slice %168 {offsets = [0, 0], sizes = [2, 16], strides = [1, 1]} : vector<2x48xf32> to vector<2x16xf32>
    %174 = arith.mulf %173, %170 : vector<2x16xf32>
    %175 = arith.addf %172, %174 : vector<2x16xf32>
    %176 = vector.extract_strided_slice %168 {offsets = [0, 32], sizes = [2, 16], strides = [1, 1]} : vector<2x48xf32> to vector<2x16xf32>
    %177 = math.tanh %175 : vector<2x16xf32>
    %178 = arith.mulf %176, %177 : vector<2x16xf32>
    %179 = vector.extract_strided_slice %161 {offsets = [0, 64], sizes = [2, 64], strides = [1, 1]} : vector<2x128xf32> to vector<2x64xf32>
    %180 = vector.extract_strided_slice %179 {offsets = [0, 0], sizes = [2, 48], strides = [1, 1]} : vector<2x64xf32> to vector<2x48xf32>
    %181 = arith.negf %180 : vector<2x48xf32>
    %182 = math.exp %181 : vector<2x48xf32>
    %cst_34 = arith.constant 1.000000e+00 : f32
    %183 = vector.broadcast %cst_34 : f32 to vector<2x48xf32>
    %184 = arith.addf %183, %182 : vector<2x48xf32>
    %185 = arith.divf %183, %184 : vector<2x48xf32>
    %186 = vector.extract_strided_slice %179 {offsets = [0, 48], sizes = [2, 16], strides = [1, 1]} : vector<2x64xf32> to vector<2x16xf32>
    %187 = math.tanh %186 : vector<2x16xf32>
    %188 = vector.extract_strided_slice %185 {offsets = [0, 16], sizes = [2, 16], strides = [1, 1]} : vector<2x48xf32> to vector<2x16xf32>
    %189 = arith.mulf %188, %145 : vector<2x16xf32>
    %190 = vector.extract_strided_slice %185 {offsets = [0, 0], sizes = [2, 16], strides = [1, 1]} : vector<2x48xf32> to vector<2x16xf32>
    %191 = arith.mulf %190, %187 : vector<2x16xf32>
    %192 = arith.addf %189, %191 : vector<2x16xf32>
    %193 = vector.extract_strided_slice %185 {offsets = [0, 32], sizes = [2, 16], strides = [1, 1]} : vector<2x48xf32> to vector<2x16xf32>
    %194 = math.tanh %192 : vector<2x16xf32>
    %195 = arith.mulf %193, %194 : vector<2x16xf32>
    %196 = tpu.concatenate %178, %195 in 1 : vector<2x16xf32>, vector<2x16xf32> -> vector<2x32xf32>
    %197 = vector.shape_cast %178 : vector<2x16xf32> to vector<2x1x16xf32>
    %c0_35 = arith.constant 0 : index
    %c3 = arith.constant 3 : index
    %c0_36 = arith.constant 0 : index
    %198 = vector.load %arg8[%c0_35, %c3, %c0_36] : memref<2x8x32xf32, #tpu.memory_space<vmem>>, vector<2x1x16xf32>
    tpu.vector_store %arg8[%c0_35, %c3, %c0_36], %197 {strides = array<i32>} : memref<2x8x32xf32, #tpu.memory_space<vmem>>, vector<2x1x16xf32>,
    %199 = vector.shape_cast %195 : vector<2x16xf32> to vector<2x1x16xf32>
    %c0_37 = arith.constant 0 : index
    %c4 = arith.constant 4 : index
    %c16_38 = arith.constant 16 : index
    %200 = vector.load %arg8[%c0_37, %c4, %c16_38] : memref<2x8x32xf32, #tpu.memory_space<vmem>>, vector<2x1x16xf32>
    tpu.vector_store %arg8[%c0_37, %c4, %c16_38], %199 {strides = array<i32>} : memref<2x8x32xf32, #tpu.memory_space<vmem>>, vector<2x1x16xf32>,
    %201 = vector.extract_strided_slice %8 {offsets = [0, 4, 0], sizes = [2, 1, 64], strides = [1, 1, 1]} : vector<2x8x128xf32> to vector<2x1x64xf32>
    %202 = vector.shape_cast %201 : vector<2x1x64xf32> to vector<2x64xf32>
    %203 = vector.extract_strided_slice %8 {offsets = [0, 3, 64], sizes = [2, 1, 64], strides = [1, 1, 1]} : vector<2x8x128xf32> to vector<2x1x64xf32>
    %204 = vector.shape_cast %203 : vector<2x1x64xf32> to vector<2x64xf32>
    %205 = tpu.concatenate %202, %204 in 1 : vector<2x64xf32>, vector<2x64xf32> -> vector<2x128xf32>
    %206 = arith.truncf %196 : vector<2x32xf32> to vector<2x32xbf16>
    %cst_39 = arith.constant dense<0.000000e+00> : vector<2x128xf32>
    %207 = tpu.matmul %206, %9, %cst_39 {dimension_numbers = #tpu.dot_dimension_numbers<[1], [0], [0], [1], [0, 0, 1, 1], [], []>} : vector<2x32xbf16>, vector<32x128xbf16>, vector<2x128xf32> -> vector<2x128xf32>
    %208 = arith.addf %205, %207 : vector<2x128xf32>
    %209 = vector.extract_strided_slice %208 {offsets = [0, 0], sizes = [2, 64], strides = [1, 1]} : vector<2x128xf32> to vector<2x64xf32>
    %210 = vector.extract_strided_slice %209 {offsets = [0, 0], sizes = [2, 48], strides = [1, 1]} : vector<2x64xf32> to vector<2x48xf32>
    %211 = arith.negf %210 : vector<2x48xf32>
    %212 = math.exp %211 : vector<2x48xf32>
    %cst_40 = arith.constant 1.000000e+00 : f32
    %213 = vector.broadcast %cst_40 : f32 to vector<2x48xf32>
    %214 = arith.addf %213, %212 : vector<2x48xf32>
    %215 = arith.divf %213, %214 : vector<2x48xf32>
    %216 = vector.extract_strided_slice %209 {offsets = [0, 48], sizes = [2, 16], strides = [1, 1]} : vector<2x64xf32> to vector<2x16xf32>
    %217 = math.tanh %216 : vector<2x16xf32>
    %218 = vector.extract_strided_slice %215 {offsets = [0, 16], sizes = [2, 16], strides = [1, 1]} : vector<2x48xf32> to vector<2x16xf32>
    %219 = arith.mulf %218, %175 : vector<2x16xf32>
    %220 = vector.extract_strided_slice %215 {offsets = [0, 0], sizes = [2, 16], strides = [1, 1]} : vector<2x48xf32> to vector<2x16xf32>
    %221 = arith.mulf %220, %217 : vector<2x16xf32>
    %222 = arith.addf %219, %221 : vector<2x16xf32>
    %223 = vector.extract_strided_slice %215 {offsets = [0, 32], sizes = [2, 16], strides = [1, 1]} : vector<2x48xf32> to vector<2x16xf32>
    %224 = math.tanh %222 : vector<2x16xf32>
    %225 = arith.mulf %223, %224 : vector<2x16xf32>
    %226 = vector.extract_strided_slice %208 {offsets = [0, 64], sizes = [2, 64], strides = [1, 1]} : vector<2x128xf32> to vector<2x64xf32>
    %227 = vector.extract_strided_slice %226 {offsets = [0, 0], sizes = [2, 48], strides = [1, 1]} : vector<2x64xf32> to vector<2x48xf32>
    %228 = arith.negf %227 : vector<2x48xf32>
    %229 = math.exp %228 : vector<2x48xf32>
    %cst_41 = arith.constant 1.000000e+00 : f32
    %230 = vector.broadcast %cst_41 : f32 to vector<2x48xf32>
    %231 = arith.addf %230, %229 : vector<2x48xf32>
    %232 = arith.divf %230, %231 : vector<2x48xf32>
    %233 = vector.extract_strided_slice %226 {offsets = [0, 48], sizes = [2, 16], strides = [1, 1]} : vector<2x64xf32> to vector<2x16xf32>
    %234 = math.tanh %233 : vector<2x16xf32>
    %235 = vector.extract_strided_slice %232 {offsets = [0, 16], sizes = [2, 16], strides = [1, 1]} : vector<2x48xf32> to vector<2x16xf32>
    %236 = arith.mulf %235, %192 : vector<2x16xf32>
    %237 = vector.extract_strided_slice %232 {offsets = [0, 0], sizes = [2, 16], strides = [1, 1]} : vector<2x48xf32> to vector<2x16xf32>
    %238 = arith.mulf %237, %234 : vector<2x16xf32>
    %239 = arith.addf %236, %238 : vector<2x16xf32>
    %240 = vector.extract_strided_slice %232 {offsets = [0, 32], sizes = [2, 16], strides = [1, 1]} : vector<2x48xf32> to vector<2x16xf32>
    %241 = math.tanh %239 : vector<2x16xf32>
    %242 = arith.mulf %240, %241 : vector<2x16xf32>
    %243 = tpu.concatenate %225, %242 in 1 : vector<2x16xf32>, vector<2x16xf32> -> vector<2x32xf32>
    %244 = vector.shape_cast %225 : vector<2x16xf32> to vector<2x1x16xf32>
    %c0_42 = arith.constant 0 : index
    %c4_43 = arith.constant 4 : index
    %c0_44 = arith.constant 0 : index
    %245 = vector.load %arg8[%c0_42, %c4_43, %c0_44] : memref<2x8x32xf32, #tpu.memory_space<vmem>>, vector<2x1x16xf32>
    tpu.vector_store %arg8[%c0_42, %c4_43, %c0_44], %244 {strides = array<i32>} : memref<2x8x32xf32, #tpu.memory_space<vmem>>, vector<2x1x16xf32>,
    %246 = vector.shape_cast %242 : vector<2x16xf32> to vector<2x1x16xf32>
    %c0_45 = arith.constant 0 : index
    %c3_46 = arith.constant 3 : index
    %c16_47 = arith.constant 16 : index
    %247 = vector.load %arg8[%c0_45, %c3_46, %c16_47] : memref<2x8x32xf32, #tpu.memory_space<vmem>>, vector<2x1x16xf32>
    tpu.vector_store %arg8[%c0_45, %c3_46, %c16_47], %246 {strides = array<i32>} : memref<2x8x32xf32, #tpu.memory_space<vmem>>, vector<2x1x16xf32>,
    %248 = vector.extract_strided_slice %8 {offsets = [0, 5, 0], sizes = [2, 1, 64], strides = [1, 1, 1]} : vector<2x8x128xf32> to vector<2x1x64xf32>
    %249 = vector.shape_cast %248 : vector<2x1x64xf32> to vector<2x64xf32>
    %250 = vector.extract_strided_slice %8 {offsets = [0, 2, 64], sizes = [2, 1, 64], strides = [1, 1, 1]} : vector<2x8x128xf32> to vector<2x1x64xf32>
    %251 = vector.shape_cast %250 : vector<2x1x64xf32> to vector<2x64xf32>
    %252 = tpu.concatenate %249, %251 in 1 : vector<2x64xf32>, vector<2x64xf32> -> vector<2x128xf32>
    %253 = arith.truncf %243 : vector<2x32xf32> to vector<2x32xbf16>
    %cst_48 = arith.constant dense<0.000000e+00> : vector<2x128xf32>
    %254 = tpu.matmul %253, %9, %cst_48 {dimension_numbers = #tpu.dot_dimension_numbers<[1], [0], [0], [1], [0, 0, 1, 1], [], []>} : vector<2x32xbf16>, vector<32x128xbf16>, vector<2x128xf32> -> vector<2x128xf32>
    %255 = arith.addf %252, %254 : vector<2x128xf32>
    %256 = vector.extract_strided_slice %255 {offsets = [0, 0], sizes = [2, 64], strides = [1, 1]} : vector<2x128xf32> to vector<2x64xf32>
    %257 = vector.extract_strided_slice %256 {offsets = [0, 0], sizes = [2, 48], strides = [1, 1]} : vector<2x64xf32> to vector<2x48xf32>
    %258 = arith.negf %257 : vector<2x48xf32>
    %259 = math.exp %258 : vector<2x48xf32>
    %cst_49 = arith.constant 1.000000e+00 : f32
    %260 = vector.broadcast %cst_49 : f32 to vector<2x48xf32>
    %261 = arith.addf %260, %259 : vector<2x48xf32>
    %262 = arith.divf %260, %261 : vector<2x48xf32>
    %263 = vector.extract_strided_slice %256 {offsets = [0, 48], sizes = [2, 16], strides = [1, 1]} : vector<2x64xf32> to vector<2x16xf32>
    %264 = math.tanh %263 : vector<2x16xf32>
    %265 = vector.extract_strided_slice %262 {offsets = [0, 16], sizes = [2, 16], strides = [1, 1]} : vector<2x48xf32> to vector<2x16xf32>
    %266 = arith.mulf %265, %222 : vector<2x16xf32>
    %267 = vector.extract_strided_slice %262 {offsets = [0, 0], sizes = [2, 16], strides = [1, 1]} : vector<2x48xf32> to vector<2x16xf32>
    %268 = arith.mulf %267, %264 : vector<2x16xf32>
    %269 = arith.addf %266, %268 : vector<2x16xf32>
    %270 = vector.extract_strided_slice %262 {offsets = [0, 32], sizes = [2, 16], strides = [1, 1]} : vector<2x48xf32> to vector<2x16xf32>
    %271 = math.tanh %269 : vector<2x16xf32>
    %272 = arith.mulf %270, %271 : vector<2x16xf32>
    %273 = vector.extract_strided_slice %255 {offsets = [0, 64], sizes = [2, 64], strides = [1, 1]} : vector<2x128xf32> to vector<2x64xf32>
    %274 = vector.extract_strided_slice %273 {offsets = [0, 0], sizes = [2, 48], strides = [1, 1]} : vector<2x64xf32> to vector<2x48xf32>
    %275 = arith.negf %274 : vector<2x48xf32>
    %276 = math.exp %275 : vector<2x48xf32>
    %cst_50 = arith.constant 1.000000e+00 : f32
    %277 = vector.broadcast %cst_50 : f32 to vector<2x48xf32>
    %278 = arith.addf %277, %276 : vector<2x48xf32>
    %279 = arith.divf %277, %278 : vector<2x48xf32>
    %280 = vector.extract_strided_slice %273 {offsets = [0, 48], sizes = [2, 16], strides = [1, 1]} : vector<2x64xf32> to vector<2x16xf32>
    %281 = math.tanh %280 : vector<2x16xf32>
    %282 = vector.extract_strided_slice %279 {offsets = [0, 16], sizes = [2, 16], strides = [1, 1]} : vector<2x48xf32> to vector<2x16xf32>
    %283 = arith.mulf %282, %239 : vector<2x16xf32>
    %284 = vector.extract_strided_slice %279 {offsets = [0, 0], sizes = [2, 16], strides = [1, 1]} : vector<2x48xf32> to vector<2x16xf32>
    %285 = arith.mulf %284, %281 : vector<2x16xf32>
    %286 = arith.addf %283, %285 : vector<2x16xf32>
    %287 = vector.extract_strided_slice %279 {offsets = [0, 32], sizes = [2, 16], strides = [1, 1]} : vector<2x48xf32> to vector<2x16xf32>
    %288 = math.tanh %286 : vector<2x16xf32>
    %289 = arith.mulf %287, %288 : vector<2x16xf32>
    %290 = tpu.concatenate %272, %289 in 1 : vector<2x16xf32>, vector<2x16xf32> -> vector<2x32xf32>
    %291 = vector.shape_cast %272 : vector<2x16xf32> to vector<2x1x16xf32>
    %c0_51 = arith.constant 0 : index
    %c5_52 = arith.constant 5 : index
    %c0_53 = arith.constant 0 : index
    %292 = vector.load %arg8[%c0_51, %c5_52, %c0_53] : memref<2x8x32xf32, #tpu.memory_space<vmem>>, vector<2x1x16xf32>
    tpu.vector_store %arg8[%c0_51, %c5_52, %c0_53], %291 {strides = array<i32>} : memref<2x8x32xf32, #tpu.memory_space<vmem>>, vector<2x1x16xf32>,
    %293 = vector.shape_cast %289 : vector<2x16xf32> to vector<2x1x16xf32>
    %c0_54 = arith.constant 0 : index
    %c2_55 = arith.constant 2 : index
    %c16_56 = arith.constant 16 : index
    %294 = vector.load %arg8[%c0_54, %c2_55, %c16_56] : memref<2x8x32xf32, #tpu.memory_space<vmem>>, vector<2x1x16xf32>
    tpu.vector_store %arg8[%c0_54, %c2_55, %c16_56], %293 {strides = array<i32>} : memref<2x8x32xf32, #tpu.memory_space<vmem>>, vector<2x1x16xf32>,
    %295 = vector.extract_strided_slice %8 {offsets = [0, 6, 0], sizes = [2, 1, 64], strides = [1, 1, 1]} : vector<2x8x128xf32> to vector<2x1x64xf32>
    %296 = vector.shape_cast %295 : vector<2x1x64xf32> to vector<2x64xf32>
    %297 = vector.extract_strided_slice %8 {offsets = [0, 1, 64], sizes = [2, 1, 64], strides = [1, 1, 1]} : vector<2x8x128xf32> to vector<2x1x64xf32>
    %298 = vector.shape_cast %297 : vector<2x1x64xf32> to vector<2x64xf32>
    %299 = tpu.concatenate %296, %298 in 1 : vector<2x64xf32>, vector<2x64xf32> -> vector<2x128xf32>
    %300 = arith.truncf %290 : vector<2x32xf32> to vector<2x32xbf16>
    %cst_57 = arith.constant dense<0.000000e+00> : vector<2x128xf32>
    %301 = tpu.matmul %300, %9, %cst_57 {dimension_numbers = #tpu.dot_dimension_numbers<[1], [0], [0], [1], [0, 0, 1, 1], [], []>} : vector<2x32xbf16>, vector<32x128xbf16>, vector<2x128xf32> -> vector<2x128xf32>
    %302 = arith.addf %299, %301 : vector<2x128xf32>
    %303 = vector.extract_strided_slice %302 {offsets = [0, 0], sizes = [2, 64], strides = [1, 1]} : vector<2x128xf32> to vector<2x64xf32>
    %304 = vector.extract_strided_slice %303 {offsets = [0, 0], sizes = [2, 48], strides = [1, 1]} : vector<2x64xf32> to vector<2x48xf32>
    %305 = arith.negf %304 : vector<2x48xf32>
    %306 = math.exp %305 : vector<2x48xf32>
    %cst_58 = arith.constant 1.000000e+00 : f32
    %307 = vector.broadcast %cst_58 : f32 to vector<2x48xf32>
    %308 = arith.addf %307, %306 : vector<2x48xf32>
    %309 = arith.divf %307, %308 : vector<2x48xf32>
    %310 = vector.extract_strided_slice %303 {offsets = [0, 48], sizes = [2, 16], strides = [1, 1]} : vector<2x64xf32> to vector<2x16xf32>
    %311 = math.tanh %310 : vector<2x16xf32>
    %312 = vector.extract_strided_slice %309 {offsets = [0, 16], sizes = [2, 16], strides = [1, 1]} : vector<2x48xf32> to vector<2x16xf32>
    %313 = arith.mulf %312, %269 : vector<2x16xf32>
    %314 = vector.extract_strided_slice %309 {offsets = [0, 0], sizes = [2, 16], strides = [1, 1]} : vector<2x48xf32> to vector<2x16xf32>
    %315 = arith.mulf %314, %311 : vector<2x16xf32>
    %316 = arith.addf %313, %315 : vector<2x16xf32>
    %317 = vector.extract_strided_slice %309 {offsets = [0, 32], sizes = [2, 16], strides = [1, 1]} : vector<2x48xf32> to vector<2x16xf32>
    %318 = math.tanh %316 : vector<2x16xf32>
    %319 = arith.mulf %317, %318 : vector<2x16xf32>
    %320 = vector.extract_strided_slice %302 {offsets = [0, 64], sizes = [2, 64], strides = [1, 1]} : vector<2x128xf32> to vector<2x64xf32>
    %321 = vector.extract_strided_slice %320 {offsets = [0, 0], sizes = [2, 48], strides = [1, 1]} : vector<2x64xf32> to vector<2x48xf32>
    %322 = arith.negf %321 : vector<2x48xf32>
    %323 = math.exp %322 : vector<2x48xf32>
    %cst_59 = arith.constant 1.000000e+00 : f32
    %324 = vector.broadcast %cst_59 : f32 to vector<2x48xf32>
    %325 = arith.addf %324, %323 : vector<2x48xf32>
    %326 = arith.divf %324, %325 : vector<2x48xf32>
    %327 = vector.extract_strided_slice %320 {offsets = [0, 48], sizes = [2, 16], strides = [1, 1]} : vector<2x64xf32> to vector<2x16xf32>
    %328 = math.tanh %327 : vector<2x16xf32>
    %329 = vector.extract_strided_slice %326 {offsets = [0, 16], sizes = [2, 16], strides = [1, 1]} : vector<2x48xf32> to vector<2x16xf32>
    %330 = arith.mulf %329, %286 : vector<2x16xf32>
    %331 = vector.extract_strided_slice %326 {offsets = [0, 0], sizes = [2, 16], strides = [1, 1]} : vector<2x48xf32> to vector<2x16xf32>
    %332 = arith.mulf %331, %328 : vector<2x16xf32>
    %333 = arith.addf %330, %332 : vector<2x16xf32>
    %334 = vector.extract_strided_slice %326 {offsets = [0, 32], sizes = [2, 16], strides = [1, 1]} : vector<2x48xf32> to vector<2x16xf32>
    %335 = math.tanh %333 : vector<2x16xf32>
    %336 = arith.mulf %334, %335 : vector<2x16xf32>
    %337 = tpu.concatenate %319, %336 in 1 : vector<2x16xf32>, vector<2x16xf32> -> vector<2x32xf32>
    %338 = vector.shape_cast %319 : vector<2x16xf32> to vector<2x1x16xf32>
    %c0_60 = arith.constant 0 : index
    %c6_61 = arith.constant 6 : index
    %c0_62 = arith.constant 0 : index
    %339 = vector.load %arg8[%c0_60, %c6_61, %c0_62] : memref<2x8x32xf32, #tpu.memory_space<vmem>>, vector<2x1x16xf32>
    tpu.vector_store %arg8[%c0_60, %c6_61, %c0_62], %338 {strides = array<i32>} : memref<2x8x32xf32, #tpu.memory_space<vmem>>, vector<2x1x16xf32>,
    %340 = vector.shape_cast %336 : vector<2x16xf32> to vector<2x1x16xf32>
    %c0_63 = arith.constant 0 : index
    %c1_64 = arith.constant 1 : index
    %c16_65 = arith.constant 16 : index
    %341 = vector.load %arg8[%c0_63, %c1_64, %c16_65] : memref<2x8x32xf32, #tpu.memory_space<vmem>>, vector<2x1x16xf32>
    tpu.vector_store %arg8[%c0_63, %c1_64, %c16_65], %340 {strides = array<i32>} : memref<2x8x32xf32, #tpu.memory_space<vmem>>, vector<2x1x16xf32>,
    %342 = vector.extract_strided_slice %8 {offsets = [0, 7, 0], sizes = [2, 1, 64], strides = [1, 1, 1]} : vector<2x8x128xf32> to vector<2x1x64xf32>
    %343 = vector.shape_cast %342 : vector<2x1x64xf32> to vector<2x64xf32>
    %344 = vector.extract_strided_slice %8 {offsets = [0, 0, 64], sizes = [2, 1, 64], strides = [1, 1, 1]} : vector<2x8x128xf32> to vector<2x1x64xf32>
    %345 = vector.shape_cast %344 : vector<2x1x64xf32> to vector<2x64xf32>
    %346 = tpu.concatenate %343, %345 in 1 : vector<2x64xf32>, vector<2x64xf32> -> vector<2x128xf32>
    %347 = arith.truncf %337 : vector<2x32xf32> to vector<2x32xbf16>
    %cst_66 = arith.constant dense<0.000000e+00> : vector<2x128xf32>
    %348 = tpu.matmul %347, %9, %cst_66 {dimension_numbers = #tpu.dot_dimension_numbers<[1], [0], [0], [1], [0, 0, 1, 1], [], []>} : vector<2x32xbf16>, vector<32x128xbf16>, vector<2x128xf32> -> vector<2x128xf32>
    %349 = arith.addf %346, %348 : vector<2x128xf32>
    %350 = vector.extract_strided_slice %349 {offsets = [0, 0], sizes = [2, 64], strides = [1, 1]} : vector<2x128xf32> to vector<2x64xf32>
    %351 = vector.extract_strided_slice %350 {offsets = [0, 0], sizes = [2, 48], strides = [1, 1]} : vector<2x64xf32> to vector<2x48xf32>
    %352 = arith.negf %351 : vector<2x48xf32>
    %353 = math.exp %352 : vector<2x48xf32>
    %cst_67 = arith.constant 1.000000e+00 : f32
    %354 = vector.broadcast %cst_67 : f32 to vector<2x48xf32>
    %355 = arith.addf %354, %353 : vector<2x48xf32>
    %356 = arith.divf %354, %355 : vector<2x48xf32>
    %357 = vector.extract_strided_slice %350 {offsets = [0, 48], sizes = [2, 16], strides = [1, 1]} : vector<2x64xf32> to vector<2x16xf32>
    %358 = math.tanh %357 : vector<2x16xf32>
    %359 = vector.extract_strided_slice %356 {offsets = [0, 16], sizes = [2, 16], strides = [1, 1]} : vector<2x48xf32> to vector<2x16xf32>
    %360 = arith.mulf %359, %316 : vector<2x16xf32>
    %361 = vector.extract_strided_slice %356 {offsets = [0, 0], sizes = [2, 16], strides = [1, 1]} : vector<2x48xf32> to vector<2x16xf32>
    %362 = arith.mulf %361, %358 : vector<2x16xf32>
    %363 = arith.addf %360, %362 : vector<2x16xf32>
    %364 = vector.extract_strided_slice %356 {offsets = [0, 32], sizes = [2, 16], strides = [1, 1]} : vector<2x48xf32> to vector<2x16xf32>
    %365 = math.tanh %363 : vector<2x16xf32>
    %366 = arith.mulf %364, %365 : vector<2x16xf32>
    %367 = vector.extract_strided_slice %349 {offsets = [0, 64], sizes = [2, 64], strides = [1, 1]} : vector<2x128xf32> to vector<2x64xf32>
    %368 = vector.extract_strided_slice %367 {offsets = [0, 0], sizes = [2, 48], strides = [1, 1]} : vector<2x64xf32> to vector<2x48xf32>
    %369 = arith.negf %368 : vector<2x48xf32>
    %370 = math.exp %369 : vector<2x48xf32>
    %cst_68 = arith.constant 1.000000e+00 : f32
    %371 = vector.broadcast %cst_68 : f32 to vector<2x48xf32>
    %372 = arith.addf %371, %370 : vector<2x48xf32>
    %373 = arith.divf %371, %372 : vector<2x48xf32>
    %374 = vector.extract_strided_slice %367 {offsets = [0, 48], sizes = [2, 16], strides = [1, 1]} : vector<2x64xf32> to vector<2x16xf32>
    %375 = math.tanh %374 : vector<2x16xf32>
    %376 = vector.extract_strided_slice %373 {offsets = [0, 16], sizes = [2, 16], strides = [1, 1]} : vector<2x48xf32> to vector<2x16xf32>
    %377 = arith.mulf %376, %333 : vector<2x16xf32>
    %378 = vector.extract_strided_slice %373 {offsets = [0, 0], sizes = [2, 16], strides = [1, 1]} : vector<2x48xf32> to vector<2x16xf32>
    %379 = arith.mulf %378, %375 : vector<2x16xf32>
    %380 = arith.addf %377, %379 : vector<2x16xf32>
    %381 = vector.extract_strided_slice %373 {offsets = [0, 32], sizes = [2, 16], strides = [1, 1]} : vector<2x48xf32> to vector<2x16xf32>
    %382 = math.tanh %380 : vector<2x16xf32>
    %383 = arith.mulf %381, %382 : vector<2x16xf32>
    %384 = vector.shape_cast %366 : vector<2x16xf32> to vector<2x1x16xf32>
    %c0_69 = arith.constant 0 : index
    %c7_70 = arith.constant 7 : index
    %c0_71 = arith.constant 0 : index
    %385 = vector.load %arg8[%c0_69, %c7_70, %c0_71] : memref<2x8x32xf32, #tpu.memory_space<vmem>>, vector<2x1x16xf32>
    tpu.vector_store %arg8[%c0_69, %c7_70, %c0_71], %384 {strides = array<i32>} : memref<2x8x32xf32, #tpu.memory_space<vmem>>, vector<2x1x16xf32>,
    %386 = vector.shape_cast %383 : vector<2x16xf32> to vector<2x1x16xf32>
    %c0_72 = arith.constant 0 : index
    %c0_73 = arith.constant 0 : index
    %c16_74 = arith.constant 16 : index
    %387 = vector.load %arg8[%c0_72, %c0_73, %c16_74] : memref<2x8x32xf32, #tpu.memory_space<vmem>>, vector<2x1x16xf32>
    tpu.vector_store %arg8[%c0_72, %c0_73, %c16_74], %386 {strides = array<i32>} : memref<2x8x32xf32, #tpu.memory_space<vmem>>, vector<2x1x16xf32>,
    %c0_75 = arith.constant 0 : index
    %c0_76 = arith.constant 0 : index
    %c0_77 = arith.constant 0 : index
    %388 = vector.load %arg1[%c0_75, %c0_76, %c0_77] : memref<2x8x256xf32, #tpu.memory_space<vmem>>, vector<2x8x256xf32>
    %389 = vector.shape_cast %388 : vector<2x8x256xf32> to vector<16x256xf32>
    %390 = arith.truncf %389 : vector<16x256xf32> to vector<16x256xbf16>
    %c0_78 = arith.constant 0 : index
    %c0_79 = arith.constant 0 : index
    %391 = vector.load %arg5[%c0_78, %c0_79] : memref<256x128xbf16, #tpu.memory_space<vmem>>, vector<256x128xbf16>
    %cst_80 = arith.constant dense<0.000000e+00> : vector<16x128xf32>
    %392 = tpu.matmul %390, %391, %cst_80 {dimension_numbers = #tpu.dot_dimension_numbers<[1], [0], [0], [1], [0, 0, 1, 1], [], []>} : vector<16x256xbf16>, vector<256x128xbf16>, vector<16x128xf32> -> vector<16x128xf32>
    %c0_81 = arith.constant 0 : index
    %c0_82 = arith.constant 0 : index
    %393 = vector.load %arg7[%c0_81, %c0_82] : memref<1x128xf32, #tpu.memory_space<vmem>>, vector<1x128xf32>
    %394 = vector.broadcast %393 : vector<1x128xf32> to vector<16x128xf32>
    %395 = arith.addf %392, %394 : vector<16x128xf32>
    %396 = vector.shape_cast %395 : vector<16x128xf32> to vector<2x8x128xf32>
    %c0_83 = arith.constant 0 : index
    %c0_84 = arith.constant 0 : index
    %397 = vector.load %arg6[%c0_83, %c0_84] : memref<32x128xbf16, #tpu.memory_space<vmem>>, vector<32x128xbf16>
    %cst_85 = arith.constant 0.000000e+00 : f32
    %398 = vector.broadcast %cst_85 : f32 to vector<2x32xf32>
    %cst_86 = arith.constant 0.000000e+00 : f32
    %399 = vector.broadcast %cst_86 : f32 to vector<2x16xf32>
    %cst_87 = arith.constant 0.000000e+00 : f32
    %400 = vector.broadcast %cst_87 : f32 to vector<2x16xf32>
    %401 = vector.extract_strided_slice %396 {offsets = [0, 0, 0], sizes = [2, 1, 64], strides = [1, 1, 1]} : vector<2x8x128xf32> to vector<2x1x64xf32>
    %402 = vector.shape_cast %401 : vector<2x1x64xf32> to vector<2x64xf32>
    %403 = vector.extract_strided_slice %396 {offsets = [0, 7, 64], sizes = [2, 1, 64], strides = [1, 1, 1]} : vector<2x8x128xf32> to vector<2x1x64xf32>
    %404 = vector.shape_cast %403 : vector<2x1x64xf32> to vector<2x64xf32>
    %405 = tpu.concatenate %402, %404 in 1 : vector<2x64xf32>, vector<2x64xf32> -> vector<2x128xf32>
    %406 = arith.truncf %398 : vector<2x32xf32> to vector<2x32xbf16>
    %cst_88 = arith.constant dense<0.000000e+00> : vector<2x128xf32>
    %407 = tpu.matmul %406, %397, %cst_88 {dimension_numbers = #tpu.dot_dimension_numbers<[1], [0], [0], [1], [0, 0, 1, 1], [], []>} : vector<2x32xbf16>, vector<32x128xbf16>, vector<2x128xf32> -> vector<2x128xf32>
    %408 = arith.addf %405, %407 : vector<2x128xf32>
    %409 = vector.extract_strided_slice %408 {offsets = [0, 0], sizes = [2, 64], strides = [1, 1]} : vector<2x128xf32> to vector<2x64xf32>
    %410 = vector.extract_strided_slice %409 {offsets = [0, 0], sizes = [2, 48], strides = [1, 1]} : vector<2x64xf32> to vector<2x48xf32>
    %411 = arith.negf %410 : vector<2x48xf32>
    %412 = math.exp %411 : vector<2x48xf32>
    %cst_89 = arith.constant 1.000000e+00 : f32
    %413 = vector.broadcast %cst_89 : f32 to vector<2x48xf32>
    %414 = arith.addf %413, %412 : vector<2x48xf32>
    %415 = arith.divf %413, %414 : vector<2x48xf32>
    %416 = vector.extract_strided_slice %409 {offsets = [0, 48], sizes = [2, 16], strides = [1, 1]} : vector<2x64xf32> to vector<2x16xf32>
    %417 = math.tanh %416 : vector<2x16xf32>
    %418 = vector.extract_strided_slice %415 {offsets = [0, 16], sizes = [2, 16], strides = [1, 1]} : vector<2x48xf32> to vector<2x16xf32>
    %419 = arith.mulf %418, %399 : vector<2x16xf32>
    %420 = vector.extract_strided_slice %415 {offsets = [0, 0], sizes = [2, 16], strides = [1, 1]} : vector<2x48xf32> to vector<2x16xf32>
    %421 = arith.mulf %420, %417 : vector<2x16xf32>
    %422 = arith.addf %419, %421 : vector<2x16xf32>
    %423 = vector.extract_strided_slice %415 {offsets = [0, 32], sizes = [2, 16], strides = [1, 1]} : vector<2x48xf32> to vector<2x16xf32>
    %424 = math.tanh %422 : vector<2x16xf32>
    %425 = arith.mulf %423, %424 : vector<2x16xf32>
    %426 = vector.extract_strided_slice %408 {offsets = [0, 64], sizes = [2, 64], strides = [1, 1]} : vector<2x128xf32> to vector<2x64xf32>
    %427 = vector.extract_strided_slice %426 {offsets = [0, 0], sizes = [2, 48], strides = [1, 1]} : vector<2x64xf32> to vector<2x48xf32>
    %428 = arith.negf %427 : vector<2x48xf32>
    %429 = math.exp %428 : vector<2x48xf32>
    %cst_90 = arith.constant 1.000000e+00 : f32
    %430 = vector.broadcast %cst_90 : f32 to vector<2x48xf32>
    %431 = arith.addf %430, %429 : vector<2x48xf32>
    %432 = arith.divf %430, %431 : vector<2x48xf32>
    %433 = vector.extract_strided_slice %426 {offsets = [0, 48], sizes = [2, 16], strides = [1, 1]} : vector<2x64xf32> to vector<2x16xf32>
    %434 = math.tanh %433 : vector<2x16xf32>
    %435 = vector.extract_strided_slice %432 {offsets = [0, 16], sizes = [2, 16], strides = [1, 1]} : vector<2x48xf32> to vector<2x16xf32>
    %436 = arith.mulf %435, %400 : vector<2x16xf32>
    %437 = vector.extract_strided_slice %432 {offsets = [0, 0], sizes = [2, 16], strides = [1, 1]} : vector<2x48xf32> to vector<2x16xf32>
    %438 = arith.mulf %437, %434 : vector<2x16xf32>
    %439 = arith.addf %436, %438 : vector<2x16xf32>
    %440 = vector.extract_strided_slice %432 {offsets = [0, 32], sizes = [2, 16], strides = [1, 1]} : vector<2x48xf32> to vector<2x16xf32>
    %441 = math.tanh %439 : vector<2x16xf32>
    %442 = arith.mulf %440, %441 : vector<2x16xf32>
    %443 = tpu.concatenate %425, %442 in 1 : vector<2x16xf32>, vector<2x16xf32> -> vector<2x32xf32>
    %444 = vector.shape_cast %425 : vector<2x16xf32> to vector<2x1x16xf32>
    %c0_91 = arith.constant 0 : index
    %c0_92 = arith.constant 0 : index
    %c0_93 = arith.constant 0 : index
    %445 = vector.load %arg9[%c0_91, %c0_92, %c0_93] : memref<2x8x32xf32, #tpu.memory_space<vmem>>, vector<2x1x16xf32>
    tpu.vector_store %arg9[%c0_91, %c0_92, %c0_93], %444 {strides = array<i32>} : memref<2x8x32xf32, #tpu.memory_space<vmem>>, vector<2x1x16xf32>,
    %446 = vector.shape_cast %442 : vector<2x16xf32> to vector<2x1x16xf32>
    %c0_94 = arith.constant 0 : index
    %c7_95 = arith.constant 7 : index
    %c16_96 = arith.constant 16 : index
    %447 = vector.load %arg9[%c0_94, %c7_95, %c16_96] : memref<2x8x32xf32, #tpu.memory_space<vmem>>, vector<2x1x16xf32>
    tpu.vector_store %arg9[%c0_94, %c7_95, %c16_96], %446 {strides = array<i32>} : memref<2x8x32xf32, #tpu.memory_space<vmem>>, vector<2x1x16xf32>,
    %448 = vector.extract_strided_slice %396 {offsets = [0, 1, 0], sizes = [2, 1, 64], strides = [1, 1, 1]} : vector<2x8x128xf32> to vector<2x1x64xf32>
    %449 = vector.shape_cast %448 : vector<2x1x64xf32> to vector<2x64xf32>
    %450 = vector.extract_strided_slice %396 {offsets = [0, 6, 64], sizes = [2, 1, 64], strides = [1, 1, 1]} : vector<2x8x128xf32> to vector<2x1x64xf32>
    %451 = vector.shape_cast %450 : vector<2x1x64xf32> to vector<2x64xf32>
    %452 = tpu.concatenate %449, %451 in 1 : vector<2x64xf32>, vector<2x64xf32> -> vector<2x128xf32>
    %453 = arith.truncf %443 : vector<2x32xf32> to vector<2x32xbf16>
    %cst_97 = arith.constant dense<0.000000e+00> : vector<2x128xf32>
    %454 = tpu.matmul %453, %397, %cst_97 {dimension_numbers = #tpu.dot_dimension_numbers<[1], [0], [0], [1], [0, 0, 1, 1], [], []>} : vector<2x32xbf16>, vector<32x128xbf16>, vector<2x128xf32> -> vector<2x128xf32>
    %455 = arith.addf %452, %454 : vector<2x128xf32>
    %456 = vector.extract_strided_slice %455 {offsets = [0, 0], sizes = [2, 64], strides = [1, 1]} : vector<2x128xf32> to vector<2x64xf32>
    %457 = vector.extract_strided_slice %456 {offsets = [0, 0], sizes = [2, 48], strides = [1, 1]} : vector<2x64xf32> to vector<2x48xf32>
    %458 = arith.negf %457 : vector<2x48xf32>
    %459 = math.exp %458 : vector<2x48xf32>
    %cst_98 = arith.constant 1.000000e+00 : f32
    %460 = vector.broadcast %cst_98 : f32 to vector<2x48xf32>
    %461 = arith.addf %460, %459 : vector<2x48xf32>
    %462 = arith.divf %460, %461 : vector<2x48xf32>
    %463 = vector.extract_strided_slice %456 {offsets = [0, 48], sizes = [2, 16], strides = [1, 1]} : vector<2x64xf32> to vector<2x16xf32>
    %464 = math.tanh %463 : vector<2x16xf32>
    %465 = vector.extract_strided_slice %462 {offsets = [0, 16], sizes = [2, 16], strides = [1, 1]} : vector<2x48xf32> to vector<2x16xf32>
    %466 = arith.mulf %465, %422 : vector<2x16xf32>
    %467 = vector.extract_strided_slice %462 {offsets = [0, 0], sizes = [2, 16], strides = [1, 1]} : vector<2x48xf32> to vector<2x16xf32>
    %468 = arith.mulf %467, %464 : vector<2x16xf32>
    %469 = arith.addf %466, %468 : vector<2x16xf32>
    %470 = vector.extract_strided_slice %462 {offsets = [0, 32], sizes = [2, 16], strides = [1, 1]} : vector<2x48xf32> to vector<2x16xf32>
    %471 = math.tanh %469 : vector<2x16xf32>
    %472 = arith.mulf %470, %471 : vector<2x16xf32>
    %473 = vector.extract_strided_slice %455 {offsets = [0, 64], sizes = [2, 64], strides = [1, 1]} : vector<2x128xf32> to vector<2x64xf32>
    %474 = vector.extract_strided_slice %473 {offsets = [0, 0], sizes = [2, 48], strides = [1, 1]} : vector<2x64xf32> to vector<2x48xf32>
    %475 = arith.negf %474 : vector<2x48xf32>
    %476 = math.exp %475 : vector<2x48xf32>
    %cst_99 = arith.constant 1.000000e+00 : f32
    %477 = vector.broadcast %cst_99 : f32 to vector<2x48xf32>
    %478 = arith.addf %477, %476 : vector<2x48xf32>
    %479 = arith.divf %477, %478 : vector<2x48xf32>
    %480 = vector.extract_strided_slice %473 {offsets = [0, 48], sizes = [2, 16], strides = [1, 1]} : vector<2x64xf32> to vector<2x16xf32>
    %481 = math.tanh %480 : vector<2x16xf32>
    %482 = vector.extract_strided_slice %479 {offsets = [0, 16], sizes = [2, 16], strides = [1, 1]} : vector<2x48xf32> to vector<2x16xf32>
    %483 = arith.mulf %482, %439 : vector<2x16xf32>
    %484 = vector.extract_strided_slice %479 {offsets = [0, 0], sizes = [2, 16], strides = [1, 1]} : vector<2x48xf32> to vector<2x16xf32>
    %485 = arith.mulf %484, %481 : vector<2x16xf32>
    %486 = arith.addf %483, %485 : vector<2x16xf32>
    %487 = vector.extract_strided_slice %479 {offsets = [0, 32], sizes = [2, 16], strides = [1, 1]} : vector<2x48xf32> to vector<2x16xf32>
    %488 = math.tanh %486 : vector<2x16xf32>
    %489 = arith.mulf %487, %488 : vector<2x16xf32>
    %490 = tpu.concatenate %472, %489 in 1 : vector<2x16xf32>, vector<2x16xf32> -> vector<2x32xf32>
    %491 = vector.shape_cast %472 : vector<2x16xf32> to vector<2x1x16xf32>
    %c0_100 = arith.constant 0 : index
    %c1_101 = arith.constant 1 : index
    %c0_102 = arith.constant 0 : index
    %492 = vector.load %arg9[%c0_100, %c1_101, %c0_102] : memref<2x8x32xf32, #tpu.memory_space<vmem>>, vector<2x1x16xf32>
    tpu.vector_store %arg9[%c0_100, %c1_101, %c0_102], %491 {strides = array<i32>} : memref<2x8x32xf32, #tpu.memory_space<vmem>>, vector<2x1x16xf32>,
    %493 = vector.shape_cast %489 : vector<2x16xf32> to vector<2x1x16xf32>
    %c0_103 = arith.constant 0 : index
    %c6_104 = arith.constant 6 : index
    %c16_105 = arith.constant 16 : index
    %494 = vector.load %arg9[%c0_103, %c6_104, %c16_105] : memref<2x8x32xf32, #tpu.memory_space<vmem>>, vector<2x1x16xf32>
    tpu.vector_store %arg9[%c0_103, %c6_104, %c16_105], %493 {strides = array<i32>} : memref<2x8x32xf32, #tpu.memory_space<vmem>>, vector<2x1x16xf32>,
    %495 = vector.extract_strided_slice %396 {offsets = [0, 2, 0], sizes = [2, 1, 64], strides = [1, 1, 1]} : vector<2x8x128xf32> to vector<2x1x64xf32>
    %496 = vector.shape_cast %495 : vector<2x1x64xf32> to vector<2x64xf32>
    %497 = vector.extract_strided_slice %396 {offsets = [0, 5, 64], sizes = [2, 1, 64], strides = [1, 1, 1]} : vector<2x8x128xf32> to vector<2x1x64xf32>
    %498 = vector.shape_cast %497 : vector<2x1x64xf32> to vector<2x64xf32>
    %499 = tpu.concatenate %496, %498 in 1 : vector<2x64xf32>, vector<2x64xf32> -> vector<2x128xf32>
    %500 = arith.truncf %490 : vector<2x32xf32> to vector<2x32xbf16>
    %cst_106 = arith.constant dense<0.000000e+00> : vector<2x128xf32>
    %501 = tpu.matmul %500, %397, %cst_106 {dimension_numbers = #tpu.dot_dimension_numbers<[1], [0], [0], [1], [0, 0, 1, 1], [], []>} : vector<2x32xbf16>, vector<32x128xbf16>, vector<2x128xf32> -> vector<2x128xf32>
    %502 = arith.addf %499, %501 : vector<2x128xf32>
    %503 = vector.extract_strided_slice %502 {offsets = [0, 0], sizes = [2, 64], strides = [1, 1]} : vector<2x128xf32> to vector<2x64xf32>
    %504 = vector.extract_strided_slice %503 {offsets = [0, 0], sizes = [2, 48], strides = [1, 1]} : vector<2x64xf32> to vector<2x48xf32>
    %505 = arith.negf %504 : vector<2x48xf32>
    %506 = math.exp %505 : vector<2x48xf32>
    %cst_107 = arith.constant 1.000000e+00 : f32
    %507 = vector.broadcast %cst_107 : f32 to vector<2x48xf32>
    %508 = arith.addf %507, %506 : vector<2x48xf32>
    %509 = arith.divf %507, %508 : vector<2x48xf32>
    %510 = vector.extract_strided_slice %503 {offsets = [0, 48], sizes = [2, 16], strides = [1, 1]} : vector<2x64xf32> to vector<2x16xf32>
    %511 = math.tanh %510 : vector<2x16xf32>
    %512 = vector.extract_strided_slice %509 {offsets = [0, 16], sizes = [2, 16], strides = [1, 1]} : vector<2x48xf32> to vector<2x16xf32>
    %513 = arith.mulf %512, %469 : vector<2x16xf32>
    %514 = vector.extract_strided_slice %509 {offsets = [0, 0], sizes = [2, 16], strides = [1, 1]} : vector<2x48xf32> to vector<2x16xf32>
    %515 = arith.mulf %514, %511 : vector<2x16xf32>
    %516 = arith.addf %513, %515 : vector<2x16xf32>
    %517 = vector.extract_strided_slice %509 {offsets = [0, 32], sizes = [2, 16], strides = [1, 1]} : vector<2x48xf32> to vector<2x16xf32>
    %518 = math.tanh %516 : vector<2x16xf32>
    %519 = arith.mulf %517, %518 : vector<2x16xf32>
    %520 = vector.extract_strided_slice %502 {offsets = [0, 64], sizes = [2, 64], strides = [1, 1]} : vector<2x128xf32> to vector<2x64xf32>
    %521 = vector.extract_strided_slice %520 {offsets = [0, 0], sizes = [2, 48], strides = [1, 1]} : vector<2x64xf32> to vector<2x48xf32>
    %522 = arith.negf %521 : vector<2x48xf32>
    %523 = math.exp %522 : vector<2x48xf32>
    %cst_108 = arith.constant 1.000000e+00 : f32
    %524 = vector.broadcast %cst_108 : f32 to vector<2x48xf32>
    %525 = arith.addf %524, %523 : vector<2x48xf32>
    %526 = arith.divf %524, %525 : vector<2x48xf32>
    %527 = vector.extract_strided_slice %520 {offsets = [0, 48], sizes = [2, 16], strides = [1, 1]} : vector<2x64xf32> to vector<2x16xf32>
    %528 = math.tanh %527 : vector<2x16xf32>
    %529 = vector.extract_strided_slice %526 {offsets = [0, 16], sizes = [2, 16], strides = [1, 1]} : vector<2x48xf32> to vector<2x16xf32>
    %530 = arith.mulf %529, %486 : vector<2x16xf32>
    %531 = vector.extract_strided_slice %526 {offsets = [0, 0], sizes = [2, 16], strides = [1, 1]} : vector<2x48xf32> to vector<2x16xf32>
    %532 = arith.mulf %531, %528 : vector<2x16xf32>
    %533 = arith.addf %530, %532 : vector<2x16xf32>
    %534 = vector.extract_strided_slice %526 {offsets = [0, 32], sizes = [2, 16], strides = [1, 1]} : vector<2x48xf32> to vector<2x16xf32>
    %535 = math.tanh %533 : vector<2x16xf32>
    %536 = arith.mulf %534, %535 : vector<2x16xf32>
    %537 = tpu.concatenate %519, %536 in 1 : vector<2x16xf32>, vector<2x16xf32> -> vector<2x32xf32>
    %538 = vector.shape_cast %519 : vector<2x16xf32> to vector<2x1x16xf32>
    %c0_109 = arith.constant 0 : index
    %c2_110 = arith.constant 2 : index
    %c0_111 = arith.constant 0 : index
    %539 = vector.load %arg9[%c0_109, %c2_110, %c0_111] : memref<2x8x32xf32, #tpu.memory_space<vmem>>, vector<2x1x16xf32>
    tpu.vector_store %arg9[%c0_109, %c2_110, %c0_111], %538 {strides = array<i32>} : memref<2x8x32xf32, #tpu.memory_space<vmem>>, vector<2x1x16xf32>,
    %540 = vector.shape_cast %536 : vector<2x16xf32> to vector<2x1x16xf32>
    %c0_112 = arith.constant 0 : index
    %c5_113 = arith.constant 5 : index
    %c16_114 = arith.constant 16 : index
    %541 = vector.load %arg9[%c0_112, %c5_113, %c16_114] : memref<2x8x32xf32, #tpu.memory_space<vmem>>, vector<2x1x16xf32>
    tpu.vector_store %arg9[%c0_112, %c5_113, %c16_114], %540 {strides = array<i32>} : memref<2x8x32xf32, #tpu.memory_space<vmem>>, vector<2x1x16xf32>,
    %542 = vector.extract_strided_slice %396 {offsets = [0, 3, 0], sizes = [2, 1, 64], strides = [1, 1, 1]} : vector<2x8x128xf32> to vector<2x1x64xf32>
    %543 = vector.shape_cast %542 : vector<2x1x64xf32> to vector<2x64xf32>
    %544 = vector.extract_strided_slice %396 {offsets = [0, 4, 64], sizes = [2, 1, 64], strides = [1, 1, 1]} : vector<2x8x128xf32> to vector<2x1x64xf32>
    %545 = vector.shape_cast %544 : vector<2x1x64xf32> to vector<2x64xf32>
    %546 = tpu.concatenate %543, %545 in 1 : vector<2x64xf32>, vector<2x64xf32> -> vector<2x128xf32>
    %547 = arith.truncf %537 : vector<2x32xf32> to vector<2x32xbf16>
    %cst_115 = arith.constant dense<0.000000e+00> : vector<2x128xf32>
    %548 = tpu.matmul %547, %397, %cst_115 {dimension_numbers = #tpu.dot_dimension_numbers<[1], [0], [0], [1], [0, 0, 1, 1], [], []>} : vector<2x32xbf16>, vector<32x128xbf16>, vector<2x128xf32> -> vector<2x128xf32>
    %549 = arith.addf %546, %548 : vector<2x128xf32>
    %550 = vector.extract_strided_slice %549 {offsets = [0, 0], sizes = [2, 64], strides = [1, 1]} : vector<2x128xf32> to vector<2x64xf32>
    %551 = vector.extract_strided_slice %550 {offsets = [0, 0], sizes = [2, 48], strides = [1, 1]} : vector<2x64xf32> to vector<2x48xf32>
    %552 = arith.negf %551 : vector<2x48xf32>
    %553 = math.exp %552 : vector<2x48xf32>
    %cst_116 = arith.constant 1.000000e+00 : f32
    %554 = vector.broadcast %cst_116 : f32 to vector<2x48xf32>
    %555 = arith.addf %554, %553 : vector<2x48xf32>
    %556 = arith.divf %554, %555 : vector<2x48xf32>
    %557 = vector.extract_strided_slice %550 {offsets = [0, 48], sizes = [2, 16], strides = [1, 1]} : vector<2x64xf32> to vector<2x16xf32>
    %558 = math.tanh %557 : vector<2x16xf32>
    %559 = vector.extract_strided_slice %556 {offsets = [0, 16], sizes = [2, 16], strides = [1, 1]} : vector<2x48xf32> to vector<2x16xf32>
    %560 = arith.mulf %559, %516 : vector<2x16xf32>
    %561 = vector.extract_strided_slice %556 {offsets = [0, 0], sizes = [2, 16], strides = [1, 1]} : vector<2x48xf32> to vector<2x16xf32>
    %562 = arith.mulf %561, %558 : vector<2x16xf32>
    %563 = arith.addf %560, %562 : vector<2x16xf32>
    %564 = vector.extract_strided_slice %556 {offsets = [0, 32], sizes = [2, 16], strides = [1, 1]} : vector<2x48xf32> to vector<2x16xf32>
    %565 = math.tanh %563 : vector<2x16xf32>
    %566 = arith.mulf %564, %565 : vector<2x16xf32>
    %567 = vector.extract_strided_slice %549 {offsets = [0, 64], sizes = [2, 64], strides = [1, 1]} : vector<2x128xf32> to vector<2x64xf32>
    %568 = vector.extract_strided_slice %567 {offsets = [0, 0], sizes = [2, 48], strides = [1, 1]} : vector<2x64xf32> to vector<2x48xf32>
    %569 = arith.negf %568 : vector<2x48xf32>
    %570 = math.exp %569 : vector<2x48xf32>
    %cst_117 = arith.constant 1.000000e+00 : f32
    %571 = vector.broadcast %cst_117 : f32 to vector<2x48xf32>
    %572 = arith.addf %571, %570 : vector<2x48xf32>
    %573 = arith.divf %571, %572 : vector<2x48xf32>
    %574 = vector.extract_strided_slice %567 {offsets = [0, 48], sizes = [2, 16], strides = [1, 1]} : vector<2x64xf32> to vector<2x16xf32>
    %575 = math.tanh %574 : vector<2x16xf32>
    %576 = vector.extract_strided_slice %573 {offsets = [0, 16], sizes = [2, 16], strides = [1, 1]} : vector<2x48xf32> to vector<2x16xf32>
    %577 = arith.mulf %576, %533 : vector<2x16xf32>
    %578 = vector.extract_strided_slice %573 {offsets = [0, 0], sizes = [2, 16], strides = [1, 1]} : vector<2x48xf32> to vector<2x16xf32>
    %579 = arith.mulf %578, %575 : vector<2x16xf32>
    %580 = arith.addf %577, %579 : vector<2x16xf32>
    %581 = vector.extract_strided_slice %573 {offsets = [0, 32], sizes = [2, 16], strides = [1, 1]} : vector<2x48xf32> to vector<2x16xf32>
    %582 = math.tanh %580 : vector<2x16xf32>
    %583 = arith.mulf %581, %582 : vector<2x16xf32>
    %584 = tpu.concatenate %566, %583 in 1 : vector<2x16xf32>, vector<2x16xf32> -> vector<2x32xf32>
    %585 = vector.shape_cast %566 : vector<2x16xf32> to vector<2x1x16xf32>
    %c0_118 = arith.constant 0 : index
    %c3_119 = arith.constant 3 : index
    %c0_120 = arith.constant 0 : index
    %586 = vector.load %arg9[%c0_118, %c3_119, %c0_120] : memref<2x8x32xf32, #tpu.memory_space<vmem>>, vector<2x1x16xf32>
    tpu.vector_store %arg9[%c0_118, %c3_119, %c0_120], %585 {strides = array<i32>} : memref<2x8x32xf32, #tpu.memory_space<vmem>>, vector<2x1x16xf32>,
    %587 = vector.shape_cast %583 : vector<2x16xf32> to vector<2x1x16xf32>
    %c0_121 = arith.constant 0 : index
    %c4_122 = arith.constant 4 : index
    %c16_123 = arith.constant 16 : index
    %588 = vector.load %arg9[%c0_121, %c4_122, %c16_123] : memref<2x8x32xf32, #tpu.memory_space<vmem>>, vector<2x1x16xf32>
    tpu.vector_store %arg9[%c0_121, %c4_122, %c16_123], %587 {strides = array<i32>} : memref<2x8x32xf32, #tpu.memory_space<vmem>>, vector<2x1x16xf32>,
    %589 = vector.extract_strided_slice %396 {offsets = [0, 4, 0], sizes = [2, 1, 64], strides = [1, 1, 1]} : vector<2x8x128xf32> to vector<2x1x64xf32>
    %590 = vector.shape_cast %589 : vector<2x1x64xf32> to vector<2x64xf32>
    %591 = vector.extract_strided_slice %396 {offsets = [0, 3, 64], sizes = [2, 1, 64], strides = [1, 1, 1]} : vector<2x8x128xf32> to vector<2x1x64xf32>
    %592 = vector.shape_cast %591 : vector<2x1x64xf32> to vector<2x64xf32>
    %593 = tpu.concatenate %590, %592 in 1 : vector<2x64xf32>, vector<2x64xf32> -> vector<2x128xf32>
    %594 = arith.truncf %584 : vector<2x32xf32> to vector<2x32xbf16>
    %cst_124 = arith.constant dense<0.000000e+00> : vector<2x128xf32>
    %595 = tpu.matmul %594, %397, %cst_124 {dimension_numbers = #tpu.dot_dimension_numbers<[1], [0], [0], [1], [0, 0, 1, 1], [], []>} : vector<2x32xbf16>, vector<32x128xbf16>, vector<2x128xf32> -> vector<2x128xf32>
    %596 = arith.addf %593, %595 : vector<2x128xf32>
    %597 = vector.extract_strided_slice %596 {offsets = [0, 0], sizes = [2, 64], strides = [1, 1]} : vector<2x128xf32> to vector<2x64xf32>
    %598 = vector.extract_strided_slice %597 {offsets = [0, 0], sizes = [2, 48], strides = [1, 1]} : vector<2x64xf32> to vector<2x48xf32>
    %599 = arith.negf %598 : vector<2x48xf32>
    %600 = math.exp %599 : vector<2x48xf32>
    %cst_125 = arith.constant 1.000000e+00 : f32
    %601 = vector.broadcast %cst_125 : f32 to vector<2x48xf32>
    %602 = arith.addf %601, %600 : vector<2x48xf32>
    %603 = arith.divf %601, %602 : vector<2x48xf32>
    %604 = vector.extract_strided_slice %597 {offsets = [0, 48], sizes = [2, 16], strides = [1, 1]} : vector<2x64xf32> to vector<2x16xf32>
    %605 = math.tanh %604 : vector<2x16xf32>
    %606 = vector.extract_strided_slice %603 {offsets = [0, 16], sizes = [2, 16], strides = [1, 1]} : vector<2x48xf32> to vector<2x16xf32>
    %607 = arith.mulf %606, %563 : vector<2x16xf32>
    %608 = vector.extract_strided_slice %603 {offsets = [0, 0], sizes = [2, 16], strides = [1, 1]} : vector<2x48xf32> to vector<2x16xf32>
    %609 = arith.mulf %608, %605 : vector<2x16xf32>
    %610 = arith.addf %607, %609 : vector<2x16xf32>
    %611 = vector.extract_strided_slice %603 {offsets = [0, 32], sizes = [2, 16], strides = [1, 1]} : vector<2x48xf32> to vector<2x16xf32>
    %612 = math.tanh %610 : vector<2x16xf32>
    %613 = arith.mulf %611, %612 : vector<2x16xf32>
    %614 = vector.extract_strided_slice %596 {offsets = [0, 64], sizes = [2, 64], strides = [1, 1]} : vector<2x128xf32> to vector<2x64xf32>
    %615 = vector.extract_strided_slice %614 {offsets = [0, 0], sizes = [2, 48], strides = [1, 1]} : vector<2x64xf32> to vector<2x48xf32>
    %616 = arith.negf %615 : vector<2x48xf32>
    %617 = math.exp %616 : vector<2x48xf32>
    %cst_126 = arith.constant 1.000000e+00 : f32
    %618 = vector.broadcast %cst_126 : f32 to vector<2x48xf32>
    %619 = arith.addf %618, %617 : vector<2x48xf32>
    %620 = arith.divf %618, %619 : vector<2x48xf32>
    %621 = vector.extract_strided_slice %614 {offsets = [0, 48], sizes = [2, 16], strides = [1, 1]} : vector<2x64xf32> to vector<2x16xf32>
    %622 = math.tanh %621 : vector<2x16xf32>
    %623 = vector.extract_strided_slice %620 {offsets = [0, 16], sizes = [2, 16], strides = [1, 1]} : vector<2x48xf32> to vector<2x16xf32>
    %624 = arith.mulf %623, %580 : vector<2x16xf32>
    %625 = vector.extract_strided_slice %620 {offsets = [0, 0], sizes = [2, 16], strides = [1, 1]} : vector<2x48xf32> to vector<2x16xf32>
    %626 = arith.mulf %625, %622 : vector<2x16xf32>
    %627 = arith.addf %624, %626 : vector<2x16xf32>
    %628 = vector.extract_strided_slice %620 {offsets = [0, 32], sizes = [2, 16], strides = [1, 1]} : vector<2x48xf32> to vector<2x16xf32>
    %629 = math.tanh %627 : vector<2x16xf32>
    %630 = arith.mulf %628, %629 : vector<2x16xf32>
    %631 = tpu.concatenate %613, %630 in 1 : vector<2x16xf32>, vector<2x16xf32> -> vector<2x32xf32>
    %632 = vector.shape_cast %613 : vector<2x16xf32> to vector<2x1x16xf32>
    %c0_127 = arith.constant 0 : index
    %c4_128 = arith.constant 4 : index
    %c0_129 = arith.constant 0 : index
    %633 = vector.load %arg9[%c0_127, %c4_128, %c0_129] : memref<2x8x32xf32, #tpu.memory_space<vmem>>, vector<2x1x16xf32>
    tpu.vector_store %arg9[%c0_127, %c4_128, %c0_129], %632 {strides = array<i32>} : memref<2x8x32xf32, #tpu.memory_space<vmem>>, vector<2x1x16xf32>,
    %634 = vector.shape_cast %630 : vector<2x16xf32> to vector<2x1x16xf32>
    %c0_130 = arith.constant 0 : index
    %c3_131 = arith.constant 3 : index
    %c16_132 = arith.constant 16 : index
    %635 = vector.load %arg9[%c0_130, %c3_131, %c16_132] : memref<2x8x32xf32, #tpu.memory_space<vmem>>, vector<2x1x16xf32>
    tpu.vector_store %arg9[%c0_130, %c3_131, %c16_132], %634 {strides = array<i32>} : memref<2x8x32xf32, #tpu.memory_space<vmem>>, vector<2x1x16xf32>,
    %636 = vector.extract_strided_slice %396 {offsets = [0, 5, 0], sizes = [2, 1, 64], strides = [1, 1, 1]} : vector<2x8x128xf32> to vector<2x1x64xf32>
    %637 = vector.shape_cast %636 : vector<2x1x64xf32> to vector<2x64xf32>
    %638 = vector.extract_strided_slice %396 {offsets = [0, 2, 64], sizes = [2, 1, 64], strides = [1, 1, 1]} : vector<2x8x128xf32> to vector<2x1x64xf32>
    %639 = vector.shape_cast %638 : vector<2x1x64xf32> to vector<2x64xf32>
    %640 = tpu.concatenate %637, %639 in 1 : vector<2x64xf32>, vector<2x64xf32> -> vector<2x128xf32>
    %641 = arith.truncf %631 : vector<2x32xf32> to vector<2x32xbf16>
    %cst_133 = arith.constant dense<0.000000e+00> : vector<2x128xf32>
    %642 = tpu.matmul %641, %397, %cst_133 {dimension_numbers = #tpu.dot_dimension_numbers<[1], [0], [0], [1], [0, 0, 1, 1], [], []>} : vector<2x32xbf16>, vector<32x128xbf16>, vector<2x128xf32> -> vector<2x128xf32>
    %643 = arith.addf %640, %642 : vector<2x128xf32>
    %644 = vector.extract_strided_slice %643 {offsets = [0, 0], sizes = [2, 64], strides = [1, 1]} : vector<2x128xf32> to vector<2x64xf32>
    %645 = vector.extract_strided_slice %644 {offsets = [0, 0], sizes = [2, 48], strides = [1, 1]} : vector<2x64xf32> to vector<2x48xf32>
    %646 = arith.negf %645 : vector<2x48xf32>
    %647 = math.exp %646 : vector<2x48xf32>
    %cst_134 = arith.constant 1.000000e+00 : f32
    %648 = vector.broadcast %cst_134 : f32 to vector<2x48xf32>
    %649 = arith.addf %648, %647 : vector<2x48xf32>
    %650 = arith.divf %648, %649 : vector<2x48xf32>
    %651 = vector.extract_strided_slice %644 {offsets = [0, 48], sizes = [2, 16], strides = [1, 1]} : vector<2x64xf32> to vector<2x16xf32>
    %652 = math.tanh %651 : vector<2x16xf32>
    %653 = vector.extract_strided_slice %650 {offsets = [0, 16], sizes = [2, 16], strides = [1, 1]} : vector<2x48xf32> to vector<2x16xf32>
    %654 = arith.mulf %653, %610 : vector<2x16xf32>
    %655 = vector.extract_strided_slice %650 {offsets = [0, 0], sizes = [2, 16], strides = [1, 1]} : vector<2x48xf32> to vector<2x16xf32>
    %656 = arith.mulf %655, %652 : vector<2x16xf32>
    %657 = arith.addf %654, %656 : vector<2x16xf32>
    %658 = vector.extract_strided_slice %650 {offsets = [0, 32], sizes = [2, 16], strides = [1, 1]} : vector<2x48xf32> to vector<2x16xf32>
    %659 = math.tanh %657 : vector<2x16xf32>
    %660 = arith.mulf %658, %659 : vector<2x16xf32>
    %661 = vector.extract_strided_slice %643 {offsets = [0, 64], sizes = [2, 64], strides = [1, 1]} : vector<2x128xf32> to vector<2x64xf32>
    %662 = vector.extract_strided_slice %661 {offsets = [0, 0], sizes = [2, 48], strides = [1, 1]} : vector<2x64xf32> to vector<2x48xf32>
    %663 = arith.negf %662 : vector<2x48xf32>
    %664 = math.exp %663 : vector<2x48xf32>
    %cst_135 = arith.constant 1.000000e+00 : f32
    %665 = vector.broadcast %cst_135 : f32 to vector<2x48xf32>
    %666 = arith.addf %665, %664 : vector<2x48xf32>
    %667 = arith.divf %665, %666 : vector<2x48xf32>
    %668 = vector.extract_strided_slice %661 {offsets = [0, 48], sizes = [2, 16], strides = [1, 1]} : vector<2x64xf32> to vector<2x16xf32>
    %669 = math.tanh %668 : vector<2x16xf32>
    %670 = vector.extract_strided_slice %667 {offsets = [0, 16], sizes = [2, 16], strides = [1, 1]} : vector<2x48xf32> to vector<2x16xf32>
    %671 = arith.mulf %670, %627 : vector<2x16xf32>
    %672 = vector.extract_strided_slice %667 {offsets = [0, 0], sizes = [2, 16], strides = [1, 1]} : vector<2x48xf32> to vector<2x16xf32>
    %673 = arith.mulf %672, %669 : vector<2x16xf32>
    %674 = arith.addf %671, %673 : vector<2x16xf32>
    %675 = vector.extract_strided_slice %667 {offsets = [0, 32], sizes = [2, 16], strides = [1, 1]} : vector<2x48xf32> to vector<2x16xf32>
    %676 = math.tanh %674 : vector<2x16xf32>
    %677 = arith.mulf %675, %676 : vector<2x16xf32>
    %678 = tpu.concatenate %660, %677 in 1 : vector<2x16xf32>, vector<2x16xf32> -> vector<2x32xf32>
    %679 = vector.shape_cast %660 : vector<2x16xf32> to vector<2x1x16xf32>
    %c0_136 = arith.constant 0 : index
    %c5_137 = arith.constant 5 : index
    %c0_138 = arith.constant 0 : index
    %680 = vector.load %arg9[%c0_136, %c5_137, %c0_138] : memref<2x8x32xf32, #tpu.memory_space<vmem>>, vector<2x1x16xf32>
    tpu.vector_store %arg9[%c0_136, %c5_137, %c0_138], %679 {strides = array<i32>} : memref<2x8x32xf32, #tpu.memory_space<vmem>>, vector<2x1x16xf32>,
    %681 = vector.shape_cast %677 : vector<2x16xf32> to vector<2x1x16xf32>
    %c0_139 = arith.constant 0 : index
    %c2_140 = arith.constant 2 : index
    %c16_141 = arith.constant 16 : index
    %682 = vector.load %arg9[%c0_139, %c2_140, %c16_141] : memref<2x8x32xf32, #tpu.memory_space<vmem>>, vector<2x1x16xf32>
    tpu.vector_store %arg9[%c0_139, %c2_140, %c16_141], %681 {strides = array<i32>} : memref<2x8x32xf32, #tpu.memory_space<vmem>>, vector<2x1x16xf32>,
    %683 = vector.extract_strided_slice %396 {offsets = [0, 6, 0], sizes = [2, 1, 64], strides = [1, 1, 1]} : vector<2x8x128xf32> to vector<2x1x64xf32>
    %684 = vector.shape_cast %683 : vector<2x1x64xf32> to vector<2x64xf32>
    %685 = vector.extract_strided_slice %396 {offsets = [0, 1, 64], sizes = [2, 1, 64], strides = [1, 1, 1]} : vector<2x8x128xf32> to vector<2x1x64xf32>
    %686 = vector.shape_cast %685 : vector<2x1x64xf32> to vector<2x64xf32>
    %687 = tpu.concatenate %684, %686 in 1 : vector<2x64xf32>, vector<2x64xf32> -> vector<2x128xf32>
    %688 = arith.truncf %678 : vector<2x32xf32> to vector<2x32xbf16>
    %cst_142 = arith.constant dense<0.000000e+00> : vector<2x128xf32>
    %689 = tpu.matmul %688, %397, %cst_142 {dimension_numbers = #tpu.dot_dimension_numbers<[1], [0], [0], [1], [0, 0, 1, 1], [], []>} : vector<2x32xbf16>, vector<32x128xbf16>, vector<2x128xf32> -> vector<2x128xf32>
    %690 = arith.addf %687, %689 : vector<2x128xf32>
    %691 = vector.extract_strided_slice %690 {offsets = [0, 0], sizes = [2, 64], strides = [1, 1]} : vector<2x128xf32> to vector<2x64xf32>
    %692 = vector.extract_strided_slice %691 {offsets = [0, 0], sizes = [2, 48], strides = [1, 1]} : vector<2x64xf32> to vector<2x48xf32>
    %693 = arith.negf %692 : vector<2x48xf32>
    %694 = math.exp %693 : vector<2x48xf32>
    %cst_143 = arith.constant 1.000000e+00 : f32
    %695 = vector.broadcast %cst_143 : f32 to vector<2x48xf32>
    %696 = arith.addf %695, %694 : vector<2x48xf32>
    %697 = arith.divf %695, %696 : vector<2x48xf32>
    %698 = vector.extract_strided_slice %691 {offsets = [0, 48], sizes = [2, 16], strides = [1, 1]} : vector<2x64xf32> to vector<2x16xf32>
    %699 = math.tanh %698 : vector<2x16xf32>
    %700 = vector.extract_strided_slice %697 {offsets = [0, 16], sizes = [2, 16], strides = [1, 1]} : vector<2x48xf32> to vector<2x16xf32>
    %701 = arith.mulf %700, %657 : vector<2x16xf32>
    %702 = vector.extract_strided_slice %697 {offsets = [0, 0], sizes = [2, 16], strides = [1, 1]} : vector<2x48xf32> to vector<2x16xf32>
    %703 = arith.mulf %702, %699 : vector<2x16xf32>
    %704 = arith.addf %701, %703 : vector<2x16xf32>
    %705 = vector.extract_strided_slice %697 {offsets = [0, 32], sizes = [2, 16], strides = [1, 1]} : vector<2x48xf32> to vector<2x16xf32>
    %706 = math.tanh %704 : vector<2x16xf32>
    %707 = arith.mulf %705, %706 : vector<2x16xf32>
    %708 = vector.extract_strided_slice %690 {offsets = [0, 64], sizes = [2, 64], strides = [1, 1]} : vector<2x128xf32> to vector<2x64xf32>
    %709 = vector.extract_strided_slice %708 {offsets = [0, 0], sizes = [2, 48], strides = [1, 1]} : vector<2x64xf32> to vector<2x48xf32>
    %710 = arith.negf %709 : vector<2x48xf32>
    %711 = math.exp %710 : vector<2x48xf32>
    %cst_144 = arith.constant 1.000000e+00 : f32
    %712 = vector.broadcast %cst_144 : f32 to vector<2x48xf32>
    %713 = arith.addf %712, %711 : vector<2x48xf32>
    %714 = arith.divf %712, %713 : vector<2x48xf32>
    %715 = vector.extract_strided_slice %708 {offsets = [0, 48], sizes = [2, 16], strides = [1, 1]} : vector<2x64xf32> to vector<2x16xf32>
    %716 = math.tanh %715 : vector<2x16xf32>
    %717 = vector.extract_strided_slice %714 {offsets = [0, 16], sizes = [2, 16], strides = [1, 1]} : vector<2x48xf32> to vector<2x16xf32>
    %718 = arith.mulf %717, %674 : vector<2x16xf32>
    %719 = vector.extract_strided_slice %714 {offsets = [0, 0], sizes = [2, 16], strides = [1, 1]} : vector<2x48xf32> to vector<2x16xf32>
    %720 = arith.mulf %719, %716 : vector<2x16xf32>
    %721 = arith.addf %718, %720 : vector<2x16xf32>
    %722 = vector.extract_strided_slice %714 {offsets = [0, 32], sizes = [2, 16], strides = [1, 1]} : vector<2x48xf32> to vector<2x16xf32>
    %723 = math.tanh %721 : vector<2x16xf32>
    %724 = arith.mulf %722, %723 : vector<2x16xf32>
    %725 = tpu.concatenate %707, %724 in 1 : vector<2x16xf32>, vector<2x16xf32> -> vector<2x32xf32>
    %726 = vector.shape_cast %707 : vector<2x16xf32> to vector<2x1x16xf32>
    %c0_145 = arith.constant 0 : index
    %c6_146 = arith.constant 6 : index
    %c0_147 = arith.constant 0 : index
    %727 = vector.load %arg9[%c0_145, %c6_146, %c0_147] : memref<2x8x32xf32, #tpu.memory_space<vmem>>, vector<2x1x16xf32>
    tpu.vector_store %arg9[%c0_145, %c6_146, %c0_147], %726 {strides = array<i32>} : memref<2x8x32xf32, #tpu.memory_space<vmem>>, vector<2x1x16xf32>,
    %728 = vector.shape_cast %724 : vector<2x16xf32> to vector<2x1x16xf32>
    %c0_148 = arith.constant 0 : index
    %c1_149 = arith.constant 1 : index
    %c16_150 = arith.constant 16 : index
    %729 = vector.load %arg9[%c0_148, %c1_149, %c16_150] : memref<2x8x32xf32, #tpu.memory_space<vmem>>, vector<2x1x16xf32>
    tpu.vector_store %arg9[%c0_148, %c1_149, %c16_150], %728 {strides = array<i32>} : memref<2x8x32xf32, #tpu.memory_space<vmem>>, vector<2x1x16xf32>,
    %730 = vector.extract_strided_slice %396 {offsets = [0, 7, 0], sizes = [2, 1, 64], strides = [1, 1, 1]} : vector<2x8x128xf32> to vector<2x1x64xf32>
    %731 = vector.shape_cast %730 : vector<2x1x64xf32> to vector<2x64xf32>
    %732 = vector.extract_strided_slice %396 {offsets = [0, 0, 64], sizes = [2, 1, 64], strides = [1, 1, 1]} : vector<2x8x128xf32> to vector<2x1x64xf32>
    %733 = vector.shape_cast %732 : vector<2x1x64xf32> to vector<2x64xf32>
    %734 = tpu.concatenate %731, %733 in 1 : vector<2x64xf32>, vector<2x64xf32> -> vector<2x128xf32>
    %735 = arith.truncf %725 : vector<2x32xf32> to vector<2x32xbf16>
    %cst_151 = arith.constant dense<0.000000e+00> : vector<2x128xf32>
    %736 = tpu.matmul %735, %397, %cst_151 {dimension_numbers = #tpu.dot_dimension_numbers<[1], [0], [0], [1], [0, 0, 1, 1], [], []>} : vector<2x32xbf16>, vector<32x128xbf16>, vector<2x128xf32> -> vector<2x128xf32>
    %737 = arith.addf %734, %736 : vector<2x128xf32>
    %738 = vector.extract_strided_slice %737 {offsets = [0, 0], sizes = [2, 64], strides = [1, 1]} : vector<2x128xf32> to vector<2x64xf32>
    %739 = vector.extract_strided_slice %738 {offsets = [0, 0], sizes = [2, 48], strides = [1, 1]} : vector<2x64xf32> to vector<2x48xf32>
    %740 = arith.negf %739 : vector<2x48xf32>
    %741 = math.exp %740 : vector<2x48xf32>
    %cst_152 = arith.constant 1.000000e+00 : f32
    %742 = vector.broadcast %cst_152 : f32 to vector<2x48xf32>
    %743 = arith.addf %742, %741 : vector<2x48xf32>
    %744 = arith.divf %742, %743 : vector<2x48xf32>
    %745 = vector.extract_strided_slice %738 {offsets = [0, 48], sizes = [2, 16], strides = [1, 1]} : vector<2x64xf32> to vector<2x16xf32>
    %746 = math.tanh %745 : vector<2x16xf32>
    %747 = vector.extract_strided_slice %744 {offsets = [0, 16], sizes = [2, 16], strides = [1, 1]} : vector<2x48xf32> to vector<2x16xf32>
    %748 = arith.mulf %747, %704 : vector<2x16xf32>
    %749 = vector.extract_strided_slice %744 {offsets = [0, 0], sizes = [2, 16], strides = [1, 1]} : vector<2x48xf32> to vector<2x16xf32>
    %750 = arith.mulf %749, %746 : vector<2x16xf32>
    %751 = arith.addf %748, %750 : vector<2x16xf32>
    %752 = vector.extract_strided_slice %744 {offsets = [0, 32], sizes = [2, 16], strides = [1, 1]} : vector<2x48xf32> to vector<2x16xf32>
    %753 = math.tanh %751 : vector<2x16xf32>
    %754 = arith.mulf %752, %753 : vector<2x16xf32>
    %755 = vector.extract_strided_slice %737 {offsets = [0, 64], sizes = [2, 64], strides = [1, 1]} : vector<2x128xf32> to vector<2x64xf32>
    %756 = vector.extract_strided_slice %755 {offsets = [0, 0], sizes = [2, 48], strides = [1, 1]} : vector<2x64xf32> to vector<2x48xf32>
    %757 = arith.negf %756 : vector<2x48xf32>
    %758 = math.exp %757 : vector<2x48xf32>
    %cst_153 = arith.constant 1.000000e+00 : f32
    %759 = vector.broadcast %cst_153 : f32 to vector<2x48xf32>
    %760 = arith.addf %759, %758 : vector<2x48xf32>
    %761 = arith.divf %759, %760 : vector<2x48xf32>
    %762 = vector.extract_strided_slice %755 {offsets = [0, 48], sizes = [2, 16], strides = [1, 1]} : vector<2x64xf32> to vector<2x16xf32>
    %763 = math.tanh %762 : vector<2x16xf32>
    %764 = vector.extract_strided_slice %761 {offsets = [0, 16], sizes = [2, 16], strides = [1, 1]} : vector<2x48xf32> to vector<2x16xf32>
    %765 = arith.mulf %764, %721 : vector<2x16xf32>
    %766 = vector.extract_strided_slice %761 {offsets = [0, 0], sizes = [2, 16], strides = [1, 1]} : vector<2x48xf32> to vector<2x16xf32>
    %767 = arith.mulf %766, %763 : vector<2x16xf32>
    %768 = arith.addf %765, %767 : vector<2x16xf32>
    %769 = vector.extract_strided_slice %761 {offsets = [0, 32], sizes = [2, 16], strides = [1, 1]} : vector<2x48xf32> to vector<2x16xf32>
    %770 = math.tanh %768 : vector<2x16xf32>
    %771 = arith.mulf %769, %770 : vector<2x16xf32>
    %772 = vector.shape_cast %754 : vector<2x16xf32> to vector<2x1x16xf32>
    %c0_154 = arith.constant 0 : index
    %c7_155 = arith.constant 7 : index
    %c0_156 = arith.constant 0 : index
    %773 = vector.load %arg9[%c0_154, %c7_155, %c0_156] : memref<2x8x32xf32, #tpu.memory_space<vmem>>, vector<2x1x16xf32>
    tpu.vector_store %arg9[%c0_154, %c7_155, %c0_156], %772 {strides = array<i32>} : memref<2x8x32xf32, #tpu.memory_space<vmem>>, vector<2x1x16xf32>,
    %774 = vector.shape_cast %771 : vector<2x16xf32> to vector<2x1x16xf32>
    %c0_157 = arith.constant 0 : index
    %c0_158 = arith.constant 0 : index
    %c16_159 = arith.constant 16 : index
    %775 = vector.load %arg9[%c0_157, %c0_158, %c16_159] : memref<2x8x32xf32, #tpu.memory_space<vmem>>, vector<2x1x16xf32>
    tpu.vector_store %arg9[%c0_157, %c0_158, %c16_159], %774 {strides = array<i32>} : memref<2x8x32xf32, #tpu.memory_space<vmem>>, vector<2x1x16xf32>,
    return
  }
}

</mosaic_0001>

<bundles_post_ra>
// kernel: rnn_encoder_forward.1
= control target key start
LH: loop header
LB: loop body
LE: loop exit
PB: predicated region body
PF: predicated region fallthrough
CT: control target
= control target key end

     0   :  { %15 = vsyncpa [#allocation3], 0  ;;  %s3462_s0 = inlined_call_operand.hbm [shape: f32[2,8,128], index: 0, kind: input, shape index: {}]   ;;  %s3463_s1 = inlined_call_operand.hbm [shape: f32[2,8,256], index: 1, kind: input, shape index: {}]   ;;  %s3464_s2 = inlined_call_operand.hbm [shape: bf16[128,128], index: 2, kind: input, shape index: {}]   ;;  %s3465_s3 = inlined_call_operand.hbm [shape: bf16[32,128], index: 3, kind: input, shape index: {}]   ;;  %s3466_s4 = inlined_call_operand.vmem [shape: f32[1,128], index: 4, kind: input, shape index: {}]   ;;  %s3467_s5 = inlined_call_operand.hbm [shape: bf16[256,128], index: 5, kind: input, shape index: {}]   ;;  %s3468_s6 = inlined_call_operand.hbm [shape: bf16[32,128], index: 6, kind: input, shape index: {}]   ;;  %s3469_s7 = inlined_call_operand.vmem [shape: f32[1,128], index: 7, kind: input, shape index: {}]   ;;  %s3470_s8 = inlined_call_operand.hbm [shape: f32[2,8,32], index: 8, kind: output, shape index: {0}]   ;;  %s3471_s9 = inlined_call_operand.hbm [shape: f32[2,8,32], index: 9, kind: output, shape index: {1}]  }
   0x1   :  { %16 = vsyncpa [#allocation6], 0 }
   0x2   :  { %17 = vsyncpa [#allocation9], 0 }
   0x3   :  { %18 = vsyncpa [#allocation12], 0 }
   0x4   :  { %19 = vsyncpa [#allocation4], 0  ;;  %s38_s11 = sshll.u32 %s3463_s1, 4  ;;  %s39_s11 = int_to_ptr.hbm [resolvable:$true] %s38_s11 }
   0x5   :  { %20 = vsyncpa [#allocation15], 0  ;;  %s2772_s12 = smov [#allocation5]   ;;  %s2773_s14 = smov 256  }
   0x6   :  { %s40_s13 = sshll.u32 %s2772_s12, 4  ;;  %s2774_s15 = smov 16   ;;  %s41_s13 = int_to_ptr.vmem [resolvable:$true] %s40_s13 }
   0x7   :  { %46 = dma.hbm_to_vmem [thread:$0]  %s39_s11, 512, %s41_s13, [#allocation6], %s2773_s14, %s2773_s14, %s2774_s15  }
   0x8   :  { %s64_s18 = sshll.u32 %s3465_s3, 4  ;;  %s2775_s19 = smov [#allocation8]   ;;  %s65_s18 = int_to_ptr.hbm [resolvable:$true] %s64_s18 }
   0x9   :  { %s66_s20 = sshll.u32 %s2775_s19, 4  ;;  %s25_s1 = sshll.u32 %s3462_s0, 4  ;;  %s67_s20 = int_to_ptr.vmem [resolvable:$true] %s66_s20  ;;  %s26_s1 = int_to_ptr.hbm [resolvable:$true] %s25_s1 }
   0xa   :  { %s2776_s23 = smov 64   ;;  %s2777_s24 = smov 4  }
   0xb   :  { %72 = dma.hbm_to_vmem [thread:$0]  %s65_s18, 256, %s67_s20, [#allocation9], %s2776_s23, %s2776_s23, %s2777_s24  }
   0xc   :  { %s2778_s25 = smov [#allocation2]   ;;  %s51_s29 = sshll.u32 %s3464_s2, 4  ;;  %s52_s29 = int_to_ptr.hbm [resolvable:$true] %s51_s29 }
   0xd   :  { %s27_s26 = sshll.u32 %s2778_s25, 4  ;;  %s2779_s3 = smov 128   ;;  %s28_s26 = int_to_ptr.vmem [resolvable:$true] %s27_s26 }
   0xe   :  { %s2780_s30 = smov 8   ;;  %s2781_s0 = smov [#allocation7]  }
   0xf   :  { %33 = dma.hbm_to_vmem [thread:$0]  %s26_s1, 256, %s28_s26, [#allocation3], %s2779_s3, %s2779_s3, %s2780_s30  }
  0x10   :  { %s53_s10 = sshll.u32 %s2781_s0, 4  ;;  %s79_s13 = sshll.u32 %s3467_s5, 4  ;;  %s54_s10 = int_to_ptr.vmem [resolvable:$true] %s53_s10  ;;  %s80_s13 = int_to_ptr.hbm [resolvable:$true] %s79_s13 }
  0x11   :  { %59 = dma.hbm_to_vmem [thread:$0]  %s52_s29, 1024, %s54_s10, [#allocation6], %s2776_s23, %s2776_s23, %s2777_s24  }
  0x12   :  { %s92_s2 = sshll.u32 %s3468_s6, 4  ;;  %s2782_s17 = smov [#allocation10]   ;;  %s93_s2 = int_to_ptr.hbm [resolvable:$true] %s92_s2 }
  0x13   :  { %s81_s18 = sshll.u32 %s2782_s17, 4  ;;  %s2783_s19 = smov [#allocation11]   ;;  %s82_s18 = int_to_ptr.vmem [resolvable:$true] %s81_s18 }
  0x14   :  { %87 = dma.hbm_to_vmem [thread:$0]  %s80_s13, 2048, %s82_s18, [#allocation9], %s2776_s23, %s2776_s23, %s2777_s24  }
  0x15   :  { %s94_s20 = sshll.u32 %s2783_s19, 4  ;;  %s95_s20 = int_to_ptr.vmem [resolvable:$true] %s94_s20 }
  0x16   :  { %100 = dma.hbm_to_vmem [thread:$0]  %s93_s2, 256, %s95_s20, [#allocation12], %s2776_s23, %s2776_s23, %s2777_s24  }
  0x17   :  { %2760 = dma.done.wait [#allocation3], 256  }
  0x18   :  { %2761 = vsyncadd [#allocation3], 4294967040 }
  0x19   :  { %2762 = dma.done.wait [#allocation6], 1536  }
  0x1a   :  { %2763 = vsyncadd [#allocation6], 4294965760 }
  0x1b   :  { %2764 = dma.done.wait [#allocation9], 2304  }
  0x1c   :  { %2765 = vsyncadd [#allocation9], 4294964992 }
  0x1d   :  { %2766 = dma.done.wait [#allocation12], 256  }
  0x1e   :  { %2767 = vsyncadd [#allocation12], 4294967040  ;;  %v2383_v0 = vld [vmem:[#allocation7 + $0x38] sm:$0xff]  ;;  %v2382_v1 = vld [vmem:[#allocation7 + $0x30] sm:$0xff]  ;;  %v2784_v6 = vmov 0   ;;  %vm227_vm0 = vcmask 523264  }
  0x1f   :  { %199 = vmatpush.bf16.msra.mxu0 %v2383_v0  ;;  %v2862_v2 = vld [vmem:[#allocation8 + $0x8] sm:$0xff]  ;;  %v2865_v3 = vld [vmem:[#allocation8] sm:$0xff]  ;;  %v2379_v7 = vld [vmem:[#allocation7 + $0x18] sm:$0xff]  ;;  %vm220_vm1 = vcmask 1041409   ;;  %vm326_vm2 = vcmask 1042434   ;;  %vm547_vm3 = vcmask 1044484  }
  0x20   :  { %251 = vmatpush.bf16.msra.mxu1 %v2862_v2  ;;  %344 = vmatpush.bf16.msra.mxu2 %v2862_v2  ;;  %v2381_v4 = vld [vmem:[#allocation7 + $0x28] sm:$0xff]  ;;  %v2380_v5 = vld [vmem:[#allocation7 + $0x20] sm:$0xff]  ;;  %v2378_v8 = vld [vmem:[#allocation7 + $0x10] sm:$0xff]  ;;  %vm433_vm4 = vcmask 1043459   ;;  %vm655_vm5 = vcmask 1045509   ;;  %vm768_vm6 = vcmask 1046534  }
  0x21   :  { %458 = vmatpush.bf16.msra.mxu3 %v2862_v2  ;;  %v2377_v9 = vld [vmem:[#allocation7 + $0x8] sm:$0xff]  ;;  %v2376_v10 = vld [vmem:[#allocation7] sm:$0xff]  ;;  %v128_v11 = vld [vmem:[#allocation2] sm:$0xff]  ;;  %vm875_vm7 = vcmask 1047559   ;;  %s2786_s21 = smov 48   ;;  %s2787_s22 = smov 96  }
  0x22   :  { %v129_v12 = vld [vmem:[#allocation2 + $0x8] sm:$0xff]  ;;  %v2422_v16 = vld [vmem:[%s3466_s4] ss:$0 sm:$0xff]  ;;  %s2785_s4 = smov 80   ;;  %vm303_vm12 = vcmask 130048   ;;  %vm241_vm13 = vcmask 261120  }
  0x23   :  { %200 = vmatpush.bf16.msra.mxu0 %v2382_v1  ;;  %v130_v13 = vpack.c.bf16 %v129_v12, %v128_v11  ;;  %s2198_s24 = sshll.u32 %s3470_s8, 4  ;;  %s2788_s25 = smov [#allocation13]   ;;  %s2199_s24 = int_to_ptr.hbm [resolvable:$true] %s2198_s24 }
  0x24   :  { %252 = vmatpush.bf16.msra.mxu1 %v2865_v3  ;;  %345 = vmatpush.bf16.msra.mxu2 %v2865_v3  ;;  %s2196_s26 = sshll.u32 %s2788_s25, 4  ;;  %s2789_s8 = smov [#allocation14]   ;;  %s2197_s26 = int_to_ptr.vmem [resolvable:$true] %s2196_s26 }
  0x25   :  { %459 = vmatpush.bf16.msra.mxu3 %v2865_v3  ;;  %s2209_s27 = sshll.u32 %s2789_s8, 4  ;;  %s2211_s0 = sshll.u32 %s3471_s9, 4  ;;  %s2210_s27 = int_to_ptr.vmem [resolvable:$true] %s2209_s27  ;;  %s2212_s0 = int_to_ptr.hbm [resolvable:$true] %s2211_s0 }
  0x27   :  { %201 = vmatpush.bf16.msra.mxu0 %v2381_v4  ;;  %253 = vmatmul.bf16.vlgmr.msra.gmra.mxu1 %v2784_v6 }
  0x28   :  { %566 = vmatpush.bf16.msrb.mxu1 %v2862_v2  ;;  %679 = vmatpush.bf16.msrb.mxu2 %v2862_v2 }
  0x29   :  { %786 = vmatpush.bf16.msrb.mxu3 %v2862_v2 }
  0x2b   :  { %202 = vmatpush.bf16.msra.mxu0 %v2380_v5 }
  0x2c   :  { %567 = vmatpush.bf16.msrb.mxu1 %v2865_v3  ;;  %680 = vmatpush.bf16.msrb.mxu2 %v2865_v3 }
  0x2d   :  { %787 = vmatpush.bf16.msrb.mxu3 %v2865_v3 }
  0x2f   :  { %203 = vmatpush.bf16.msra.mxu0 %v2379_v7 }
  0x30   :  { %899 = vmatpush.bf16.msra.mxu1 %v2862_v2 }
  0x33   :  { %204 = vmatpush.bf16.msra.mxu0 %v2378_v8 }
  0x34   :  { %900 = vmatpush.bf16.msra.mxu1 %v2865_v3 }
  0x37   :  { %205 = vmatpush.bf16.msra.mxu0 %v2377_v9 }
  0x3b   :  { %206 = vmatpush.bf16.msra.mxu0 %v2376_v10 }
  0x3e   :  { %207 = vmatmul.bf16.vlgmr.msra.gmra.mxu0 %v130_v13 }
  0xa4   :  { %v254_v14 = vpop.f32.mrf.mxu1 }
  0xac   :  { %v256_v15 = vpop.f32.mrf.mxu1 }
  0xbb   :  { %v208_v17 = vpop.f32.mrf.mxu0 }
  0xbc   :  { %v209_v18 = vadd.f32 %v2422_v16, %v208_v17 }
  0xbe   :  { %v550_v19 = vrot.slane %v209_v18, 1  ;;  %v223_v23 = vrot.slane %v209_v18, 7  ;;  %v329_v24 = vrot.slane %v209_v18, 5  ;;  %v436_v29 = vrot.slane %v209_v18, 3 }
  0xc0   :  { %v2885_v20 = vsel %vm227_vm0, %v209_v18, %v550_v19 }
  0xc3   :  { %v210_v21 = vpop.f32.mrf.mxu0 }
  0xc4   :  { %v211_v22 = vadd.f32 %v2422_v16, %v210_v21 }
  0xc6   :  { %v219_v25 = vrot.slane %v211_v22, 7  ;;  %v224_v26 = vrot.slane %v211_v22, 6  ;;  %v330_v27 = vrot.slane %v211_v22, 4  ;;  %v437_v28 = vrot.slane %v211_v22, 2 }
  0xc7   :  { %v551_v30 = vsel %vm547_vm3, %v211_v22, %v550_v19 }
  0xc8   :  { %v221_v31 = vsel %vm220_vm1, %v219_v25, %v209_v18  ;;  %v225_v32 = vsel %vm220_vm1, %v224_v26, %v223_v23  ;;  %v327_v33 = vsel %vm326_vm2, %v219_v25, %v209_v18  ;;  %v331_v34 = vsel %vm326_vm2, %v330_v27, %v329_v24 }
  0xc9   :  { %v228_v35 = vsel %vm227_vm0, %v221_v31, %v225_v32  ;;  %v2894_v36 = vsel %vm227_vm0, %v327_v33, %v331_v34  ;;  %v434_v37 = vsel %vm433_vm4, %v219_v25, %v209_v18  ;;  %v438_v38 = vsel %vm433_vm4, %v437_v28, %v436_v29 }
  0xca   :  { %v258_v39 = vadd.f32 %v254_v14, %v228_v35  ;;  %v2899_v40 = vsel %vm227_vm0, %v434_v37, %v438_v38  ;;  %v548_v41 = vsel %vm547_vm3, %v219_v25, %v209_v18  ;;  %v656_v42 = vsel %vm655_vm5, %v219_v25, %v209_v18 }
  0xcb   :  { %v2904_v43 = vsel %vm227_vm0, %v548_v41, %v551_v30  ;;  %v658_v44 = vsel %vm655_vm5, %v224_v26, %v223_v23  ;;  %v769_v45 = vsel %vm768_vm6, %v219_v25, %v209_v18  ;;  %v771_v46 = vsel %vm768_vm6, %v330_v27, %v329_v24 }
  0xcc   :  { %2424 = vtanh.f32 %v258_v39  ;;  %v2910_v47 = vsel %vm227_vm0, %v656_v42, %v658_v44  ;;  %v2913_v48 = vsel %vm227_vm0, %v769_v45, %v771_v46  ;;  %v876_v49 = vsel %vm875_vm7, %v219_v25, %v209_v18 }
  0xcd   :  { %v878_v50 = vsel %vm875_vm7, %v437_v28, %v436_v29  ;;  %v2918_v51 = vsel %vm227_vm0, %v219_v25, %v211_v22  ;;  %v2272_v54 = vmul.f32 -1.442695, %v258_v39 }
  0xce   :  { %v2921_v52 = vsel %vm227_vm0, %v876_v49, %v878_v50 }
  0xcf   :  { %2426 = vpow2.f32 %v2272_v54 }
  0xd2   :  { %v2425_v53 = vpop.eup %2424 }
  0xd3   :  { %281 = vrot.lane.b32.xlu0 %v2425_v53, %s2785_s4 }
  0xd5   :  { %v2427_v55 = vpop.eup %2426 }
  0xd6   :  { %v262_v56 = vadd.f32 1.0, %v2427_v55 }
  0xd8   :  { %2428 = vrcp.f32 %v262_v56  ;;  %v274_v62 = vand.u32 2147483648, %v262_v56  ;;  %vm268_vm9 = vweird.f32 %v262_v56  ;;  %v272_v63 = vand.u32 2147483647, %v262_v56 }
  0xda   :  { %v275_v1 = vor.u32 1.1754944e-38, %v274_v62  ;;  %vm273_vm11 = vcmp.eq.f32.partialorder %v272_v63, 8.507059e+37 }
  0xde   :  { %v2429_v57 = vpop.eup %2428 }
  0xdf   :  { %v264_v58 = vmul.f32 %v2429_v57, %v262_v56  ;;  %vm269_vm8 = vweird.f32 %v2429_v57 }
  0xe0   :  { %vm270_vm10 = vmor %vm268_vm9, %vm269_vm8 }
  0xe1   :  { %v265_v59 = vsub.f32 1.0, %v264_v58 }
  0xe3   :  { %v266_v60 = vmul.f32 %v2429_v57, %v265_v59 }
  0xe5   :  { %v267_v61 = vadd.f32 %v2429_v57, %v266_v60 }
  0xe7   :  { %v271_v0 = vsel %vm270_vm10, %v2429_v57, %v267_v61 }
  0xe8   :  { %v276_v5 = vsel %vm273_vm11, %v275_v1, %v271_v0 }
  0xe9   :  { %v279_v8 = vmul.f32 0.0, %v276_v5 }
 0x145   :  { %v282_v4 = vpop.permute.xlu0 %281 }
 0x146   :  { %v284_v7 = vmul.f32 %v282_v4, %v276_v5 }
 0x148   :  { %286 = vrot.lane.b32.xlu0 %v284_v7, %s2774_s15 }
 0x1ba   :  { %v287_v9 = vpop.permute.xlu0 %286 }
 0x1bb   :  { %v289_v10 = vadd.f32 %v287_v9, %v279_v8 }
 0x1bd   :  { %2430 = vtanh.f32 %v289_v10  ;;  %v376_v37 = vrot.slane %v289_v10, 7 }
 0x1c3   :  { %v2431_v11 = vpop.eup %2430 }
 0x1c4   :  { %292 = vrot.lane.b32.xlu1 %v2431_v11, %s2774_s15 }
 0x236   :  { %v293_v12 = vpop.permute.xlu1 %292 }
 0x237   :  { %v2926_v13 = vmul.f32 %v293_v12, %v276_v5 }
 0x239   :  { %300 = vrot.lane.b32.xlu2 %v2926_v13, %s2786_s21  ;;  %297 = vrot.lane.b32.xlu1 %v2926_v13, %s2787_s22 }
 0x293   :  { %v301_v14 = vpop.permute.xlu2 %300 }
 0x2ab   :  { %v298_v15 = vpop.permute.xlu1 %297 }
 0x2ac   :  { %v304_v16 = vsel %vm303_vm12, %v298_v15, %v301_v14 }
 0x2ad   :  { %v334_v17 = vpack.c.bf16 %v304_v16, %v304_v16 }
 0x2af   :  { %2273 = vmatmul.msk.bf16.vlgmr.msra.gmra.mxu2 %vm241_vm13, %v334_v17 }
 0x2b0   :  { %1006 = vmatpush.bf16.msra.mxu2 %v2862_v2 }
 0x2b4   :  { %1007 = vmatpush.bf16.msra.mxu2 %v2865_v3 }
 0x332   :  { %v347_v18 = vpop.f32.mrf.mxu2 }
 0x333   :  { %v352_v19 = vrot.slane %v347_v18, 7 }
 0x335   :  { %v354_v21 = vadd.f32 %v352_v19, %v2894_v36 }
 0x337   :  { %2432 = vtanh.f32 %v354_v21  ;;  %v2274_v24 = vmul.f32 -1.442695, %v354_v21 }
 0x339   :  { %2434 = vpow2.f32 %v2274_v24 }
 0x33a   :  { %v349_v22 = vpop.f32.mrf.mxu2 }
 0x33d   :  { %v2433_v23 = vpop.eup %2432 }
 0x33e   :  { %380 = vrot.lane.b32.xlu2 %v2433_v23, %s2785_s4 }
 0x33f   :  { %v2435_v25 = vpop.eup %2434 }
 0x340   :  { %v358_v26 = vadd.f32 1.0, %v2435_v25 }
 0x342   :  { %2436 = vrcp.f32 %v358_v26  ;;  %v370_v3 = vand.u32 2147483648, %v358_v26  ;;  %vm364_vm15 = vweird.f32 %v358_v26  ;;  %v368_v31 = vand.u32 2147483647, %v358_v26 }
 0x344   :  { %v371_v33 = vor.u32 1.1754944e-38, %v370_v3  ;;  %vm369_vm9 = vcmp.eq.f32.partialorder %v368_v31, 8.507059e+37 }
 0x348   :  { %v2437_v27 = vpop.eup %2436 }
 0x349   :  { %v360_v28 = vmul.f32 %v2437_v27, %v358_v26  ;;  %vm365_vm14 = vweird.f32 %v2437_v27 }
 0x34a   :  { %vm366_vm8 = vmor %vm364_vm15, %vm365_vm14 }
 0x34b   :  { %v361_v29 = vsub.f32 1.0, %v360_v28 }
 0x34d   :  { %v362_v2 = vmul.f32 %v2437_v27, %v361_v29 }
 0x34f   :  { %v363_v30 = vadd.f32 %v2437_v27, %v362_v2 }
 0x351   :  { %v367_v32 = vsel %vm366_vm8, %v2437_v27, %v363_v30 }
 0x352   :  { %v372_v35 = vsel %vm369_vm9, %v371_v33, %v367_v32 }
 0x353   :  { %v378_v38 = vmul.f32 %v376_v37, %v372_v35 }
 0x398   :  { %v381_v34 = vpop.permute.xlu2 %380 }
 0x399   :  { %v383_v36 = vmul.f32 %v381_v34, %v372_v35 }
 0x39b   :  { %385 = vrot.lane.b32.xlu0 %v383_v36, %s2774_s15 }
 0x40d   :  { %v386_v39 = vpop.permute.xlu0 %385 }
 0x40e   :  { %v388_v41 = vadd.f32 %v386_v39, %v378_v38 }
 0x410   :  { %2438 = vtanh.f32 %v388_v41  ;;  %v490_v19 = vrot.slane %v388_v41, 7 }
 0x416   :  { %v2439_v42 = vpop.eup %2438 }
 0x417   :  { %391 = vrot.lane.b32.xlu1 %v2439_v42, %s2774_s15 }
 0x489   :  { %v392_v44 = vpop.permute.xlu1 %391 }
 0x48a   :  { %v394_v45 = vmul.f32 %v392_v44, %v372_v35 }
 0x48c   :  { %403 = vst [vmem:[#allocation1] sm:$0xff] %v394_v45  ;;  %399 = vrot.lane.b32.xlu0 %v394_v45, %s2786_s21  ;;  %396 = vrot.lane.b32.xlu2 %v394_v45, %s2787_s22 }
 0x493   :  { %v2942_v46 = vld [vmem:[#allocation1 + $0x1] ss:$9 sm:$0xff] }
 0x494   :  { %v2944_v49 = vld [vmem:[#allocation1 + $0x2] ss:$9 sm:$0xff] }
 0x495   :  { %418 = vst [vmem:[#allocation1] sm:$0xff] %v394_v45 }
 0x49c   :  { %v2952_v27 = vld [vmem:[#allocation1 + $0x1] ss:$9 sm:$0xff] }
 0x49d   :  { %v2954_v28 = vld [vmem:[#allocation1 + $0x2] ss:$9 sm:$0xff] }
 0x4e6   :  { %v397_v50 = vpop.permute.xlu2 %396 }
 0x4fe   :  { %v400_v53 = vpop.permute.xlu0 %399 }
 0x4ff   :  { %v402_v54 = vsel %vm303_vm12, %v397_v50, %v400_v53 }
 0x500   :  { %v441_v55 = vpack.c.bf16 %v402_v54, %v402_v54 }
 0x502   :  { %v445_v56 = vshll.u32 %v441_v55, 16  ;;  %v443_v57 = vshrl.u32 %v441_v55, 16 }
 0x504   :  { %v447_v58 = vrot.slane %v445_v56, 1 }
 0x506   :  { %v448_v59 = vor.u32 %v447_v58, %v443_v57 }
 0x508   :  { %2275 = vmatmul.msk.bf16.vlgmr.msra.gmra.mxu3 %vm241_vm13, %v448_v59 }
 0x58b   :  { %v461_v60 = vpop.f32.mrf.mxu3 }
 0x58c   :  { %v466_v61 = vrot.slane %v461_v60, 6 }
 0x58e   :  { %v468_v62 = vadd.f32 %v466_v61, %v2899_v40 }
 0x590   :  { %2440 = vtanh.f32 %v468_v62  ;;  %v2276_v1 = vmul.f32 -1.442695, %v468_v62 }
 0x592   :  { %2442 = vpow2.f32 %v2276_v1 }
 0x593   :  { %v463_v63 = vpop.f32.mrf.mxu3 }
 0x596   :  { %v2441_v0 = vpop.eup %2440 }
 0x597   :  { %494 = vrot.lane.b32.xlu1 %v2441_v0, %s2785_s4 }
 0x598   :  { %v2443_v4 = vpop.eup %2442 }
 0x599   :  { %v472_v5 = vadd.f32 1.0, %v2443_v4 }
 0x59b   :  { %2444 = vrcp.f32 %v472_v5  ;;  %v484_v12 = vand.u32 2147483648, %v472_v5  ;;  %vm478_vm11 = vweird.f32 %v472_v5  ;;  %v482_v14 = vand.u32 2147483647, %v472_v5 }
 0x59d   :  { %v485_v15 = vor.u32 1.1754944e-38, %v484_v12  ;;  %vm483_vm15 = vcmp.eq.f32.partialorder %v482_v14, 8.507059e+37 }
 0x5a1   :  { %v2445_v7 = vpop.eup %2444 }
 0x5a2   :  { %v474_v8 = vmul.f32 %v2445_v7, %v472_v5  ;;  %vm479_vm10 = vweird.f32 %v2445_v7 }
 0x5a3   :  { %vm480_vm14 = vmor %vm478_vm11, %vm479_vm10 }
 0x5a4   :  { %v475_v9 = vsub.f32 1.0, %v474_v8 }
 0x5a6   :  { %v476_v10 = vmul.f32 %v2445_v7, %v475_v9 }
 0x5a8   :  { %v477_v11 = vadd.f32 %v2445_v7, %v476_v10 }
 0x5aa   :  { %v481_v40 = vsel %vm480_vm14, %v2445_v7, %v477_v11 }
 0x5ab   :  { %v486_v17 = vsel %vm483_vm15, %v485_v15, %v481_v40 }
 0x5ac   :  { %v492_v21 = vmul.f32 %v490_v19, %v486_v17 }
 0x609   :  { %v495_v16 = vpop.permute.xlu1 %494 }
 0x60a   :  { %v497_v18 = vmul.f32 %v495_v16, %v486_v17 }
 0x60c   :  { %499 = vrot.lane.b32.xlu2 %v497_v18, %s2774_s15 }
 0x666   :  { %v500_v22 = vpop.permute.xlu2 %499 }
 0x667   :  { %v502_v23 = vadd.f32 %v500_v22, %v492_v21 }
 0x669   :  { %2446 = vtanh.f32 %v502_v23  ;;  %v598_v61 = vrot.slane %v502_v23, 7 }
 0x66f   :  { %v2447_v24 = vpop.eup %2446 }
 0x670   :  { %505 = vrot.lane.b32.xlu0 %v2447_v24, %s2774_s15 }
 0x6e2   :  { %v506_v25 = vpop.permute.xlu0 %505 }
 0x6e3   :  { %v508_v26 = vmul.f32 %v506_v25, %v486_v17 }
 0x6e5   :  { %517 = vst [vmem:[#allocation1] sm:$0xff] %v508_v26  ;;  %513 = vrot.lane.b32.xlu2 %v508_v26, %s2786_s21  ;;  %510 = vrot.lane.b32.xlu1 %v508_v26, %s2787_s22 }
 0x6ec   :  { %v2958_v29 = vld [vmem:[#allocation1 + $0x2] ss:$9 sm:$0xff] }
 0x6ed   :  { %v2960_v2 = vld [vmem:[#allocation1 + $0x3] ss:$9 sm:$0xff] }
 0x6ee   :  { %532 = vst [vmem:[#allocation1] sm:$0xff] %v508_v26 }
 0x6f5   :  { %v2968_v7 = vld [vmem:[#allocation1 + $0x2] ss:$9 sm:$0xff] }
 0x6f6   :  { %v2970_v8 = vld [vmem:[#allocation1 + $0x3] ss:$9 sm:$0xff] }
 0x73f   :  { %v514_v30 = vpop.permute.xlu2 %513 }
 0x757   :  { %v511_v3 = vpop.permute.xlu1 %510 }
 0x758   :  { %v516_v31 = vsel %vm303_vm12, %v511_v3, %v514_v30 }
 0x759   :  { %v554_v32 = vpack.c.bf16 %v516_v31, %v516_v31 }
 0x75b   :  { %v556_v33 = vrot.slane %v554_v32, 1 }
 0x75d   :  { %2277 = vmatmul.msk.bf16.vlgmr.msrb.gmra.mxu1 %vm241_vm13, %v556_v33 }
 0x7da   :  { %v569_v34 = vpop.f32.mrf.mxu1 }
 0x7db   :  { %v574_v35 = vrot.slane %v569_v34, 5 }
 0x7dd   :  { %v576_v36 = vadd.f32 %v574_v35, %v2904_v43 }
 0x7df   :  { %2448 = vtanh.f32 %v576_v36  ;;  %v2278_v39 = vmul.f32 -1.442695, %v576_v36 }
 0x7e1   :  { %2450 = vpow2.f32 %v2278_v39 }
 0x7e2   :  { %v571_v37 = vpop.f32.mrf.mxu1 }
 0x7e5   :  { %v2449_v38 = vpop.eup %2448 }
 0x7e6   :  { %602 = vrot.lane.b32.xlu0 %v2449_v38, %s2785_s4 }
 0x7e7   :  { %v2451_v41 = vpop.eup %2450 }
 0x7e8   :  { %v580_v42 = vadd.f32 1.0, %v2451_v41 }
 0x7ea   :  { %2452 = vrcp.f32 %v580_v42  ;;  %v592_v55 = vand.u32 2147483648, %v580_v42  ;;  %vm586_vm9 = vweird.f32 %v580_v42  ;;  %v590_v56 = vand.u32 2147483647, %v580_v42 }
 0x7ec   :  { %v593_v57 = vor.u32 1.1754944e-38, %v592_v55  ;;  %vm591_vm11 = vcmp.eq.f32.partialorder %v590_v56, 8.507059e+37 }
 0x7f0   :  { %v2453_v44 = vpop.eup %2452 }
 0x7f1   :  { %v582_v45 = vmul.f32 %v2453_v44, %v580_v42  ;;  %vm587_vm8 = vweird.f32 %v2453_v44 }
 0x7f2   :  { %vm588_vm10 = vmor %vm586_vm9, %vm587_vm8 }
 0x7f3   :  { %v583_v50 = vsub.f32 1.0, %v582_v45 }
 0x7f5   :  { %v584_v53 = vmul.f32 %v2453_v44, %v583_v50 }
 0x7f7   :  { %v585_v54 = vadd.f32 %v2453_v44, %v584_v53 }
 0x7f9   :  { %v589_v43 = vsel %vm588_vm10, %v2453_v44, %v585_v54 }
 0x7fa   :  { %v594_v59 = vsel %vm591_vm11, %v593_v57, %v589_v43 }
 0x7fb   :  { %v600_v62 = vmul.f32 %v598_v61, %v594_v59 }
 0x858   :  { %v603_v58 = vpop.permute.xlu0 %602 }
 0x859   :  { %v605_v60 = vmul.f32 %v603_v58, %v594_v59 }
 0x85b   :  { %607 = vrot.lane.b32.xlu1 %v605_v60, %s2774_s15 }
 0x8cd   :  { %v608_v63 = vpop.permute.xlu1 %607 }
 0x8ce   :  { %v610_v0 = vadd.f32 %v608_v63, %v600_v62 }
 0x8d0   :  { %2454 = vtanh.f32 %v610_v0  ;;  %v711_v44 = vrot.slane %v610_v0, 7 }
 0x8d6   :  { %v2455_v1 = vpop.eup %2454 }
 0x8d7   :  { %613 = vrot.lane.b32.xlu2 %v2455_v1, %s2774_s15 }
 0x931   :  { %v614_v4 = vpop.permute.xlu2 %613 }
 0x932   :  { %v616_v5 = vmul.f32 %v614_v4, %v594_v59 }
 0x934   :  { %625 = vst [vmem:[#allocation1] sm:$0xff] %v616_v5  ;;  %621 = vrot.lane.b32.xlu1 %v616_v5, %s2786_s21  ;;  %618 = vrot.lane.b32.xlu0 %v616_v5, %s2787_s22 }
 0x93b   :  { %v2974_v9 = vld [vmem:[#allocation1 + $0x3] ss:$9 sm:$0xff] }
 0x93c   :  { %v2976_v10 = vld [vmem:[#allocation1 + $0x4] ss:$9 sm:$0xff] }
 0x93d   :  { %640 = vst [vmem:[#allocation1] sm:$0xff] %v616_v5 }
 0x944   :  { %v2984_v43 = vld [vmem:[#allocation1 + $0x3] ss:$9 sm:$0xff] }
 0x945   :  { %v2986_v57 = vld [vmem:[#allocation1 + $0x4] ss:$9 sm:$0xff] }
 0x9a6   :  { %v622_v11 = vpop.permute.xlu1 %621  ;;  %v619_v12 = vpop.permute.xlu0 %618 }
 0x9a7   :  { %v624_v14 = vsel %vm303_vm12, %v619_v12, %v622_v11 }
 0x9a8   :  { %v661_v40 = vpack.c.bf16 %v624_v14, %v624_v14 }
 0x9aa   :  { %v663_v15 = vshrl.u32 %v661_v40, 16  ;;  %v666_v16 = vshll.u32 %v661_v40, 16 }
 0x9ac   :  { %v665_v17 = vrot.slane %v663_v15, 1  ;;  %v668_v18 = vrot.slane %v666_v16, 2 }
 0x9ae   :  { %v669_v19 = vor.u32 %v668_v18, %v665_v17 }
 0x9b0   :  { %2279 = vmatmul.msk.bf16.vlgmr.msrb.gmra.mxu2 %vm241_vm13, %v669_v19 }
 0xa33   :  { %v682_v21 = vpop.f32.mrf.mxu2 }
 0xa34   :  { %v687_v22 = vrot.slane %v682_v21, 4 }
 0xa36   :  { %v689_v23 = vadd.f32 %v687_v22, %v2910_v47 }
 0xa38   :  { %2456 = vtanh.f32 %v689_v23  ;;  %v2280_v26 = vmul.f32 -1.442695, %v689_v23 }
 0xa3a   :  { %2458 = vpow2.f32 %v2280_v26 }
 0xa3b   :  { %v684_v24 = vpop.f32.mrf.mxu2 }
 0xa3e   :  { %v2457_v25 = vpop.eup %2456 }
 0xa3f   :  { %715 = vrot.lane.b32.xlu2 %v2457_v25, %s2785_s4 }
 0xa40   :  { %v2459_v30 = vpop.eup %2458 }
 0xa41   :  { %v693_v3 = vadd.f32 1.0, %v2459_v30 }
 0xa43   :  { %2460 = vrcp.f32 %v693_v3  ;;  %v705_v36 = vand.u32 2147483648, %v693_v3  ;;  %vm699_vm15 = vweird.f32 %v693_v3  ;;  %v703_v37 = vand.u32 2147483647, %v693_v3 }
 0xa45   :  { %v706_v38 = vor.u32 1.1754944e-38, %v705_v36  ;;  %vm704_vm9 = vcmp.eq.f32.partialorder %v703_v37, 8.507059e+37  ;;  %v2401_v36 = vld [vmem:[#allocation10 + $0x78] sm:$0xff]  ;;  %v2392_v37 = vld [vmem:[#allocation10 + $0x30] sm:$0xff] }
 0xa46   :  { %1279 = vmatpush.bf16.msrb.mxu0 %v2401_v36 }
 0xa49   :  { %v2461_v31 = vpop.eup %2460 }
 0xa4a   :  { %v695_v32 = vmul.f32 %v2461_v31, %v693_v3  ;;  %vm700_vm14 = vweird.f32 %v2461_v31 }
 0xa4b   :  { %vm701_vm8 = vmor %vm699_vm15, %vm700_vm14 }
 0xa4c   :  { %v696_v33 = vsub.f32 1.0, %v695_v32 }
 0xa4e   :  { %v697_v34 = vmul.f32 %v2461_v31, %v696_v33 }
 0xa50   :  { %v698_v35 = vadd.f32 %v2461_v31, %v697_v34 }
 0xa52   :  { %v702_v47 = vsel %vm701_vm8, %v2461_v31, %v698_v35  ;;  %v2393_v35 = vld [vmem:[#allocation10 + $0x38] sm:$0xff] }
 0xa53   :  { %v707_v41 = vsel %vm704_vm9, %v706_v38, %v702_v47  ;;  %1265 = vmatpush.bf16.msra.mxu3 %v2393_v35  ;;  %v2391_v47 = vld [vmem:[#allocation10 + $0x28] sm:$0xff] }
 0xa54   :  { %v713_v45 = vmul.f32 %v711_v44, %v707_v41 }
 0xa57   :  { %1266 = vmatpush.bf16.msra.mxu3 %v2392_v37 }
 0xa5b   :  { %1267 = vmatpush.bf16.msra.mxu3 %v2391_v47 }
 0xa99   :  { %v716_v39 = vpop.permute.xlu2 %715 }
 0xa9a   :  { %v718_v42 = vmul.f32 %v716_v39, %v707_v41 }
 0xa9c   :  { %720 = vrot.lane.b32.xlu0 %v718_v42, %s2774_s15 }
 0xb0e   :  { %v721_v50 = vpop.permute.xlu0 %720 }
 0xb0f   :  { %v723_v53 = vadd.f32 %v721_v50, %v713_v45  ;;  %v2390_v50 = vld [vmem:[#allocation10 + $0x20] sm:$0xff] }
 0xb10   :  { %1268 = vmatpush.bf16.msra.mxu3 %v2390_v50 }
 0xb11   :  { %2462 = vtanh.f32 %v723_v53  ;;  %v818_v3 = vrot.slane %v723_v53, 7  ;;  %v2400_v53 = vld [vmem:[#allocation10 + $0x70] sm:$0xff] }
 0xb12   :  { %1280 = vmatpush.bf16.msrb.mxu0 %v2400_v53 }
 0xb17   :  { %v2463_v54 = vpop.eup %2462 }
 0xb18   :  { %726 = vrot.lane.b32.xlu1 %v2463_v54, %s2774_s15  ;;  %v2389_v54 = vld [vmem:[#allocation10 + $0x18] sm:$0xff] }
 0xb19   :  { %1269 = vmatpush.bf16.msra.mxu3 %v2389_v54 }
 0xb8a   :  { %v727_v55 = vpop.permute.xlu1 %726 }
 0xb8b   :  { %v729_v56 = vmul.f32 %v727_v55, %v707_v41  ;;  %v2399_v55 = vld [vmem:[#allocation10 + $0x68] sm:$0xff] }
 0xb8c   :  { %1281 = vmatpush.bf16.msrb.mxu0 %v2399_v55 }
 0xb8d   :  { %738 = vst [vmem:[#allocation1] sm:$0xff] %v729_v56  ;;  %734 = vrot.lane.b32.xlu0 %v729_v56, %s2786_s21  ;;  %731 = vrot.lane.b32.xlu2 %v729_v56, %s2787_s22 }
 0xb94   :  { %v2990_v58 = vld [vmem:[#allocation1 + $0x4] ss:$9 sm:$0xff] }
 0xb95   :  { %v2992_v59 = vld [vmem:[#allocation1 + $0x5] ss:$9 sm:$0xff] }
 0xb96   :  { %753 = vst [vmem:[#allocation1] sm:$0xff] %v729_v56  ;;  %v2388_v56 = vld [vmem:[#allocation10 + $0x10] sm:$0xff] }
 0xb97   :  { %1270 = vmatpush.bf16.msra.mxu3 %v2388_v56 }
 0xb9d   :  { %v3003_v41 = vld [vmem:[#allocation1 + $0x4] ss:$9 sm:$0xff] }
 0xb9e   :  { %v3005_v42 = vld [vmem:[#allocation1 + $0x5] ss:$9 sm:$0xff] }
 0xbe7   :  { %v732_v60 = vpop.permute.xlu2 %731 }
 0xbff   :  { %v735_v61 = vpop.permute.xlu0 %734 }
 0xc00   :  { %v737_v62 = vsel %vm303_vm12, %v732_v60, %v735_v61  ;;  %v2398_v60 = vld [vmem:[#allocation10 + $0x60] sm:$0xff]  ;;  %v2387_v61 = vld [vmem:[#allocation10 + $0x8] sm:$0xff] }
 0xc01   :  { %v774_v63 = vpack.c.bf16 %v737_v62, %v737_v62  ;;  %1282 = vmatpush.bf16.msrb.mxu0 %v2398_v60  ;;  %v2397_v62 = vld [vmem:[#allocation10 + $0x58] sm:$0xff]  ;;  %1271 = vmatpush.bf16.msra.mxu3 %v2387_v61 }
 0xc03   :  { %v776_v0 = vrot.slane %v774_v63, 2  ;;  %v2386_v63 = vld [vmem:[#allocation10] sm:$0xff] }
 0xc05   :  { %2281 = vmatmul.msk.bf16.vlgmr.msrb.gmra.mxu3 %vm241_vm13, %v776_v0  ;;  %1283 = vmatpush.bf16.msrb.mxu0 %v2397_v62  ;;  %v2396_v0 = vld [vmem:[#allocation10 + $0x50] sm:$0xff] }
 0xc06   :  { %1272 = vmatpush.bf16.msra.mxu3 %v2386_v63 }
 0xc09   :  { %1284 = vmatpush.bf16.msrb.mxu0 %v2396_v0 }
 0xc88   :  { %v789_v1 = vpop.f32.mrf.mxu3 }
 0xc89   :  { %v794_v4 = vrot.slane %v789_v1, 3  ;;  %v1127_v1 = vld [vmem:[#allocation5] sm:$0xff] }
 0xc8b   :  { %v796_v5 = vadd.f32 %v794_v4, %v2913_v48  ;;  %v1129_v4 = vld [vmem:[#allocation5 + $0x10] sm:$0xff] }
 0xc8d   :  { %2464 = vtanh.f32 %v796_v5  ;;  %v2282_v14 = vmul.f32 -1.442695, %v796_v5  ;;  %v1131_v5 = vpack.c.bf16 %v1129_v4, %v1127_v1 }
 0xc8f   :  { %2466 = vpow2.f32 %v2282_v14  ;;  %1273 = vmatmul.bf16.vlgmr.msra.gmra.mxu3 %v1131_v5  ;;  %v1128_v14 = vld [vmem:[#allocation5 + $0x8] sm:$0xff] }
 0xc90   :  { %v791_v11 = vpop.f32.mrf.mxu3 }
 0xc91   :  { %v2395_v11 = vld [vmem:[#allocation10 + $0x48] sm:$0xff] }
 0xc92   :  { %1285 = vmatpush.bf16.msrb.mxu0 %v2395_v11 }
 0xc93   :  { %v2465_v12 = vpop.eup %2464 }
 0xc94   :  { %822 = vrot.lane.b32.xlu1 %v2465_v12, %s2785_s4  ;;  %v2394_v12 = vld [vmem:[#allocation10 + $0x40] sm:$0xff] }
 0xc95   :  { %v2467_v40 = vpop.eup %2466 }
 0xc96   :  { %v800_v15 = vadd.f32 1.0, %v2467_v40  ;;  %1286 = vmatpush.bf16.msrb.mxu0 %v2394_v12  ;;  %v1130_v40 = vld [vmem:[#allocation5 + $0x18] sm:$0xff] }
 0xc98   :  { %2468 = vrcp.f32 %v800_v15  ;;  %v812_v22 = vand.u32 2147483648, %v800_v15  ;;  %vm806_vm11 = vweird.f32 %v800_v15  ;;  %v810_v23 = vand.u32 2147483647, %v800_v15 }
 0xc9a   :  { %v813_v24 = vor.u32 1.1754944e-38, %v812_v22  ;;  %vm811_vm15 = vcmp.eq.f32.partialorder %v810_v23, 8.507059e+37 }
 0xc9e   :  { %v2469_v16 = vpop.eup %2468 }
 0xc9f   :  { %v802_v17 = vmul.f32 %v2469_v16, %v800_v15  ;;  %vm807_vm10 = vweird.f32 %v2469_v16  ;;  %v1132_v15 = vpack.c.bf16 %v1130_v40, %v1128_v14 }
 0xca0   :  { %vm808_vm14 = vmor %vm806_vm11, %vm807_vm10 }
 0xca1   :  { %v803_v18 = vsub.f32 1.0, %v802_v17  ;;  %1287 = vmatmul.bf16.vlgmr.msrb.gmra.mxu0 %v1132_v15  ;;  %v3016_v17 = vld [vmem:[#allocation11] sm:$0xff] }
 0xca3   :  { %v804_v19 = vmul.f32 %v2469_v16, %v803_v18 }
 0xca5   :  { %v805_v21 = vadd.f32 %v2469_v16, %v804_v19 }
 0xca7   :  { %v809_v48 = vsel %vm808_vm14, %v2469_v16, %v805_v21  ;;  %v3013_v16 = vld [vmem:[#allocation11 + $0x8] sm:$0xff] }
 0xca8   :  { %v814_v26 = vsel %vm811_vm15, %v813_v24, %v809_v48  ;;  %1325 = vmatpush.bf16.msrb.mxu1 %v3013_v16  ;;  %1414 = vmatpush.bf16.msrb.mxu2 %v3013_v16 }
 0xca9   :  { %v820_v31 = vmul.f32 %v818_v3, %v814_v26  ;;  %1746 = vmatpush.bf16.msrb.mxu3 %v3013_v16  ;;  %1852 = vmatpush.bf16.msra.mxu0 %v3013_v16 }
 0xcac   :  { %1326 = vmatpush.bf16.msrb.mxu1 %v3016_v17  ;;  %1415 = vmatpush.bf16.msrb.mxu2 %v3016_v17 }
 0xcad   :  { %1747 = vmatpush.bf16.msrb.mxu3 %v3016_v17  ;;  %1853 = vmatpush.bf16.msra.mxu0 %v3016_v17 }
 0xd06   :  { %v823_v25 = vpop.permute.xlu1 %822 }
 0xd07   :  { %v825_v30 = vmul.f32 %v823_v25, %v814_v26 }
 0xd09   :  { %827 = vrot.lane.b32.xlu2 %v825_v30, %s2774_s15 }
 0xd12   :  { %v1274_v30 = vpop.f32.mrf.mxu3 }
 0xd1e   :  { %v1288_v3 = vpop.f32.mrf.mxu0 }
 0xd26   :  { %v1290_v37 = vpop.f32.mrf.mxu0 }
 0xd63   :  { %v828_v32 = vpop.permute.xlu2 %827 }
 0xd64   :  { %v2999_v33 = vadd.f32 %v828_v32, %v820_v31  ;;  %v2423_v31 = vld [vmem:[%s3469_s7] ss:$0 sm:$0xff] }
 0xd65   :  { %v1275_v32 = vadd.f32 %v2423_v31, %v1274_v30 }
 0xd66   :  { %2470 = vtanh.f32 %v2999_v33 }
 0xd67   :  { %v1289_v35 = vadd.f32 %v1288_v3, %v1275_v32 }
 0xd69   :  { %v1505_v54 = vrot.slane %v1289_v35, 3  ;;  %v1618_v56 = vrot.slane %v1289_v35, 1 }
 0xd6c   :  { %v2471_v34 = vpop.eup %2470 }
 0xd6d   :  { %833 = vrot.lane.b32.xlu0 %v2471_v34, %s2774_s15  ;;  %v1276_v34 = vpop.f32.mrf.mxu3 }
 0xd6e   :  { %v1277_v36 = vadd.f32 %v2423_v31, %v1276_v34 }
 0xd70   :  { %v1291_v47 = vadd.f32 %v1290_v37, %v1277_v36 }
 0xd72   :  { %v1303_v50 = vrot.slane %v1291_v47, 6  ;;  %v1400_v53 = vrot.slane %v1291_v47, 4  ;;  %v1506_v55 = vrot.slane %v1291_v47, 2  ;;  %v1619_v5 = vsel %vm547_vm3, %v1291_v47, %v1618_v56 }
 0xd74   :  { %v1507_v63 = vsel %vm433_vm4, %v1506_v55, %v1505_v54 }
 0xddf   :  { %v834_v38 = vpop.permute.xlu0 %833 }
 0xde0   :  { %v836_v39 = vmul.f32 %v834_v38, %v814_v26  ;;  %v1299_v38 = vrot.slane %v1291_v47, 7 }
 0xde2   :  { %845 = vst [vmem:[#allocation1] sm:$0xff] %v836_v39  ;;  %841 = vrot.lane.b32.xlu2 %v836_v39, %s2786_s21  ;;  %838 = vrot.lane.b32.xlu1 %v836_v39, %s2787_s22  ;;  %v1397_v60 = vsel %vm326_vm2, %v1299_v38, %v1289_v35  ;;  %v1503_v61 = vsel %vm433_vm4, %v1299_v38, %v1289_v35 }
 0xde3   :  { %v1616_v0 = vsel %vm547_vm3, %v1299_v38, %v1289_v35  ;;  %v3044_v4 = vsel %vm227_vm0, %v1503_v61, %v1507_v63  ;;  %v1723_v11 = vsel %vm655_vm5, %v1299_v38, %v1289_v35  ;;  %v1835_v40 = vsel %vm768_vm6, %v1299_v38, %v1289_v35 }
 0xde4   :  { %v3049_v12 = vsel %vm227_vm0, %v1616_v0, %v1619_v5  ;;  %v1300_v32 = vsel %vm220_vm1, %v1299_v38, %v1289_v35 }
 0xde9   :  { %v3009_v44 = vld [vmem:[#allocation1 + $0x5] ss:$9 sm:$0xff] }
 0xdea   :  { %v3011_v45 = vld [vmem:[#allocation1 + $0x6] ss:$9 sm:$0xff] }
 0xdeb   :  { %860 = vst [vmem:[#allocation1] sm:$0xff] %v836_v39  ;;  %v1302_v39 = vrot.slane %v1289_v35, 7 }
 0xded   :  { %v1725_v14 = vsel %vm655_vm5, %v1303_v50, %v1302_v39  ;;  %v1304_v34 = vsel %vm220_vm1, %v1303_v50, %v1302_v39 }
 0xdee   :  { %v1306_v36 = vsel %vm227_vm0, %v1300_v32, %v1304_v34 }
 0xe3c   :  { %v842_v18 = vpop.permute.xlu2 %841 }
 0xe54   :  { %v839_v19 = vpop.permute.xlu1 %838 }
 0xe55   :  { %v844_v21 = vsel %vm303_vm12, %v839_v19, %v842_v18  ;;  %v3055_v18 = vsel %vm227_vm0, %v1723_v11, %v1725_v14 }
 0xe56   :  { %v881_v22 = vpack.c.bf16 %v844_v21, %v844_v21  ;;  %v1941_v21 = vsel %vm875_vm7, %v1299_v38, %v1289_v35 }
 0xe58   :  { %v883_v23 = vshrl.u32 %v881_v22, 16  ;;  %v886_v48 = vshll.u32 %v881_v22, 16  ;;  %v1943_v22 = vsel %vm875_vm7, %v1506_v55, %v1505_v54 }
 0xe5a   :  { %v885_v24 = vrot.slane %v883_v23, 2  ;;  %v888_v25 = vrot.slane %v886_v48, 3  ;;  %v3063_v23 = vsel %vm227_vm0, %v1941_v21, %v1943_v22  ;;  %v3066_v48 = vsel %vm227_vm0, %v1289_v35, %v1618_v56 }
 0xe5c   :  { %v889_v26 = vor.u32 %v888_v25, %v885_v24  ;;  %v3069_v24 = vsel %vm227_vm0, %v1299_v38, %v1291_v47 }
 0xe5e   :  { %2283 = vmatmul.msk.bf16.vlgmr.msra.gmra.mxu1 %vm241_vm13, %v889_v26 }
 0xe5f   :  { %1527 = vmatpush.bf16.msra.mxu1 %v3013_v16 }
 0xe63   :  { %1528 = vmatpush.bf16.msra.mxu1 %v3016_v17 }
 0xe6e   :  { %1327 = vmatmul.bf16.vlgmr.msrb.gmra.mxu1 %v2784_v6  ;;  %v1399_v6 = vrot.slane %v1289_v35, 5 }
 0xe6f   :  { %1964 = vmatpush.bf16.msrb.mxu1 %v3013_v16 }
 0xe70   :  { %v1401_v62 = vsel %vm326_vm2, %v1400_v53, %v1399_v6  ;;  %v1837_v15 = vsel %vm768_vm6, %v1400_v53, %v1399_v6 }
 0xe71   :  { %v3041_v1 = vsel %vm227_vm0, %v1397_v60, %v1401_v62  ;;  %v3058_v19 = vsel %vm227_vm0, %v1835_v40, %v1837_v15 }
 0xe73   :  { %1965 = vmatpush.bf16.msrb.mxu1 %v3016_v17 }
 0xedb   :  { %v902_v25 = vpop.f32.mrf.mxu1 }
 0xedc   :  { %v907_v26 = vrot.slane %v902_v25, 2 }
 0xede   :  { %v909_v30 = vadd.f32 %v907_v26, %v2921_v52 }
 0xee0   :  { %2472 = vtanh.f32 %v909_v30  ;;  %v2284_v54 = vmul.f32 -1.442695, %v909_v30 }
 0xee3   :  { %v904_v3 = vpop.f32.mrf.mxu1 }
 0xee6   :  { %v2473_v31 = vpop.eup %2472 }
 0xee7   :  { %935 = vrot.lane.b32.xlu0 %v2473_v31, %s2785_s4 }
 0xeeb   :  { %v1328_v37 = vpop.f32.mrf.mxu1 }
 0xeec   :  { %v1332_v6 = vadd.f32 %v1328_v37, %v1306_v36 }
 0xeee   :  { %2474 = vtanh.f32 %v1332_v6  ;;  %v2360_v56 = vmul.f32 -1.442695, %v1332_v6 }
 0xeef   :  { %2476 = vpow2.f32 %v2284_v54 }
 0xef3   :  { %v1330_v47 = vpop.f32.mrf.mxu1 }
 0xef4   :  { %v2475_v53 = vpop.eup %2474  ;;  %v931_v47 = vrot.slane %v2999_v33, 7 }
 0xef5   :  { %1355 = vrot.lane.b32.xlu1 %v2475_v53, %s2785_s4  ;;  %v2477_v52 = vpop.eup %2476 }
 0xef6   :  { %v913_v55 = vadd.f32 1.0, %v2477_v52 }
 0xef8   :  { %2478 = vrcp.f32 %v913_v55  ;;  %v925_v0 = vand.u32 2147483648, %v913_v55  ;;  %vm919_vm1 = vweird.f32 %v913_v55  ;;  %v923_v5 = vand.u32 2147483647, %v913_v55 }
 0xef9   :  { %2480 = vpow2.f32 %v2360_v56 }
 0xefa   :  { %v926_v40 = vor.u32 1.1754944e-38, %v925_v0  ;;  %vm924_vm3 = vcmp.eq.f32.partialorder %v923_v5, 8.507059e+37 }
 0xefe   :  { %v2479_v60 = vpop.eup %2478 }
 0xeff   :  { %v2481_v35 = vpop.eup %2480  ;;  %v915_v38 = vmul.f32 %v2479_v60, %v913_v55  ;;  %vm920_vm0 = vweird.f32 %v2479_v60 }
 0xf00   :  { %v1336_v39 = vadd.f32 1.0, %v2481_v35  ;;  %vm921_vm2 = vmor %vm919_vm1, %vm920_vm0 }
 0xf01   :  { %v916_v50 = vsub.f32 1.0, %v915_v38 }
 0xf02   :  { %2482 = vrcp.f32 %v1336_v39  ;;  %v1348_v3 = vand.u32 2147483648, %v1336_v39  ;;  %vm1342_vm5 = vweird.f32 %v1336_v39  ;;  %v1346_v31 = vand.u32 2147483647, %v1336_v39 }
 0xf03   :  { %v917_v61 = vmul.f32 %v2479_v60, %v916_v50  ;;  %v3088_v50 = vld [vmem:[#allocation1 + $0x5] ss:$9 sm:$0xff] }
 0xf04   :  { %v1349_v34 = vor.u32 1.1754944e-38, %v1348_v3  ;;  %vm1347_vm7 = vcmp.eq.f32.partialorder %v1346_v31, 8.507059e+37 }
 0xf05   :  { %v918_v63 = vadd.f32 %v2479_v60, %v917_v61  ;;  %v3090_v61 = vld [vmem:[#allocation1 + $0x6] ss:$9 sm:$0xff] }
 0xf07   :  { %v922_v14 = vsel %vm921_vm2, %v2479_v60, %v918_v63 }
 0xf08   :  { %v2483_v62 = vpop.eup %2482  ;;  %v927_v22 = vsel %vm924_vm3, %v926_v40, %v922_v14 }
 0xf09   :  { %v1338_v11 = vmul.f32 %v2483_v62, %v1336_v39  ;;  %vm1343_vm4 = vweird.f32 %v2483_v62  ;;  %v933_v53 = vmul.f32 %v931_v47, %v927_v22 }
 0xf0a   :  { %vm1344_vm6 = vmor %vm1342_vm5, %vm1343_vm4 }
 0xf0b   :  { %v1339_v15 = vsub.f32 1.0, %v1338_v11 }
 0xf0d   :  { %v1340_v26 = vmul.f32 %v2483_v62, %v1339_v15 }
 0xf0f   :  { %v1341_v30 = vadd.f32 %v2483_v62, %v1340_v26 }
 0xf11   :  { %v1345_v32 = vsel %vm1344_vm6, %v2483_v62, %v1341_v30 }
 0xf12   :  { %v1350_v37 = vsel %vm1347_vm7, %v1349_v34, %v1345_v32 }
 0xf13   :  { %v1353_v56 = vmul.f32 0.0, %v1350_v37 }
 0xf59   :  { %v936_v21 = vpop.permute.xlu0 %935 }
 0xf5a   :  { %v938_v25 = vmul.f32 %v936_v21, %v927_v22 }
 0xf5c   :  { %940 = vrot.lane.b32.xlu2 %v938_v25, %s2774_s15 }
 0xf67   :  { %v1356_v36 = vpop.permute.xlu1 %1355 }
 0xf68   :  { %v1358_v6 = vmul.f32 %v1356_v36, %v1350_v37 }
 0xf6a   :  { %1360 = vrot.lane.b32.xlu0 %v1358_v6, %s2774_s15 }
 0xfb6   :  { %v941_v54 = vpop.permute.xlu2 %940 }
 0xfb7   :  { %v3080_v52 = vadd.f32 %v941_v54, %v933_v53 }
 0xfb9   :  { %2484 = vtanh.f32 %v3080_v52 }
 0xfbf   :  { %v2485_v55 = vpop.eup %2484 }
 0xfc0   :  { %946 = vrot.lane.b32.xlu1 %v2485_v55, %s2774_s15 }
 0xfdc   :  { %v1361_v60 = vpop.permute.xlu0 %1360 }
 0xfdd   :  { %v3084_v35 = vadd.f32 %v1361_v60, %v1353_v56 }
 0xfdf   :  { %2486 = vtanh.f32 %v3084_v35 }
 0xfe5   :  { %v2487_v38 = vpop.eup %2486 }
 0xfe6   :  { %1366 = vrot.lane.b32.xlu2 %v2487_v38, %s2774_s15 }
0x1032   :  { %v947_v39 = vpop.permute.xlu1 %946 }
0x1033   :  { %v949_v33 = vmul.f32 %v947_v39, %v927_v22 }
0x1035   :  { %954 = vrot.lane.b32.xlu1 %v949_v33, %s2786_s21  ;;  %951 = vrot.lane.b32.xlu0 %v949_v33, %s2787_s22  ;;  %958 = vst [vmem:[#allocation1] sm:$0xff] %v949_v33 }
0x103c   :  { %v3094_v62 = vld [vmem:[#allocation1 + $0x6] ss:$9 sm:$0xff] }
0x103d   :  { %v3096_v63 = vld [vmem:[#allocation1 + $0x7] ss:$9 sm:$0xff] }
0x103e   :  { %973 = vst [vmem:[#allocation1] sm:$0xff] %v949_v33 }
0x1040   :  { %v1367_v0 = vpop.permute.xlu2 %1366 }
0x1041   :  { %v3098_v5 = vmul.f32 %v1367_v0, %v1350_v37 }
0x1043   :  { %1374 = vrot.lane.b32.xlu0 %v3098_v5, %s2786_s21  ;;  %1371 = vrot.lane.b32.xlu2 %v3098_v5, %s2787_s22 }
0x109d   :  { %v1372_v25 = vpop.permute.xlu2 %1371 }
0x10a7   :  { %v955_v11 = vpop.permute.xlu1 %954  ;;  %v952_v14 = vpop.permute.xlu0 %951 }
0x10a8   :  { %v957_v40 = vsel %vm303_vm12, %v952_v14, %v955_v11 }
0x10a9   :  { %v994_v15 = vpack.c.bf16 %v957_v40, %v957_v40 }
0x10ab   :  { %v996_v21 = vrot.slane %v994_v15, 3  ;;  %v1446_v15 = vrot.slane %v3084_v35, 7 }
0x10ad   :  { %2285 = vmatmul.msk.bf16.vlgmr.msra.gmra.mxu2 %vm241_vm13, %v996_v21 }
0x10ae   :  { %1634 = vmatpush.bf16.msra.mxu2 %v3013_v16 }
0x10b2   :  { %1635 = vmatpush.bf16.msra.mxu2 %v3016_v17 }
0x10b5   :  { %v1375_v22 = vpop.permute.xlu0 %1374 }
0x10b6   :  { %v1377_v26 = vsel %vm303_vm12, %v1372_v25, %v1375_v22 }
0x10b7   :  { %v1404_v30 = vpack.c.bf16 %v1377_v26, %v1377_v26 }
0x10bd   :  { %2361 = vmatmul.msk.bf16.vlgmr.msrb.gmra.mxu2 %vm241_vm13, %v1404_v30 }
0x10be   :  { %2071 = vmatpush.bf16.msrb.mxu2 %v3013_v16 }
0x10c2   :  { %2072 = vmatpush.bf16.msrb.mxu2 %v3016_v17 }
0x1130   :  { %v1009_v3 = vpop.f32.mrf.mxu2 }
0x1131   :  { %v1014_v31 = vrot.slane %v1009_v3, 1 }
0x1133   :  { %v3113_v32 = vadd.f32 %v1014_v31, %v2885_v20  ;;  %v3116_v34 = vadd.f32 %v1014_v31, %v2918_v51 }
0x1138   :  { %v1011_v36 = vpop.f32.mrf.mxu2 }
0x1140   :  { %v1417_v37 = vpop.f32.mrf.mxu2 }
0x1141   :  { %v1422_v6 = vrot.slane %v1417_v37, 7 }
0x1143   :  { %v1424_v47 = vadd.f32 %v1422_v6, %v3041_v1 }
0x1145   :  { %2488 = vtanh.f32 %v1424_v47  ;;  %v2362_v16 = vmul.f32 -1.442695, %v1424_v47 }
0x1147   :  { %2490 = vpow2.f32 %v2362_v16 }
0x1148   :  { %v1419_v53 = vpop.f32.mrf.mxu2 }
0x114b   :  { %v2489_v54 = vpop.eup %2488 }
0x114c   :  { %1450 = vrot.lane.b32.xlu1 %v2489_v54, %s2785_s4 }
0x114d   :  { %v2491_v17 = vpop.eup %2490 }
0x114e   :  { %v1428_v55 = vadd.f32 1.0, %v2491_v17 }
0x1150   :  { %2492 = vrcp.f32 %v1428_v55  ;;  %v1440_v39 = vand.u32 2147483648, %v1428_v55  ;;  %vm1434_vm9 = vweird.f32 %v1428_v55  ;;  %v1438_v33 = vand.u32 2147483647, %v1428_v55 }
0x1152   :  { %v1441_v0 = vor.u32 1.1754944e-38, %v1440_v39  ;;  %vm1439_vm11 = vcmp.eq.f32.partialorder %v1438_v33, 8.507059e+37 }
0x1156   :  { %v2493_v20 = vpop.eup %2492 }
0x1157   :  { %v1430_v56 = vmul.f32 %v2493_v20, %v1428_v55  ;;  %vm1435_vm8 = vweird.f32 %v2493_v20 }
0x1158   :  { %vm1436_vm10 = vmor %vm1434_vm9, %vm1435_vm8 }
0x1159   :  { %v1431_v60 = vsub.f32 1.0, %v1430_v56 }
0x115b   :  { %v1432_v51 = vmul.f32 %v2493_v20, %v1431_v60 }
0x115d   :  { %v1433_v38 = vadd.f32 %v2493_v20, %v1432_v51 }
0x115f   :  { %v1437_v1 = vsel %vm1436_vm10, %v2493_v20, %v1433_v38 }
0x1160   :  { %v1442_v14 = vsel %vm1439_vm11, %v1441_v0, %v1437_v1 }
0x1161   :  { %v1448_v21 = vmul.f32 %v1446_v15, %v1442_v14 }
0x11be   :  { %v1451_v11 = vpop.permute.xlu1 %1450 }
0x11bf   :  { %v1453_v40 = vmul.f32 %v1451_v11, %v1442_v14 }
0x11c1   :  { %1455 = vrot.lane.b32.xlu2 %v1453_v40, %s2774_s15 }
0x121b   :  { %v1456_v22 = vpop.permute.xlu2 %1455 }
0x121c   :  { %v1458_v25 = vadd.f32 %v1456_v22, %v1448_v21 }
0x121e   :  { %2494 = vtanh.f32 %v1458_v25 }
0x1224   :  { %v2495_v26 = vpop.eup %2494 }
0x1225   :  { %1461 = vrot.lane.b32.xlu0 %v2495_v26, %s2774_s15 }
0x1297   :  { %v1462_v30 = vpop.permute.xlu0 %1461 }
0x1298   :  { %v3123_v3 = vmul.f32 %v1462_v30, %v1442_v14  ;;  %v1559_v30 = vrot.slane %v1458_v25, 7 }
0x129a   :  { %1469 = vrot.lane.b32.xlu2 %v3123_v3, %s2786_s21  ;;  %1466 = vrot.lane.b32.xlu1 %v3123_v3, %s2787_s22 }
0x12f4   :  { %v1470_v31 = vpop.permute.xlu2 %1469 }
0x130c   :  { %v1467_v36 = vpop.permute.xlu1 %1466 }
0x130d   :  { %v1472_v35 = vsel %vm303_vm12, %v1467_v36, %v1470_v31 }
0x130e   :  { %v1510_v37 = vpack.c.bf16 %v1472_v35, %v1472_v35 }
0x1310   :  { %v1514_v6 = vshll.u32 %v1510_v37, 16  ;;  %v1512_v47 = vshrl.u32 %v1510_v37, 16 }
0x1312   :  { %v1516_v53 = vrot.slane %v1514_v6, 1 }
0x1314   :  { %v1517_v54 = vor.u32 %v1516_v53, %v1512_v47 }
0x1316   :  { %2363 = vmatmul.msk.bf16.vlgmr.msra.gmra.mxu1 %vm241_vm13, %v1517_v54 }
0x1393   :  { %v1530_v16 = vpop.f32.mrf.mxu1 }
0x1394   :  { %v1535_v17 = vrot.slane %v1530_v16, 6 }
0x1396   :  { %v1537_v55 = vadd.f32 %v1535_v17, %v3044_v4 }
0x1398   :  { %2496 = vtanh.f32 %v1537_v55  ;;  %v2364_v60 = vmul.f32 -1.442695, %v1537_v55 }
0x139a   :  { %2498 = vpow2.f32 %v2364_v60 }
0x139b   :  { %v1532_v20 = vpop.f32.mrf.mxu1 }
0x139e   :  { %v2497_v56 = vpop.eup %2496 }
0x139f   :  { %1563 = vrot.lane.b32.xlu0 %v2497_v56, %s2785_s4 }
0x13a0   :  { %v2499_v51 = vpop.eup %2498 }
0x13a1   :  { %v1541_v38 = vadd.f32 1.0, %v2499_v51 }
0x13a3   :  { %2500 = vrcp.f32 %v1541_v38  ;;  %v1553_v14 = vand.u32 2147483648, %v1541_v38  ;;  %vm1547_vm15 = vweird.f32 %v1541_v38  ;;  %v1551_v40 = vand.u32 2147483647, %v1541_v38 }
0x13a5   :  { %v1554_v15 = vor.u32 1.1754944e-38, %v1553_v14  ;;  %vm1552_vm1 = vcmp.eq.f32.partialorder %v1551_v40, 8.507059e+37 }
0x13a9   :  { %v2501_v39 = vpop.eup %2500 }
0x13aa   :  { %v1543_v33 = vmul.f32 %v2501_v39, %v1541_v38  ;;  %vm1548_vm14 = vweird.f32 %v2501_v39 }
0x13ab   :  { %vm1549_vm0 = vmor %vm1547_vm15, %vm1548_vm14 }
0x13ac   :  { %v1544_v1 = vsub.f32 1.0, %v1543_v33 }
0x13ae   :  { %v1545_v0 = vmul.f32 %v2501_v39, %v1544_v1 }
0x13b0   :  { %v1546_v11 = vadd.f32 %v2501_v39, %v1545_v0 }
0x13b2   :  { %v1550_v4 = vsel %vm1549_vm0, %v2501_v39, %v1546_v11 }
0x13b3   :  { %v1555_v22 = vsel %vm1552_vm1, %v1554_v15, %v1550_v4 }
0x13b4   :  { %v1561_v31 = vmul.f32 %v1559_v30, %v1555_v22 }
0x1411   :  { %v1564_v21 = vpop.permute.xlu0 %1563 }
0x1412   :  { %v1566_v26 = vmul.f32 %v1564_v21, %v1555_v22 }
0x1414   :  { %1568 = vrot.lane.b32.xlu1 %v1566_v26, %s2774_s15 }
0x1486   :  { %v1569_v36 = vpop.permute.xlu1 %1568 }
0x1487   :  { %v1571_v35 = vadd.f32 %v1569_v36, %v1561_v31 }
0x1489   :  { %2502 = vtanh.f32 %v1571_v35  ;;  %v1666_v31 = vrot.slane %v1571_v35, 7 }
0x148f   :  { %v2503_v37 = vpop.eup %2502 }
0x1490   :  { %1574 = vrot.lane.b32.xlu2 %v2503_v37, %s2774_s15 }
0x14ea   :  { %v1575_v6 = vpop.permute.xlu2 %1574 }
0x14eb   :  { %v3135_v47 = vmul.f32 %v1575_v6, %v1555_v22 }
0x14ed   :  { %1582 = vrot.lane.b32.xlu1 %v3135_v47, %s2786_s21  ;;  %1579 = vrot.lane.b32.xlu0 %v3135_v47, %s2787_s22 }
0x155f   :  { %v1583_v53 = vpop.permute.xlu1 %1582  ;;  %v1580_v54 = vpop.permute.xlu0 %1579 }
0x1560   :  { %v1585_v25 = vsel %vm303_vm12, %v1580_v54, %v1583_v53 }
0x1561   :  { %v1622_v16 = vpack.c.bf16 %v1585_v25, %v1585_v25 }
0x1563   :  { %v1624_v17 = vrot.slane %v1622_v16, 1 }
0x1565   :  { %2365 = vmatmul.msk.bf16.vlgmr.msra.gmra.mxu2 %vm241_vm13, %v1624_v17 }
0x15e8   :  { %v1637_v55 = vpop.f32.mrf.mxu2 }
0x15e9   :  { %v1642_v20 = vrot.slane %v1637_v55, 5 }
0x15eb   :  { %v1644_v56 = vadd.f32 %v1642_v20, %v3049_v12 }
0x15ed   :  { %2504 = vtanh.f32 %v1644_v56  ;;  %v2366_v38 = vmul.f32 -1.442695, %v1644_v56 }
0x15ef   :  { %2506 = vpow2.f32 %v2366_v38 }
0x15f0   :  { %v1639_v60 = vpop.f32.mrf.mxu2 }
0x15f3   :  { %v2505_v51 = vpop.eup %2504 }
0x15f4   :  { %1670 = vrot.lane.b32.xlu2 %v2505_v51, %s2785_s4 }
0x15f5   :  { %v2507_v39 = vpop.eup %2506 }
0x15f6   :  { %v1648_v33 = vadd.f32 1.0, %v2507_v39 }
0x15f8   :  { %2508 = vrcp.f32 %v1648_v33  ;;  %v1660_v4 = vand.u32 2147483648, %v1648_v33  ;;  %vm1654_vm3 = vweird.f32 %v1648_v33  ;;  %v1658_v15 = vand.u32 2147483647, %v1648_v33 }
0x15fa   :  { %v1661_v21 = vor.u32 1.1754944e-38, %v1660_v4  ;;  %vm1659_vm5 = vcmp.eq.f32.partialorder %v1658_v15, 8.507059e+37 }
0x15fe   :  { %v2509_v1 = vpop.eup %2508 }
0x15ff   :  { %v1650_v0 = vmul.f32 %v2509_v1, %v1648_v33  ;;  %vm1655_vm2 = vweird.f32 %v2509_v1 }
0x1600   :  { %vm1656_vm4 = vmor %vm1654_vm3, %vm1655_vm2 }
0x1601   :  { %v1651_v11 = vsub.f32 1.0, %v1650_v0 }
0x1603   :  { %v1652_v14 = vmul.f32 %v2509_v1, %v1651_v11 }
0x1605   :  { %v1653_v40 = vadd.f32 %v2509_v1, %v1652_v14 }
0x1607   :  { %v1657_v12 = vsel %vm1656_vm4, %v2509_v1, %v1653_v40 }
0x1608   :  { %v1662_v26 = vsel %vm1659_vm5, %v1661_v21, %v1657_v12 }
0x1609   :  { %v1668_v36 = vmul.f32 %v1666_v31, %v1662_v26 }
0x164e   :  { %v1671_v22 = vpop.permute.xlu2 %1670 }
0x164f   :  { %v1673_v30 = vmul.f32 %v1671_v22, %v1662_v26 }
0x1651   :  { %1675 = vrot.lane.b32.xlu0 %v1673_v30, %s2774_s15 }
0x16c3   :  { %v1676_v37 = vpop.permute.xlu0 %1675 }
0x16c4   :  { %v1678_v6 = vadd.f32 %v1676_v37, %v1668_v36 }
0x16c6   :  { %2510 = vtanh.f32 %v1678_v6 }
0x16cc   :  { %v2511_v53 = vpop.eup %2510 }
0x16cd   :  { %1681 = vrot.lane.b32.xlu1 %v2511_v53, %s2774_s15 }
0x173f   :  { %v1682_v54 = vpop.permute.xlu1 %1681 }
0x1740   :  { %v3147_v25 = vmul.f32 %v1682_v54, %v1662_v26 }
0x1742   :  { %1689 = vrot.lane.b32.xlu0 %v3147_v25, %s2786_s21  ;;  %1686 = vrot.lane.b32.xlu2 %v3147_v25, %s2787_s22 }
0x179c   :  { %v1687_v16 = vpop.permute.xlu2 %1686 }
0x17b4   :  { %v1690_v17 = vpop.permute.xlu0 %1689 }
0x17b5   :  { %v1692_v35 = vsel %vm303_vm12, %v1687_v16, %v1690_v17  ;;  %v1778_v16 = vrot.slane %v1678_v6, 7 }
0x17b6   :  { %v1728_v55 = vpack.c.bf16 %v1692_v35, %v1692_v35 }
0x17b8   :  { %v1730_v20 = vshrl.u32 %v1728_v55, 16  ;;  %v1733_v56 = vshll.u32 %v1728_v55, 16 }
0x17ba   :  { %v1732_v60 = vrot.slane %v1730_v20, 1  ;;  %v1735_v51 = vrot.slane %v1733_v56, 2 }
0x17bc   :  { %v1736_v38 = vor.u32 %v1735_v51, %v1732_v60 }
0x17be   :  { %2367 = vmatmul.msk.bf16.vlgmr.msrb.gmra.mxu3 %vm241_vm13, %v1736_v38 }
0x1841   :  { %v1749_v39 = vpop.f32.mrf.mxu3 }
0x1842   :  { %v1754_v33 = vrot.slane %v1749_v39, 4 }
0x1844   :  { %v1756_v1 = vadd.f32 %v1754_v33, %v3055_v18 }
0x1846   :  { %2512 = vtanh.f32 %v1756_v1  ;;  %v2368_v14 = vmul.f32 -1.442695, %v1756_v1 }
0x1848   :  { %2514 = vpow2.f32 %v2368_v14 }
0x1849   :  { %v1751_v0 = vpop.f32.mrf.mxu3 }
0x184c   :  { %v2513_v11 = vpop.eup %2512 }
0x184d   :  { %1782 = vrot.lane.b32.xlu1 %v2513_v11, %s2785_s4 }
0x184e   :  { %v2515_v40 = vpop.eup %2514 }
0x184f   :  { %v1760_v4 = vadd.f32 1.0, %v2515_v40 }
0x1851   :  { %2516 = vrcp.f32 %v1760_v4  ;;  %v1772_v30 = vand.u32 2147483648, %v1760_v4  ;;  %vm1766_vm7 = vweird.f32 %v1760_v4  ;;  %v1770_v31 = vand.u32 2147483647, %v1760_v4 }
0x1853   :  { %v1773_v36 = vor.u32 1.1754944e-38, %v1772_v30  ;;  %vm1771_vm9 = vcmp.eq.f32.partialorder %v1770_v31, 8.507059e+37 }
0x1857   :  { %v2517_v15 = vpop.eup %2516 }
0x1858   :  { %v1762_v12 = vmul.f32 %v2517_v15, %v1760_v4  ;;  %vm1767_vm6 = vweird.f32 %v2517_v15 }
0x1859   :  { %vm1768_vm8 = vmor %vm1766_vm7, %vm1767_vm6 }
0x185a   :  { %v1763_v21 = vsub.f32 1.0, %v1762_v12 }
0x185c   :  { %v1764_v22 = vmul.f32 %v2517_v15, %v1763_v21 }
0x185e   :  { %v1765_v26 = vadd.f32 %v2517_v15, %v1764_v22 }
0x1860   :  { %v1769_v18 = vsel %vm1768_vm8, %v2517_v15, %v1765_v26 }
0x1861   :  { %v1774_v53 = vsel %vm1771_vm9, %v1773_v36, %v1769_v18 }
0x1862   :  { %v1780_v17 = vmul.f32 %v1778_v16, %v1774_v53 }
0x18bf   :  { %v1783_v37 = vpop.permute.xlu1 %1782 }
0x18c0   :  { %v1785_v54 = vmul.f32 %v1783_v37, %v1774_v53 }
0x18c2   :  { %1787 = vrot.lane.b32.xlu2 %v1785_v54, %s2774_s15 }
0x191c   :  { %v1788_v35 = vpop.permute.xlu2 %1787 }
0x191d   :  { %v1790_v55 = vadd.f32 %v1788_v35, %v1780_v17 }
0x191f   :  { %2518 = vtanh.f32 %v1790_v55  ;;  %v1884_v17 = vrot.slane %v1790_v55, 7 }
0x1925   :  { %v2519_v20 = vpop.eup %2518 }
0x1926   :  { %1793 = vrot.lane.b32.xlu0 %v2519_v20, %s2774_s15 }
0x1998   :  { %v1794_v56 = vpop.permute.xlu0 %1793 }
0x1999   :  { %v3159_v60 = vmul.f32 %v1794_v56, %v1774_v53 }
0x199b   :  { %1801 = vrot.lane.b32.xlu2 %v3159_v60, %s2786_s21  ;;  %1798 = vrot.lane.b32.xlu1 %v3159_v60, %s2787_s22 }
0x19f5   :  { %v1802_v51 = vpop.permute.xlu2 %1801 }
0x1a0d   :  { %v1799_v38 = vpop.permute.xlu1 %1798 }
0x1a0e   :  { %v1804_v6 = vsel %vm303_vm12, %v1799_v38, %v1802_v51 }
0x1a0f   :  { %v1840_v39 = vpack.c.bf16 %v1804_v6, %v1804_v6 }
0x1a11   :  { %v1842_v33 = vrot.slane %v1840_v39, 2 }
0x1a13   :  { %2369 = vmatmul.msk.bf16.vlgmr.msra.gmra.mxu0 %vm241_vm13, %v1842_v33 }
0x1a90   :  { %v1855_v1 = vpop.f32.mrf.mxu0 }
0x1a91   :  { %v1860_v0 = vrot.slane %v1855_v1, 3 }
0x1a93   :  { %v1862_v11 = vadd.f32 %v1860_v0, %v3058_v19 }
0x1a95   :  { %2520 = vtanh.f32 %v1862_v11  ;;  %v2370_v4 = vmul.f32 -1.442695, %v1862_v11 }
0x1a97   :  { %2522 = vpow2.f32 %v2370_v4 }
0x1a98   :  { %v1857_v14 = vpop.f32.mrf.mxu0 }
0x1a9b   :  { %v2521_v40 = vpop.eup %2520 }
0x1a9c   :  { %1888 = vrot.lane.b32.xlu0 %v2521_v40, %s2785_s4 }
0x1a9d   :  { %v2523_v15 = vpop.eup %2522 }
0x1a9e   :  { %v1866_v12 = vadd.f32 1.0, %v2523_v15 }
0x1aa0   :  { %2524 = vrcp.f32 %v1866_v12  ;;  %v1878_v18 = vand.u32 2147483648, %v1866_v12  ;;  %vm1872_vm11 = vweird.f32 %v1866_v12  ;;  %v1876_v36 = vand.u32 2147483647, %v1866_v12 }
0x1aa2   :  { %v1879_v37 = vor.u32 1.1754944e-38, %v1878_v18  ;;  %vm1877_vm15 = vcmp.eq.f32.partialorder %v1876_v36, 8.507059e+37 }
0x1aa6   :  { %v2525_v21 = vpop.eup %2524 }
0x1aa7   :  { %v1868_v22 = vmul.f32 %v2525_v21, %v1866_v12  ;;  %vm1873_vm10 = vweird.f32 %v2525_v21 }
0x1aa8   :  { %vm1874_vm14 = vmor %vm1872_vm11, %vm1873_vm10 }
0x1aa9   :  { %v1869_v26 = vsub.f32 1.0, %v1868_v22 }
0x1aab   :  { %v1870_v30 = vmul.f32 %v2525_v21, %v1869_v26 }
0x1aad   :  { %v1871_v31 = vadd.f32 %v2525_v21, %v1870_v30 }
0x1aaf   :  { %v1875_v19 = vsel %vm1874_vm14, %v2525_v21, %v1871_v31 }
0x1ab0   :  { %v1880_v54 = vsel %vm1877_vm15, %v1879_v37, %v1875_v19 }
0x1ab1   :  { %v1886_v35 = vmul.f32 %v1884_v17, %v1880_v54 }
0x1b0e   :  { %v1889_v53 = vpop.permute.xlu0 %1888 }
0x1b0f   :  { %v1891_v16 = vmul.f32 %v1889_v53, %v1880_v54 }
0x1b11   :  { %1893 = vrot.lane.b32.xlu1 %v1891_v16, %s2774_s15 }
0x1b83   :  { %v1894_v20 = vpop.permute.xlu1 %1893 }
0x1b84   :  { %v1896_v56 = vadd.f32 %v1894_v20, %v1886_v35 }
0x1b86   :  { %2526 = vtanh.f32 %v1896_v56 }
0x1b8c   :  { %v2527_v51 = vpop.eup %2526 }
0x1b8d   :  { %1899 = vrot.lane.b32.xlu2 %v2527_v51, %s2774_s15 }
0x1be7   :  { %v1900_v38 = vpop.permute.xlu2 %1899 }
0x1be8   :  { %v3171_v6 = vmul.f32 %v1900_v38, %v1880_v54 }
0x1bea   :  { %1907 = vrot.lane.b32.xlu1 %v3171_v6, %s2786_s21  ;;  %1904 = vrot.lane.b32.xlu0 %v3171_v6, %s2787_s22 }
0x1c5c   :  { %v1908_v39 = vpop.permute.xlu1 %1907  ;;  %v1905_v33 = vpop.permute.xlu0 %1904 }
0x1c5d   :  { %v1910_v55 = vsel %vm303_vm12, %v1905_v33, %v1908_v39  ;;  %v1996_v39 = vrot.slane %v1896_v56, 7 }
0x1c5e   :  { %v1946_v1 = vpack.c.bf16 %v1910_v55, %v1910_v55 }
0x1c60   :  { %v1948_v0 = vshrl.u32 %v1946_v1, 16  ;;  %v1951_v11 = vshll.u32 %v1946_v1, 16 }
0x1c62   :  { %v1950_v14 = vrot.slane %v1948_v0, 2  ;;  %v1953_v40 = vrot.slane %v1951_v11, 3 }
0x1c64   :  { %v1954_v4 = vor.u32 %v1953_v40, %v1950_v14  ;;  %v2286_v14 = vmul.f32 -1.442695, %v3113_v32 }
0x1c66   :  { %2371 = vmatmul.msk.bf16.vlgmr.msrb.gmra.mxu1 %vm241_vm13, %v1954_v4 }
0x1ce3   :  { %v1967_v15 = vpop.f32.mrf.mxu1 }
0x1ce4   :  { %v1972_v12 = vrot.slane %v1967_v15, 2 }
0x1ce6   :  { %v1974_v21 = vadd.f32 %v1972_v12, %v3063_v23 }
0x1ce8   :  { %2528 = vtanh.f32 %v1974_v21  ;;  %v2372_v30 = vmul.f32 -1.442695, %v1974_v21 }
0x1cea   :  { %2530 = vpow2.f32 %v2372_v30 }
0x1ceb   :  { %v1969_v22 = vpop.f32.mrf.mxu1 }
0x1cee   :  { %v2529_v26 = vpop.eup %2528 }
0x1cef   :  { %2000 = vrot.lane.b32.xlu2 %v2529_v26, %s2785_s4 }
0x1cf0   :  { %v2531_v31 = vpop.eup %2530 }
0x1cf1   :  { %v1978_v18 = vadd.f32 1.0, %v2531_v31 }
0x1cf3   :  { %2532 = vrcp.f32 %v1978_v18  ;;  %v1990_v16 = vand.u32 2147483648, %v1978_v18  ;;  %vm1984_vm1 = vweird.f32 %v1978_v18  ;;  %v1988_v17 = vand.u32 2147483647, %v1978_v18 }
0x1cf5   :  { %v1991_v35 = vor.u32 1.1754944e-38, %v1990_v16  ;;  %vm1989_vm3 = vcmp.eq.f32.partialorder %v1988_v17, 8.507059e+37  ;;  %v2287_v16 = vmul.f32 -1.442695, %v3116_v34 }
0x1cf9   :  { %v2533_v36 = vpop.eup %2532 }
0x1cfa   :  { %v1980_v19 = vmul.f32 %v2533_v36, %v1978_v18  ;;  %vm1985_vm0 = vweird.f32 %v2533_v36 }
0x1cfb   :  { %vm1986_vm2 = vmor %vm1984_vm1, %vm1985_vm0 }
0x1cfc   :  { %v1981_v37 = vsub.f32 1.0, %v1980_v19 }
0x1cfe   :  { %v1982_v53 = vmul.f32 %v2533_v36, %v1981_v37 }
0x1d00   :  { %v1983_v54 = vadd.f32 %v2533_v36, %v1982_v53 }
0x1d02   :  { %v1987_v23 = vsel %vm1986_vm2, %v2533_v36, %v1983_v54 }
0x1d03   :  { %v1992_v51 = vsel %vm1989_vm3, %v1991_v35, %v1987_v23 }
0x1d04   :  { %v1998_v33 = vmul.f32 %v1996_v39, %v1992_v51 }
0x1d49   :  { %v2001_v20 = vpop.permute.xlu2 %2000 }
0x1d4a   :  { %v2003_v38 = vmul.f32 %v2001_v20, %v1992_v51 }
0x1d4c   :  { %2005 = vrot.lane.b32.xlu0 %v2003_v38, %s2774_s15 }
0x1dbe   :  { %v2006_v55 = vpop.permute.xlu0 %2005 }
0x1dbf   :  { %v3182_v1 = vadd.f32 %v2006_v55, %v1998_v33 }
0x1dc1   :  { %2534 = vtanh.f32 %v3182_v1 }
0x1dc2   :  { %2536 = vtanh.f32 %v3113_v32 }
0x1dc3   :  { %2538 = vpow2.f32 %v2286_v14 }
0x1dc7   :  { %v2535_v0 = vpop.eup %2534 }
0x1dc8   :  { %2011 = vrot.lane.b32.xlu1 %v2535_v0, %s2774_s15  ;;  %v2537_v11 = vpop.eup %2536 }
0x1dc9   :  { %v2539_v40 = vpop.eup %2538 }
0x1dca   :  { %v1024_v4 = vadd.f32 1.0, %v2539_v40 }
0x1dcc   :  { %2540 = vrcp.f32 %v1024_v4  ;;  %v1037_v31 = vand.u32 2147483648, %v1024_v4  ;;  %vm1031_vm5 = vweird.f32 %v1024_v4  ;;  %v1035_v32 = vand.u32 2147483647, %v1024_v4 }
0x1dcd   :  { %2542 = vtanh.f32 %v3116_v34 }
0x1dce   :  { %v1038_v36 = vor.u32 1.1754944e-38, %v1037_v31  ;;  %vm1036_vm7 = vcmp.eq.f32.partialorder %v1035_v32, 8.507059e+37  ;;  %2544 = vpow2.f32 %v2287_v16  ;;  %v537_v16 = vperm.slane %v2968_v7, 0 }
0x1dcf   :  { %v744_v7 = vperm.slane %v2992_v59, 0 }
0x1dd0   :  { %1065 = vrot.lane.b32.xlu1 %v2537_v11, %s2785_s4 }
0x1dd2   :  { %v2541_v56 = vpop.eup %2540 }
0x1dd3   :  { %v1027_v15 = vmul.f32 %v2541_v56, %v1024_v4  ;;  %vm1032_vm4 = vweird.f32 %v2541_v56  ;;  %v2543_v54 = vpop.eup %2542 }
0x1dd4   :  { %vm1033_vm6 = vmor %vm1031_vm5, %vm1032_vm4  ;;  %v2545_v17 = vpop.eup %2544 }
0x1dd5   :  { %v1028_v12 = vsub.f32 1.0, %v1027_v15  ;;  %v1025_v23 = vadd.f32 1.0, %v2545_v17  ;;  %v646_v17 = vperm.slane %v2986_v57, 0  ;;  %v866_v57 = vperm.slane %v3090_v61, 0 }
0x1dd7   :  { %v1029_v21 = vmul.f32 %v2541_v56, %v1028_v12  ;;  %2546 = vrcp.f32 %v1025_v23  ;;  %v1052_v55 = vand.u32 2147483648, %v1025_v23  ;;  %vm1046_vm9 = vweird.f32 %v1025_v23 }
0x1dd8   :  { %v1050_v0 = vand.u32 2147483647, %v1025_v23 }
0x1dd9   :  { %v1030_v30 = vadd.f32 %v2541_v56, %v1029_v21  ;;  %v1053_v14 = vor.u32 1.1754944e-38, %v1052_v55  ;;  %v423_v55 = vperm.slane %v2952_v27, 0 }
0x1dda   :  { %vm1051_vm11 = vcmp.eq.f32.partialorder %v1050_v0, 8.507059e+37 }
0x1ddb   :  { %v1034_v18 = vsel %vm1033_vm6, %v2541_v56, %v1030_v30  ;;  %v306_v56 = vperm.slane %v2926_v13, 0  ;;  %v1059_v30 = vrot.slane %v3080_v52, 7  ;;  %v305_v52 = vrot.slane %v2926_v13, 1 }
0x1ddc   :  { %v3196_v19 = vsel %vm1036_vm7, %v1038_v36, %v1034_v18  ;;  %v408_v36 = vperm.slane %v2942_v46, 0  ;;  %v631_v46 = vperm.slane %v2976_v10, 0  ;;  %v522_v13 = vperm.slane %v2958_v29, 0  ;;  %v975_v29 = vld [vmem:[#allocation1 + $0x6] ss:$9 sm:$0xff] }
0x1ddd   :  { %v2547_v35 = vpop.eup %2546  ;;  %v1061_v31 = vmul.f32 %v1059_v30, %v3196_v19  ;;  %v538_v10 = vperm.slane %v2970_v8, 0  ;;  %v978_v59 = vperm.slane %v975_v29, 0 }
0x1dde   :  { %v1042_v20 = vmul.f32 %v2547_v35, %v1025_v23  ;;  %vm1047_vm8 = vweird.f32 %v2547_v35  ;;  %v850_v23 = vperm.slane %v3009_v44, 0 }
0x1ddf   :  { %vm1048_vm10 = vmor %vm1046_vm9, %vm1047_vm8 }
0x1e3a   :  { %v2012_v22 = vpop.permute.xlu1 %2011 }
0x1e3b   :  { %v3189_v26 = vmul.f32 %v2012_v22, %v1992_v51  ;;  %v1043_v51 = vsub.f32 1.0, %v1042_v20 }
0x1e3d   :  { %2019 = vrot.lane.b32.xlu0 %v3189_v26, %s2786_s21  ;;  %2016 = vrot.lane.b32.xlu2 %v3189_v26, %s2787_s22  ;;  %v1044_v38 = vmul.f32 %v2547_v35, %v1043_v51 }
0x1e3f   :  { %v1045_v33 = vadd.f32 %v2547_v35, %v1044_v38  ;;  %v3246_v38 = vld [vmem:[#allocation1 + $0x7] ss:$9 sm:$0xff] }
0x1e41   :  { %v1049_v11 = vsel %vm1048_vm10, %v2547_v35, %v1045_v33 }
0x1e42   :  { %v1066_v37 = vpop.permute.xlu1 %1065  ;;  %v3202_v40 = vsel %vm1051_vm11, %v1053_v14, %v1049_v11 }
0x1e43   :  { %v1071_v53 = vmul.f32 %v1066_v37, %v3196_v19  ;;  %v1062_v8 = vmul.f32 %v1059_v30, %v3202_v40 }
0x1e45   :  { %1067 = vrot.lane.b32.xlu2 %v2543_v54, %s2785_s4  ;;  %1075 = vrot.lane.b32.xlu0 %v1071_v53, %s2774_s15  ;;  %v424_v53 = vperm.slane %v2954_v28, 0  ;;  %v307_v54 = vperm.slane %v305_v52, 0  ;;  %v409_v28 = vperm.slane %v2944_v49, 0  ;;  %v758_v49 = vperm.slane %v3003_v41, 0 }
0x1e97   :  { %v2017_v39 = vpop.permute.xlu2 %2016 }
0x1e9f   :  { %v1068_v34 = vpop.permute.xlu2 %1067 }
0x1ea0   :  { %v1072_v4 = vmul.f32 %v1068_v34, %v3202_v40 }
0x1ea2   :  { %1077 = vrot.lane.b32.xlu1 %v1072_v4, %s2774_s15 }
0x1eaa   :  { %308 = vrot.lane.b32.xlu1 %v306_v56, %s2787_s22 }
0x1eaf   :  { %v2020_v15 = vpop.permute.xlu0 %2019 }
0x1eb0   :  { %v2022_v12 = vsel %vm303_vm12, %v2017_v39, %v2020_v15  ;;  %vm314_vm12 = vcmask 122880  }
0x1eb1   :  { %v2059_v21 = vpack.c.bf16 %v2022_v12, %v2022_v12 }
0x1eb2   :  { %317 = vrot.lane.b32.xlu1 %v306_v56, %s2786_s21 }
0x1eb3   :  { %v2061_v22 = vrot.slane %v2059_v21, 3 }
0x1eb5   :  { %2373 = vmatmul.msk.bf16.vlgmr.msrb.gmra.mxu2 %vm241_vm13, %v2061_v22  ;;  %vm323_vm13 = vcmask 254080  }
0x1eb7   :  { %v1076_v32 = vpop.permute.xlu0 %1075 }
0x1eb8   :  { %v1081_v18 = vadd.f32 %v1076_v32, %v1061_v31 }
0x1eba   :  { %2548 = vtanh.f32 %v1081_v18  ;;  %410 = vrot.lane.b32.xlu1 %v408_v36, %s2787_s22 }
0x1ec0   :  { %v2549_v37 = vpop.eup %2548 }
0x1ec1   :  { %1087 = vrot.lane.b32.xlu2 %v2549_v37, %s2774_s15  ;;  %v523_v37 = vperm.slane %v2960_v2, 0  ;;  %v743_v2 = vperm.slane %v2990_v58, 0  ;;  %v1379_v58 = vperm.slane %v3098_v5, 0 }
0x1ec2   :  { %427 = vrot.lane.b32.xlu1 %v424_v53, %s2786_s21  ;;  %v630_v53 = vperm.slane %v2974_v9, 0  ;;  %v759_v9 = vperm.slane %v3005_v42, 0  ;;  %v1378_v42 = vrot.slane %v3098_v5, 1 }
0x1ec9   :  { %310 = vrot.lane.b32.xlu2 %v307_v54, %s2787_s22 }
0x1eca   :  { %539 = vrot.lane.b32.xlu1 %v537_v16, %s2786_s21 }
0x1ed1   :  { %319 = vrot.lane.b32.xlu2 %v307_v54, %s2786_s21  ;;  %v645_v54 = vperm.slane %v2984_v43, 0  ;;  %v964_v43 = vperm.slane %v3096_v63, 0 }
0x1ed2   :  { %634 = vrot.lane.b32.xlu1 %v631_v46, %s2787_s22 }
0x1ed9   :  { %412 = vrot.lane.b32.xlu2 %v409_v28, %s2787_s22  ;;  %v865_v28 = vperm.slane %v3088_v50, 0 }
0x1eda   :  { %649 = vrot.lane.b32.xlu1 %v646_v17, %s2786_s21 }
0x1ee1   :  { %524 = vrot.lane.b32.xlu2 %v522_v13, %s2787_s22 }
0x1ee2   :  { %747 = vrot.lane.b32.xlu1 %v744_v7, %s2787_s22 }
0x1ee9   :  { %541 = vrot.lane.b32.xlu2 %v538_v10, %s2786_s21  ;;  %v1380_v10 = vperm.slane %v1378_v42, 0 }
0x1eea   :  { %852 = vrot.lane.b32.xlu1 %v850_v23, %s2787_s22 }
0x1ef1   :  { %760 = vrot.lane.b32.xlu2 %v758_v49, %s2786_s21 }
0x1ef2   :  { %869 = vrot.lane.b32.xlu1 %v866_v57, %s2786_s21 }
0x1efa   :  { %980 = vrot.lane.b32.xlu1 %v978_v59, %s2786_s21 }
0x1f14   :  { %v1078_v35 = vpop.permute.xlu1 %1077 }
0x1f15   :  { %v1082_v44 = vadd.f32 %v1078_v35, %v1062_v8 }
0x1f17   :  { %2550 = vtanh.f32 %v1082_v44 }
0x1f1b   :  { %v1088_v20 = vpop.permute.xlu2 %1087 }
0x1f1c   :  { %v3244_v51 = vmul.f32 %v1088_v20, %v3196_v19  ;;  %v309_v41 = vpop.permute.xlu1 %308 }
0x1f1d   :  { %v2551_v61 = vpop.eup %2550  ;;  %315 = vst.msk [vmem:[#allocation13] sm:$0x1] %vm314_vm12, %v309_v41 }
0x1f1e   :  { %1097 = vst [vmem:[#allocation1] sm:$0xff] %v3244_v51  ;;  %1089 = vrot.lane.b32.xlu0 %v2551_v61, %s2774_s15 }
0x1f23   :  { %v311_v39 = vpop.permute.xlu2 %310 }
0x1f24   :  { %316 = vst.msk [vmem:[#allocation13 + $0x8] sm:$0x1] %vm314_vm12, %v311_v39  ;;  %v318_v33 = vpop.permute.xlu1 %317 }
0x1f25   :  { %324 = vst.msk [vmem:[#allocation13 + $0x7] sm:$0x1] %vm323_vm13, %v318_v33  ;;  %v1099_v19 = vld [vmem:[#allocation1 + $0x7] ss:$9 sm:$0xff] }
0x1f26   :  { %425 = vrot.lane.b32.xlu0 %v423_v55, %s2786_s21  ;;  %v1102_v0 = vperm.slane %v1099_v19, 0 }
0x1f28   :  { %1104 = vrot.lane.b32.xlu1 %v1102_v0, %s2787_s22 }
0x1f2b   :  { %v320_v11 = vpop.permute.xlu2 %319 }
0x1f2c   :  { %325 = vst.msk [vmem:[#allocation13 + $0xf] sm:$0x1] %vm323_vm13, %v320_v11  ;;  %v411_v14 = vpop.permute.xlu1 %410 }
0x1f2d   :  { %416 = vst.msk [vmem:[#allocation13 + $0x1] sm:$0x1] %vm314_vm12, %v411_v14 }
0x1f33   :  { %v413_v34 = vpop.permute.xlu2 %412 }
0x1f34   :  { %417 = vst.msk [vmem:[#allocation13 + $0x9] sm:$0x1] %vm314_vm12, %v413_v34  ;;  %v428_v4 = vpop.permute.xlu1 %427 }
0x1f35   :  { %432 = vst.msk [vmem:[#allocation13 + $0xe] sm:$0x1] %vm323_vm13, %v428_v4 }
0x1f38   :  { %v2074_v27 = vpop.f32.mrf.mxu2 }
0x1f39   :  { %v2079_v56 = vrot.slane %v2074_v27, 1 }
0x1f3b   :  { %v2081_v15 = vadd.f32 %v2079_v56, %v3066_v48  ;;  %v525_v12 = vpop.permute.xlu2 %524  ;;  %v2082_v30 = vadd.f32 %v2079_v56, %v3069_v24 }
0x1f3c   :  { %530 = vst.msk [vmem:[#allocation13 + $0x2] sm:$0x1] %vm314_vm12, %v525_v12  ;;  %v540_v21 = vpop.permute.xlu1 %539 }
0x1f3d   :  { %2552 = vtanh.f32 %v2081_v15  ;;  %545 = vst.msk [vmem:[#allocation13 + $0x5] sm:$0x1] %vm323_vm13, %v540_v21  ;;  %v2374_v17 = vmul.f32 -1.442695, %v2081_v15  ;;  %v2375_v7 = vmul.f32 -1.442695, %v2082_v30 }
0x1f3e   :  { %2554 = vtanh.f32 %v2082_v30 }
0x1f3f   :  { %2556 = vpow2.f32 %v2374_v17 }
0x1f40   :  { %v2076_v22 = vpop.f32.mrf.mxu2  ;;  %2558 = vpow2.f32 %v2375_v7 }
0x1f43   :  { %v2553_v31 = vpop.eup %2552  ;;  %v542_v32 = vpop.permute.xlu2 %541 }
0x1f44   :  { %546 = vst.msk [vmem:[#allocation13 + $0xd] sm:$0x1] %vm323_vm13, %v542_v32  ;;  %2130 = vrot.lane.b32.xlu0 %v2553_v31, %s2785_s4  ;;  %v635_v18 = vpop.permute.xlu1 %634  ;;  %v2555_v48 = vpop.eup %2554 }
0x1f45   :  { %639 = vst.msk [vmem:[#allocation13 + $0xb] sm:$0x1] %vm314_vm12, %v635_v18  ;;  %v2557_v23 = vpop.eup %2556 }
0x1f46   :  { %v2089_v63 = vadd.f32 1.0, %v2557_v23  ;;  %v2559_v59 = vpop.eup %2558 }
0x1f48   :  { %2560 = vrcp.f32 %v2089_v63  ;;  %v2102_v0 = vand.u32 2147483648, %v2089_v63  ;;  %vm2096_vm15 = vweird.f32 %v2089_v63  ;;  %v2100_v11 = vand.u32 2147483647, %v2089_v63 }
0x1f4a   :  { %v2103_v15 = vor.u32 1.1754944e-38, %v2102_v0  ;;  %vm2101_vm1 = vcmp.eq.f32.partialorder %v2100_v11, 8.507059e+37 }
0x1f4c   :  { %2132 = vrot.lane.b32.xlu0 %v2555_v48, %s2785_s4  ;;  %v650_v36 = vpop.permute.xlu1 %649 }
0x1f4d   :  { %654 = vst.msk [vmem:[#allocation13 + $0xc] sm:$0x1] %vm323_vm13, %v650_v36 }
0x1f4e   :  { %v2561_v8 = vpop.eup %2560 }
0x1f4f   :  { %v2092_v44 = vmul.f32 %v2561_v8, %v2089_v63  ;;  %vm2097_vm14 = vweird.f32 %v2561_v8 }
0x1f50   :  { %vm2098_vm0 = vmor %vm2096_vm15, %vm2097_vm14 }
0x1f51   :  { %v2093_v41 = vsub.f32 1.0, %v2092_v44 }
0x1f53   :  { %v2094_v33 = vmul.f32 %v2561_v8, %v2093_v41 }
0x1f54   :  { %526 = vrot.lane.b32.xlu0 %v523_v37, %s2787_s22  ;;  %v748_v24 = vpop.permute.xlu1 %747 }
0x1f55   :  { %752 = vst.msk [vmem:[#allocation13 + $0xc] sm:$0x1] %vm314_vm12, %v748_v24 }
0x1f5c   :  { %632 = vrot.lane.b32.xlu0 %v630_v53, %s2787_s22  ;;  %v853_v52 = vpop.permute.xlu1 %852 }
0x1f5d   :  { %858 = vst.msk [vmem:[#allocation13 + $0x5] sm:$0x1] %vm314_vm12, %v853_v52 }
0x1f64   :  { %647 = vrot.lane.b32.xlu0 %v645_v54, %s2786_s21  ;;  %v3277_v16 = vpop.permute.xlu1 %869 }
0x1f6c   :  { %745 = vrot.lane.b32.xlu0 %v743_v2, %s2787_s22  ;;  %v981_v46 = vpop.permute.xlu1 %980 }
0x1f6d   :  { %986 = vst.msk [vmem:[#allocation13 + $0x1] sm:$0x1] %vm323_vm13, %v981_v46 }
0x1f74   :  { %762 = vrot.lane.b32.xlu0 %v759_v9, %s2786_s21  ;;  %v851_v9 = vperm.slane %v3011_v45, 0 }
0x1f7c   :  { %867 = vrot.lane.b32.xlu0 %v865_v28, %s2786_s21 }
0x1f84   :  { %967 = vrot.lane.b32.xlu0 %v964_v43, %s2787_s22 }
0x1f8c   :  { %1381 = vrot.lane.b32.xlu0 %v1379_v58, %s2787_s22 }
0x1f90   :  { %v1090_v13 = vpop.permute.xlu0 %1089 }
0x1f91   :  { %v1094_v50 = vmul.f32 %v1090_v13, %v3202_v40  ;;  %v2090_v40 = vadd.f32 1.0, %v2559_v59  ;;  %v963_v13 = vperm.slane %v3094_v62, 0 }
0x1f93   :  { %1100 = vst [vmem:[#allocation1] sm:$0xff] %v1094_v50  ;;  %2562 = vrcp.f32 %v2090_v40  ;;  %v2117_v31 = vand.u32 2147483648, %v2090_v40  ;;  %vm2111_vm3 = vweird.f32 %v2090_v40  ;;  %v2115_v32 = vand.u32 2147483647, %v2090_v40 }
0x1f94   :  { %1391 = vrot.lane.b32.xlu0 %v1380_v10, %s2786_s21 }
0x1f95   :  { %v2118_v37 = vor.u32 1.1754944e-38, %v2117_v31  ;;  %vm2116_vm5 = vcmp.eq.f32.partialorder %v2115_v32, 8.507059e+37 }
0x1f98   :  { %v426_v49 = vpop.permute.xlu0 %425 }
0x1f99   :  { %431 = vst.msk [vmem:[#allocation13 + $0x6] sm:$0x1] %vm323_vm13, %v426_v49  ;;  %v2563_v61 = vpop.eup %2562 }
0x1f9a   :  { %v1105_v57 = vpop.permute.xlu1 %1104  ;;  %v3296_v29 = vld [vmem:[#allocation1] ss:$9 sm:$0xff]  ;;  %v2107_v55 = vmul.f32 %v2563_v61, %v2090_v40  ;;  %vm2112_vm2 = vweird.f32 %v2563_v61 }
0x1f9b   :  { %1110 = vst.msk [vmem:[#allocation13 + $0x7] sm:$0x1] %vm314_vm12, %v1105_v57  ;;  %vm2113_vm4 = vmor %vm2111_vm3, %vm2112_vm2  ;;  %v1103_v49 = vperm.slane %v3296_v29, 0 }
0x1f9c   :  { %1112 = vst [vmem:[#allocation1] sm:$0xff] %v3244_v51  ;;  %v2095_v51 = vadd.f32 %v2561_v8, %v2094_v33  ;;  %v2108_v19 = vsub.f32 1.0, %v2107_v55 }
0x1f9e   :  { %v2099_v34 = vsel %vm2098_vm0, %v2561_v8, %v2095_v51  ;;  %v2109_v27 = vmul.f32 %v2563_v61, %v2108_v19 }
0x1f9f   :  { %v3309_v21 = vsel %vm2101_vm1, %v2103_v15, %v2099_v34  ;;  %v2124_v34 = vrot.slane %v3182_v1, 7 }
0x1fa0   :  { %v2110_v30 = vadd.f32 %v2563_v61, %v2109_v27 }
0x1fa3   :  { %v1114_v35 = vld [vmem:[#allocation1 + $0x7] ss:$9 sm:$0xff] }
0x1fa4   :  { %1115 = vst [vmem:[#allocation1] sm:$0xff] %v1094_v50  ;;  %v1117_v20 = vperm.slane %v1114_v35, 0 }
0x1fa6   :  { %1119 = vrot.lane.b32.xlu1 %v1117_v20, %s2786_s21 }
0x1fab   :  { %v3301_v39 = vld [vmem:[#allocation1] ss:$9 sm:$0xff] }
0x1fac   :  { %1473 = vst [vmem:[#allocation1] sm:$0xff] %v3123_v3  ;;  %v1118_v40 = vperm.slane %v3301_v39, 0 }
0x1fae   :  { %1383 = vrot.lane.b32.xlu1 %v1380_v10, %s2787_s22  ;;  %v979_v10 = vperm.slane %v3246_v38, 0 }
0x1fb3   :  { %v1475_v14 = vld [vmem:[#allocation1 + $0x1] ss:$9 sm:$0xff] }
0x1fb4   :  { %v3305_v4 = vld [vmem:[#allocation1 + $0x2] ss:$9 sm:$0xff]  ;;  %v1478_v56 = vperm.slane %v1475_v14, 0 }
0x1fb5   :  { %1488 = vst [vmem:[#allocation1] sm:$0xff] %v3123_v3  ;;  %v2114_v3 = vsel %vm2113_vm4, %v2563_v61, %v2110_v30  ;;  %v1479_v61 = vperm.slane %v3305_v4, 0  ;;  %v2126_v4 = vmul.f32 %v2124_v34, %v3309_v21 }
0x1fb6   :  { %1480 = vrot.lane.b32.xlu1 %v1478_v56, %s2787_s22  ;;  %v2131_v12 = vpop.permute.xlu0 %2130  ;;  %v3317_v24 = vsel %vm2116_vm5, %v2118_v37, %v2114_v3 }
0x1fb7   :  { %v2136_v22 = vmul.f32 %v2131_v12, %v3309_v21  ;;  %v2127_v12 = vmul.f32 %v2124_v34, %v3317_v24 }
0x1fb9   :  { %2140 = vrot.lane.b32.xlu2 %v2136_v22, %s2774_s15 }
0x1fbc   :  { %v3313_v18 = vld [vmem:[#allocation1 + $0x1] ss:$9 sm:$0xff] }
0x1fbd   :  { %v1492_v48 = vld [vmem:[#allocation1 + $0x2] ss:$9 sm:$0xff] }
0x1fbe   :  { %v1494_v36 = vperm.slane %v1492_v48, 0  ;;  %1586 = vst [vmem:[#allocation1] sm:$0xff] %v3135_v47  ;;  %v2133_v53 = vpop.permute.xlu0 %2132 }
0x1fbf   :  { %v2137_v52 = vmul.f32 %v2133_v53, %v3317_v24 }
0x1fc0   :  { %1497 = vrot.lane.b32.xlu1 %v1494_v36, %s2786_s21 }
0x1fc1   :  { %2142 = vrot.lane.b32.xlu2 %v2137_v52, %s2774_s15  ;;  %v1493_v52 = vperm.slane %v3313_v18, 0 }
0x1fc5   :  { %v3321_v54 = vld [vmem:[#allocation1 + $0x2] ss:$9 sm:$0xff] }
0x1fc6   :  { %v3323_v2 = vld [vmem:[#allocation1 + $0x3] ss:$9 sm:$0xff]  ;;  %v527_v46 = vpop.permute.xlu0 %526 }
0x1fc7   :  { %1601 = vst [vmem:[#allocation1] sm:$0xff] %v3135_v47  ;;  %v761_v47 = vpop.permute.xlu2 %760 }
0x1fc8   :  { %531 = vst.msk [vmem:[#allocation13 + $0xa] sm:$0x1] %vm314_vm12, %v527_v46 }
0x1fc9   :  { %874 = vst.msk [vmem:[#allocation13 + $0xa] sm:$0x1] %vm323_vm13, %v3277_v16  ;;  %854 = vrot.lane.b32.xlu2 %v851_v9, %s2787_s22 }
0x1fce   :  { %v1603_v28 = vld [vmem:[#allocation1 + $0x2] ss:$9 sm:$0xff]  ;;  %v633_v42 = vpop.permute.xlu0 %632 }
0x1fcf   :  { %v3331_v43 = vld [vmem:[#allocation1 + $0x3] ss:$9 sm:$0xff]  ;;  %v1606_v17 = vperm.slane %v1603_v28, 0  ;;  %638 = vst.msk [vmem:[#allocation13 + $0x3] sm:$0x1] %vm314_vm12, %v633_v42 }
0x1fd0   :  { %1693 = vst [vmem:[#allocation1] sm:$0xff] %v3147_v25  ;;  %v1607_v11 = vperm.slane %v3331_v43, 0  ;;  %v1592_v43 = vperm.slane %v3323_v2, 0 }
0x1fd1   :  { %1608 = vrot.lane.b32.xlu1 %v1606_v17, %s2786_s21  ;;  %766 = vst.msk [vmem:[#allocation13 + $0x3] sm:$0x1] %vm323_vm13, %v761_v47  ;;  %965 = vrot.lane.b32.xlu2 %v963_v13, %s2787_s22 }
0x1fd6   :  { %v648_v50 = vpop.permute.xlu0 %647 }
0x1fd7   :  { %v3339_v45 = vld [vmem:[#allocation1 + $0x3] ss:$9 sm:$0xff]  ;;  %653 = vst.msk [vmem:[#allocation13 + $0x4] sm:$0x1] %vm323_vm13, %v648_v50 }
0x1fd8   :  { %v1697_v16 = vld [vmem:[#allocation1 + $0x4] ss:$9 sm:$0xff]  ;;  %v1698_v18 = vperm.slane %v3339_v45, 0 }
0x1fd9   :  { %v1699_v7 = vperm.slane %v1697_v16, 0  ;;  %1708 = vst [vmem:[#allocation1] sm:$0xff] %v3147_v25  ;;  %982 = vrot.lane.b32.xlu2 %v979_v10, %s2786_s21 }
0x1fdb   :  { %1702 = vrot.lane.b32.xlu1 %v1699_v7, %s2787_s22 }
0x1fde   :  { %v746_v63 = vpop.permute.xlu0 %745 }
0x1fdf   :  { %751 = vst.msk [vmem:[#allocation13 + $0x4] sm:$0x1] %vm314_vm12, %v746_v63 }
0x1fe0   :  { %v1710_v62 = vld [vmem:[#allocation1 + $0x3] ss:$9 sm:$0xff] }
0x1fe1   :  { %v3346_v23 = vld [vmem:[#allocation1 + $0x4] ss:$9 sm:$0xff]  ;;  %1106 = vrot.lane.b32.xlu2 %v1103_v49, %s2787_s22  ;;  %v1713_v14 = vperm.slane %v1710_v62, 0 }
0x1fe2   :  { %1805 = vst [vmem:[#allocation1] sm:$0xff] %v3159_v60  ;;  %v1714_v13 = vperm.slane %v3346_v23, 0 }
0x1fe6   :  { %v763_v38 = vpop.permute.xlu0 %762 }
0x1fe7   :  { %767 = vst.msk [vmem:[#allocation13 + $0xb] sm:$0x1] %vm323_vm13, %v763_v38 }
0x1fe9   :  { %v1807_v25 = vld [vmem:[#allocation1 + $0x4] ss:$9 sm:$0xff]  ;;  %1121 = vrot.lane.b32.xlu2 %v1118_v40, %s2786_s21 }
0x1fea   :  { %v1809_v57 = vld [vmem:[#allocation1 + $0x5] ss:$9 sm:$0xff]  ;;  %v1810_v59 = vperm.slane %v1807_v25, 0 }
0x1feb   :  { %1820 = vst [vmem:[#allocation1] sm:$0xff] %v3159_v60 }
0x1fec   :  { %1812 = vrot.lane.b32.xlu1 %v1810_v59, %s2787_s22 }
0x1fee   :  { %v868_v44 = vpop.permute.xlu0 %867 }
0x1fef   :  { %873 = vst.msk [vmem:[#allocation13 + $0x2] sm:$0x1] %vm323_vm13, %v868_v44 }
0x1ff1   :  { %1389 = vrot.lane.b32.xlu2 %v1379_v58, %s2786_s21  ;;  %v1591_v58 = vperm.slane %v3321_v54, 0 }
0x1ff2   :  { %v3357_v8 = vld [vmem:[#allocation1 + $0x4] ss:$9 sm:$0xff] }
0x1ff3   :  { %v1824_v35 = vld [vmem:[#allocation1 + $0x5] ss:$9 sm:$0xff]  ;;  %v1825_v45 = vperm.slane %v3357_v8, 0 }
0x1ff4   :  { %v1826_v29 = vperm.slane %v1824_v35, 0  ;;  %1911 = vst [vmem:[#allocation1] sm:$0xff] %v3171_v6 }
0x1ff6   :  { %1829 = vrot.lane.b32.xlu1 %v1826_v29, %s2786_s21  ;;  %v968_v41 = vpop.permute.xlu0 %967 }
0x1ff7   :  { %972 = vst.msk [vmem:[#allocation13 + $0xe] sm:$0x1] %vm314_vm12, %v968_v41 }
0x1ff9   :  { %1482 = vrot.lane.b32.xlu2 %v1479_v61, %s2787_s22 }
0x1ffb   :  { %v1913_v60 = vld [vmem:[#allocation1 + $0x5] ss:$9 sm:$0xff] }
0x1ffc   :  { %v3365_v20 = vld [vmem:[#allocation1 + $0x6] ss:$9 sm:$0xff]  ;;  %v1916_v1 = vperm.slane %v1913_v60, 0 }
0x1ffd   :  { %1926 = vst [vmem:[#allocation1] sm:$0xff] %v3171_v6  ;;  %v1917_v50 = vperm.slane %v3365_v20, 0 }
0x1ffe   :  { %v1382_v5 = vpop.permute.xlu0 %1381 }
0x1fff   :  { %1387 = vst.msk [vmem:[#allocation14] sm:$0x1] %vm314_vm12, %v1382_v5 }
0x2001   :  { %1593 = vrot.lane.b32.xlu2 %v1591_v58, %s2787_s22 }
0x2004   :  { %v1928_v39 = vld [vmem:[#allocation1 + $0x5] ss:$9 sm:$0xff] }
0x2005   :  { %v1930_v33 = vld [vmem:[#allocation1 + $0x6] ss:$9 sm:$0xff]  ;;  %v1931_v55 = vperm.slane %v1928_v39, 0 }
0x2006   :  { %2023 = vst [vmem:[#allocation1] sm:$0xff] %v3189_v26  ;;  %v1392_v0 = vpop.permute.xlu0 %1391  ;;  %v1932_v36 = vperm.slane %v1930_v33, 0 }
0x2007   :  { %1933 = vrot.lane.b32.xlu1 %v1931_v55, %s2786_s21  ;;  %1396 = vst.msk [vmem:[#allocation14 + $0xf] sm:$0x1] %vm323_vm13, %v1392_v0 }
0x2009   :  { %1610 = vrot.lane.b32.xlu2 %v1607_v11, %s2786_s21 }
0x200d   :  { %v2027_v6 = vld [vmem:[#allocation1 + $0x7] ss:$9 sm:$0xff] }
0x200e   :  { %v3376_v51 = vld [vmem:[#allocation1 + $0x6] ss:$9 sm:$0xff]  ;;  %v2029_v19 = vperm.slane %v2027_v6, 0 }
0x200f   :  { %2038 = vst [vmem:[#allocation1] sm:$0xff] %v3189_v26  ;;  %v1811_v26 = vperm.slane %v1809_v57, 0  ;;  %v2028_v23 = vperm.slane %v3376_v51, 0 }
0x2010   :  { %2032 = vrot.lane.b32.xlu1 %v2029_v19, %s2787_s22 }
0x2011   :  { %1715 = vrot.lane.b32.xlu2 %v1713_v14, %s2786_s21 }
0x2013   :  { %v2141_v27 = vpop.permute.xlu2 %2140 }
0x2014   :  { %v2146_v56 = vadd.f32 %v2141_v27, %v2126_v4 }
0x2016   :  { %2564 = vtanh.f32 %v2146_v56  ;;  %v2040_v54 = vld [vmem:[#allocation1 + $0x6] ss:$9 sm:$0xff] }
0x2017   :  { %v2043_v46 = vperm.slane %v2040_v54, 0  ;;  %v2042_v49 = vld [vmem:[#allocation1 + $0x7] ss:$9 sm:$0xff] }
0x2018   :  { %v1120_v15 = vpop.permute.xlu1 %1119  ;;  %v2044_v57 = vperm.slane %v2042_v49, 0 }
0x2019   :  { %1125 = vst.msk [vmem:[#allocation13] sm:$0x1] %vm323_vm13, %v1120_v15  ;;  %1814 = vrot.lane.b32.xlu2 %v1811_v26, %s2787_s22 }
0x201b   :  { %v2143_v22 = vpop.permute.xlu2 %2142 }
0x201c   :  { %v2565_v30 = vpop.eup %2564  ;;  %v2147_v31 = vadd.f32 %v2143_v22, %v2127_v12 }
0x201d   :  { %2152 = vrot.lane.b32.xlu0 %v2565_v30, %s2774_s15 }
0x201e   :  { %2566 = vtanh.f32 %v2147_v31 }
0x2020   :  { %v1384_v32 = vpop.permute.xlu1 %1383 }
0x2021   :  { %1388 = vst.msk [vmem:[#allocation14 + $0x8] sm:$0x1] %vm314_vm12, %v1384_v32  ;;  %1918 = vrot.lane.b32.xlu2 %v1916_v1, %s2787_s22 }
0x2023   :  { %v855_v48 = vpop.permute.xlu2 %854 }
0x2024   :  { %v2567_v3 = vpop.eup %2566  ;;  %859 = vst.msk [vmem:[#allocation13 + $0xd] sm:$0x1] %vm314_vm12, %v855_v48 }
0x2025   :  { %2154 = vrot.lane.b32.xlu0 %v2567_v3, %s2774_s15 }
0x2028   :  { %v1481_v37 = vpop.permute.xlu1 %1480 }
0x2029   :  { %1486 = vst.msk [vmem:[#allocation14 + $0x1] sm:$0x1] %vm314_vm12, %v1481_v37  ;;  %1935 = vrot.lane.b32.xlu2 %v1932_v36, %s2786_s21 }
0x202b   :  { %v966_v53 = vpop.permute.xlu2 %965 }
0x202c   :  { %971 = vst.msk [vmem:[#allocation13 + $0x6] sm:$0x1] %vm314_vm12, %v966_v53 }
0x202d   :  { %1495 = vrot.lane.b32.xlu0 %v1493_v52, %s2786_s21 }
0x2031   :  { %2045 = vrot.lane.b32.xlu2 %v2043_v46, %s2786_s21 }
0x2032   :  { %v1498_v9 = vpop.permute.xlu1 %1497 }
0x2033   :  { %1502 = vst.msk [vmem:[#allocation14 + $0xe] sm:$0x1] %vm323_vm13, %v1498_v9  ;;  %v983_v28 = vpop.permute.xlu2 %982 }
0x2034   :  { %987 = vst.msk [vmem:[#allocation13 + $0x9] sm:$0x1] %vm323_vm13, %v983_v28 }
0x2035   :  { %1595 = vrot.lane.b32.xlu0 %v1592_v43, %s2787_s22 }
0x203b   :  { %v1107_v17 = vpop.permute.xlu2 %1106 }
0x203c   :  { %1111 = vst.msk [vmem:[#allocation13 + $0xf] sm:$0x1] %vm314_vm12, %v1107_v17 }
0x203d   :  { %1700 = vrot.lane.b32.xlu0 %v1698_v18, %s2787_s22 }
0x2043   :  { %v1609_v42 = vpop.permute.xlu1 %1608  ;;  %v1122_v47 = vpop.permute.xlu2 %1121 }
0x2044   :  { %1614 = vst.msk [vmem:[#allocation14 + $0x5] sm:$0x1] %vm323_vm13, %v1609_v42 }
0x2045   :  { %1126 = vst.msk [vmem:[#allocation13 + $0x8] sm:$0x1] %vm323_vm13, %v1122_v47  ;;  %1717 = vrot.lane.b32.xlu0 %v1714_v13, %s2786_s21 }
0x2046   :  { %2204 = dma.vmem_to_hbm [thread:$0]  %s2197_s26, 256, %s2199_s24, [#allocation4], %s2779_s3, %s2779_s3, %s2780_s30  }
0x204b   :  { %v1390_v16 = vpop.permute.xlu2 %1389 }
0x204c   :  { %1395 = vst.msk [vmem:[#allocation14 + $0x7] sm:$0x1] %vm323_vm13, %v1390_v16 }
0x204d   :  { %v1703_v2 = vpop.permute.xlu1 %1702  ;;  %1827 = vrot.lane.b32.xlu0 %v1825_v45, %s2786_s21 }
0x204e   :  { %1707 = vst.msk [vmem:[#allocation14 + $0xb] sm:$0x1] %vm314_vm12, %v1703_v2 }
0x2053   :  { %v1483_v7 = vpop.permute.xlu2 %1482 }
0x2054   :  { %1487 = vst.msk [vmem:[#allocation14 + $0x9] sm:$0x1] %vm314_vm12, %v1483_v7 }
0x2055   :  { %1920 = vrot.lane.b32.xlu0 %v1917_v50, %s2787_s22 }
0x205b   :  { %v1594_v62 = vpop.permute.xlu2 %1593 }
0x205c   :  { %1599 = vst.msk [vmem:[#allocation14 + $0x2] sm:$0x1] %vm314_vm12, %v1594_v62 }
0x205d   :  { %2030 = vrot.lane.b32.xlu0 %v2028_v23, %s2787_s22 }
0x205e   :  { %v1813_v10 = vpop.permute.xlu1 %1812 }
0x2063   :  { %v1611_v25 = vpop.permute.xlu2 %1610 }
0x2064   :  { %1615 = vst.msk [vmem:[#allocation14 + $0xd] sm:$0x1] %vm323_vm13, %v1611_v25 }
0x2065   :  { %2047 = vrot.lane.b32.xlu0 %v2044_v57, %s2786_s21 }
0x2068   :  { %v1830_v63 = vpop.permute.xlu1 %1829 }
0x2069   :  { %1834 = vst.msk [vmem:[#allocation14 + $0xb] sm:$0x1] %vm323_vm13, %v1830_v63 }
0x206b   :  { %v1716_v59 = vpop.permute.xlu2 %1715 }
0x206c   :  { %1721 = vst.msk [vmem:[#allocation14 + $0x4] sm:$0x1] %vm323_vm13, %v1716_v59 }
0x206d   :  { %1818 = vst.msk [vmem:[#allocation14 + $0x4] sm:$0x1] %vm314_vm12, %v1813_v10 }
0x2073   :  { %v1815_v40 = vpop.permute.xlu2 %1814 }
0x2079   :  { %v1934_v38 = vpop.permute.xlu1 %1933 }
0x207a   :  { %1939 = vst.msk [vmem:[#allocation14 + $0x2] sm:$0x1] %vm323_vm13, %v1934_v38 }
0x207b   :  { %v1919_v35 = vpop.permute.xlu2 %1918 }
0x207c   :  { %1924 = vst.msk [vmem:[#allocation14 + $0x5] sm:$0x1] %vm314_vm12, %v1919_v35 }
0x2082   :  { %v2033_v8 = vpop.permute.xlu1 %2032 }
0x2083   :  { %2037 = vst.msk [vmem:[#allocation14 + $0xe] sm:$0x1] %vm314_vm12, %v2033_v8  ;;  %v1936_v29 = vpop.permute.xlu2 %1935 }
0x208b   :  { %v2046_v44 = vpop.permute.xlu2 %2045 }
0x208c   :  { %2051 = vst.msk [vmem:[#allocation14 + $0x1] sm:$0x1] %vm323_vm13, %v2046_v44 }
0x208f   :  { %v2153_v60 = vpop.permute.xlu0 %2152 }
0x2090   :  { %v2158_v20 = vmul.f32 %v2153_v60, %v3309_v21 }
0x2092   :  { %2162 = vst [vmem:[#allocation1] sm:$0xff] %v2158_v20 }
0x2097   :  { %v2155_v41 = vpop.permute.xlu0 %2154 }
0x2098   :  { %v2159_v61 = vmul.f32 %v2155_v41, %v3317_v24 }
0x2099   :  { %v2164_v39 = vld [vmem:[#allocation1 + $0x7] ss:$9 sm:$0xff] }
0x209a   :  { %v2167_v33 = vperm.slane %v2164_v39, 0  ;;  %2165 = vst [vmem:[#allocation1] sm:$0xff] %v2159_v61 }
0x209c   :  { %2169 = vrot.lane.b32.xlu1 %v2167_v33, %s2787_s22 }
0x209f   :  { %v1496_v55 = vpop.permute.xlu0 %1495 }
0x20a0   :  { %1501 = vst.msk [vmem:[#allocation14 + $0x6] sm:$0x1] %vm323_vm13, %v1496_v55 }
0x20a1   :  { %v2166_v5 = vld [vmem:[#allocation1] ss:$9 sm:$0xff] }
0x20a2   :  { %v2168_v58 = vperm.slane %v2166_v5, 0  ;;  %2177 = vst [vmem:[#allocation1] sm:$0xff] %v2158_v20 }
0x20a4   :  { %2171 = vrot.lane.b32.xlu2 %v2168_v58, %s2787_s22 }
0x20a7   :  { %v1596_v6 = vpop.permute.xlu0 %1595 }
0x20a8   :  { %1600 = vst.msk [vmem:[#allocation14 + $0xa] sm:$0x1] %vm314_vm12, %v1596_v6 }
0x20a9   :  { %1940 = vst.msk [vmem:[#allocation14 + $0xa] sm:$0x1] %vm323_vm13, %v1936_v29  ;;  %v2179_v21 = vld [vmem:[#allocation1 + $0x7] ss:$9 sm:$0xff] }
0x20aa   :  { %v2182_v24 = vperm.slane %v2179_v21, 0  ;;  %2180 = vst [vmem:[#allocation1] sm:$0xff] %v2159_v61 }
0x20ac   :  { %2184 = vrot.lane.b32.xlu0 %v2182_v24, %s2786_s21 }
0x20af   :  { %v1701_v51 = vpop.permute.xlu0 %1700 }
0x20b0   :  { %1706 = vst.msk [vmem:[#allocation14 + $0x3] sm:$0x1] %vm314_vm12, %v1701_v51 }
0x20b1   :  { %v2181_v19 = vld [vmem:[#allocation1] ss:$9 sm:$0xff] }
0x20b2   :  { %v2183_v0 = vperm.slane %v2181_v19, 0 }
0x20b4   :  { %2186 = vrot.lane.b32.xlu1 %v2183_v0, %s2786_s21 }
0x20b7   :  { %v1718_v11 = vpop.permute.xlu0 %1717 }
0x20b8   :  { %1722 = vst.msk [vmem:[#allocation14 + $0xc] sm:$0x1] %vm323_vm13, %v1718_v11 }
0x20b9   :  { %1819 = vst.msk [vmem:[#allocation14 + $0xc] sm:$0x1] %vm314_vm12, %v1815_v40 }
0x20bf   :  { %v1828_v14 = vpop.permute.xlu0 %1827 }
0x20c0   :  { %1833 = vst.msk [vmem:[#allocation14 + $0x3] sm:$0x1] %vm323_vm13, %v1828_v14 }
0x20c7   :  { %v1921_v34 = vpop.permute.xlu0 %1920 }
0x20c8   :  { %1925 = vst.msk [vmem:[#allocation14 + $0xd] sm:$0x1] %vm314_vm12, %v1921_v34 }
0x20cf   :  { %v2031_v4 = vpop.permute.xlu0 %2030 }
0x20d0   :  { %2036 = vst.msk [vmem:[#allocation14 + $0x6] sm:$0x1] %vm314_vm12, %v2031_v4 }
0x20d7   :  { %v2048_v27 = vpop.permute.xlu0 %2047 }
0x20d8   :  { %2052 = vst.msk [vmem:[#allocation14 + $0x9] sm:$0x1] %vm323_vm13, %v2048_v27 }
0x20fe   :  { %v2172_v56 = vpop.permute.xlu2 %2171 }
0x20ff   :  { %2176 = vst.msk [vmem:[#allocation14 + $0xf] sm:$0x1] %vm314_vm12, %v2172_v56 }
0x210e   :  { %v2170_v26 = vpop.permute.xlu1 %2169 }
0x210f   :  { %2175 = vst.msk [vmem:[#allocation14 + $0x7] sm:$0x1] %vm314_vm12, %v2170_v26 }
0x211e   :  { %v2185_v15 = vpop.permute.xlu0 %2184 }
0x211f   :  { %2190 = vst.msk [vmem:[#allocation14] sm:$0x1] %vm323_vm13, %v2185_v15 }
0x2126   :  { %v2187_v12 = vpop.permute.xlu1 %2186 }
0x2127   :  { %2191 = vst.msk [vmem:[#allocation14 + $0x8] sm:$0x1] %vm323_vm13, %v2187_v12 }
0x2128   :  { %2217 = dma.vmem_to_hbm [thread:$0]  %s2210_s27, 256, %s2212_s0, [#allocation15], %s2779_s3, %s2779_s3, %s2780_s30  }
0x2129   :  { %2768 = dma.done.wait [#allocation4], 256  }
0x212a   :  { %2769 = vsyncadd [#allocation4], 4294967040 }
0x212b   :  { %2770 = dma.done.wait [#allocation15], 256  }
0x212c   :  { %2771 = vsyncadd [#allocation15], 4294967040 }
0x212d   :  { %2226 = vsyncpa [#allocation3], 1 }
0x212e   :  { %2227 = vsyncpa [#allocation6], 1 }
0x212f   :  { %2228 = vsyncpa [#allocation9], 1 }
0x2130   :  { %2229 = vsyncpa [#allocation12], 1 }
0x2131   :  { %2230 = vsyncpa [#allocation4], 1 }
0x2132   :  { %2231 = vsyncpa [#allocation15], 1 }

</bundles_post_ra>
